<compile_context>
chip_gen: v5e
topology: v5e:2x2
jax: 0.10.0
libtpu: 0.0.40
codegen_flags: <defaults>
</compile_context>

<pallas_src>
import functools

import jax
import jax.numpy as jnp
from jax.experimental import pallas as pl
from jax.experimental.pallas import tpu as pltpu


def _classifier_kernel(x_ref, w_ref, b_ref, att_ref, pool_ref, *, inv_hw):
    """One batch tile.

    x_ref:    (bn, C_in, HW)   NCHW activation tile (spatial flattened)
    w_ref:    (C_out, C_in)    1x1-conv weight (resident across grid steps)
    b_ref:    (C_out, 1)       bias, broadcast over the spatial lanes
    att_ref:  (bn, C_out, HW)  attention output (NCHW, spatial flattened)
    pool_ref: (bn, C_out)      global-average-pooled output (lane-dense 2-D block)
    """
    w = w_ref[...]        # hoisted: loaded once per grid step (weight stays resident)
    bias = b_ref[...]     # (C_out, 1) broadcasts over the HW lanes
    bn = x_ref.shape[0]

    # Per-image MXU matmul + bias + cast, stored straight into the output block.
    # (A batched dot_general would lower to the same per-image matmul sequence;
    #  compute is fully hidden under the input DMA regardless.)
    for i in range(bn):
        att_i = jnp.dot(w, x_ref[i], preferred_element_type=jnp.float32) + bias
        att_ref[i] = att_i.astype(att_ref.dtype)

    # AvgPool2d(7, stride=1, padding=0) on a 7x7 map == global mean over the HW
    # lanes.  Batched over the whole tile: one XLU cross-lane reduce, one VPU scale,
    # one lane-dense (bn, C_out) store.  Pooling the already-cast attention matches
    # PyTorch's semantics exactly (gap is applied to the attention tensor).
    att = att_ref[...].astype(jnp.float32)                     # (bn, C_out, HW), VMEM
    pool_ref[...] = (jnp.sum(att, axis=2) * inv_hw).astype(pool_ref.dtype)


def classifier_forward(x_nchw, weight, bias, *, batch_block=8):
    """x_nchw: (N, 2048, H, W), weight: (31, 2048, 1, 1), bias: (31,)."""
    N, C_in, H, W = x_nchw.shape
    C_out = weight.shape[0]
    assert H == 7 and W == 7, "AvgPool2d(kernel_size=7, stride=1) tail expects 7x7 input"
    HW = H * W

    # Batch tile: min(N, 8).  bn==8 satisfies the sublane rule for the (bn, C_out)
    # pooled block; otherwise bn==N (full dim), which is also allowed.  Ragged tails
    # are handled by the cdiv grid (OOB rows computed on don't-care data, writes
    # dropped) rather than by shrinking bn.
    bn = min(batch_block, N)
    grid = (pl.cdiv(N, bn),)

    # Free reshapes only (no transposes, no data movement outside the kernel).
    x3 = x_nchw.reshape(N, C_in, HW)          # (N, C_in, HW), NCHW contiguous
    w = weight.reshape(C_out, C_in)           # (C_out, C_in) -- PyTorch layout as-is
    b = bias.reshape(C_out, 1)                # broadcasts over spatial lanes

    kernel = functools.partial(_classifier_kernel, inv_hw=1.0 / HW)

    itemsize = x_nchw.dtype.itemsize
    bytes_accessed = (N * C_in * HW * itemsize            # activation in
                      + C_out * C_in * itemsize           # weight (once)
                      + C_out * itemsize                  # bias
                      + N * C_out * HW * itemsize         # attention out
                      + N * C_out * itemsize)             # pooled out
    flops = 2 * N * C_out * C_in * HW + 2 * N * C_out * HW

    att3, pooled = pl.pallas_call(
        kernel,
        out_shape=(
            jax.ShapeDtypeStruct((N, C_out, HW), x_nchw.dtype),
            jax.ShapeDtypeStruct((N, C_out), x_nchw.dtype),
        ),
        grid=grid,
        in_specs=[
            pl.BlockSpec((bn, C_in, HW), lambda i: (i, 0, 0)),   # batch-tiled activation
            pl.BlockSpec((C_out, C_in), lambda i: (0, 0)),       # weight: resident
            pl.BlockSpec((C_out, 1), lambda i: (0, 0)),          # bias: resident
        ],
        out_specs=(
            pl.BlockSpec((bn, C_out, HW), lambda i: (i, 0, 0)),  # attention (NCHW)
            pl.BlockSpec((bn, C_out), lambda i: (i, 0)),         # pooled, lane-dense 2-D
        ),
        compiler_params=pltpu.CompilerParams(
            dimension_semantics=("parallel",),     # independent batch tiles (v7x 2-TC)
            # bn=8 => ~16 MiB of double-buffered input blocks (49->128 lane padding)
            # plus weight/outputs/temps; raise the scoped limit so this also fits on
            # v5e's 16 MiB default while staying well under v7x's 64 MiB physical VMEM.
            vmem_limit_bytes=40 * 1024 * 1024,
        ),
        cost_estimate=pl.CostEstimate(
            flops=flops, transcendentals=0, bytes_accessed=bytes_accessed),
    )(x3, w, b)

    # Free trailing-dim reshape back to the PyTorch attention shape; pooled is
    # already (N, C_out).
    attention = att3.reshape(N, C_out, H, W)
    return attention, pooled


if __name__ == "__main__":
    key = jax.random.PRNGKey(0)
    k_x, k_w, k_b = jax.random.split(key, 3)

    # C_in=2048 and 7x7 spatial are fixed by the module; keep the batch small.
    N, C_in, H, W, C_out = 4, 2048, 7, 7, 31
    x = jax.random.normal(k_x, (N, C_in, H, W), dtype=jnp.float32)
    weight = jax.random.normal(k_w, (C_out, C_in, 1, 1), dtype=jnp.float32) * 0.02
    bias = jax.random.normal(k_b, (C_out,), dtype=jnp.float32) * 0.01

    attention, pooled = jax.jit(classifier_forward)(x, weight, bias)
    attention, pooled = jax.block_until_ready((attention, pooled))

    # Reference (plain JAX) check of the exact PyTorch forward semantics.
    att_ref = (jnp.einsum("nchw,oc->nohw", x, weight.reshape(C_out, C_in))
               + bias[None, :, None, None])
    pool_ref = jnp.mean(att_ref, axis=(2, 3))  # AvgPool2d(7,1,0) on 7x7 -> (N, 31)
    assert attention.shape == (N, C_out, H, W)
    assert pooled.shape == (N, C_out)
    assert jnp.allclose(attention, att_ref, atol=1e-3, rtol=1e-3)
    assert jnp.allclose(pooled, pool_ref, atol=1e-3, rtol=1e-3)

    print("KERNEL_OK")
</pallas_src>

<mosaic_0001>
module attributes {stable_mosaic.version = 11 : i64} {
  func.func @_classifier_kernel(%arg0: i32, %arg1: memref<4x2048x49xf32, #tpu.memory_space<vmem>>, %arg2: memref<31x2048xf32, #tpu.memory_space<vmem>>, %arg3: memref<31x1xf32, #tpu.memory_space<vmem>>, %arg4: memref<4x31x49xf32, #tpu.memory_space<vmem>>, %arg5: memref<4x31xf32, #tpu.memory_space<vmem>>) attributes {dimension_semantics = [#tpu.dimension_semantics<parallel>], iteration_bounds = array<i64: 1>, scalar_prefetch = 0 : i64, scratch_operands = 0 : i64, tpu.core_type = #tpu.core_type<tc>, window_params = [{transform_indices = @transform_0, window_bounds = array<i64: 4, 2048, 49>}, {pipeline_mode = #tpu.pipeline_mode<synchronous>, transform_indices = @transform_1, window_bounds = array<i64: 31, 2048>}, {pipeline_mode = #tpu.pipeline_mode<synchronous>, transform_indices = @transform_2, window_bounds = array<i64: 31, 1>}, {transform_indices = @transform_3, window_bounds = array<i64: 4, 31, 49>}, {transform_indices = @transform_4, window_bounds = array<i64: 4, 31>}]} {
    %c0 = arith.constant 0 : index
    %c0_0 = arith.constant 0 : index
    %0 = vector.load %arg2[%c0, %c0_0] : memref<31x2048xf32, #tpu.memory_space<vmem>>, vector<31x2048xf32>
    %c0_1 = arith.constant 0 : index
    %c0_2 = arith.constant 0 : index
    %1 = vector.load %arg3[%c0_1, %c0_2] : memref<31x1xf32, #tpu.memory_space<vmem>>, vector<31x1xf32>
    %c0_3 = arith.constant 0 : index
    %c0_4 = arith.constant 0 : index
    %c0_5 = arith.constant 0 : index
    %2 = vector.load %arg1[%c0_3, %c0_4, %c0_5] : memref<4x2048x49xf32, #tpu.memory_space<vmem>>, vector<1x2048x49xf32>
    %3 = vector.shape_cast %2 : vector<1x2048x49xf32> to vector<2048x49xf32>
    %cst = arith.constant dense<0.000000e+00> : vector<31x49xf32>
    %4 = tpu.matmul %0, %3, %cst {dimension_numbers = #tpu.dot_dimension_numbers<[1], [0], [0], [1], [0, 0, 1, 1], [], []>} : vector<31x2048xf32>, vector<2048x49xf32>, vector<31x49xf32> -> vector<31x49xf32>
    %5 = vector.broadcast %1 : vector<31x1xf32> to vector<31x49xf32>
    %6 = arith.addf %4, %5 : vector<31x49xf32>
    %c0_6 = arith.constant 0 : index
    %c0_7 = arith.constant 0 : index
    %c0_8 = arith.constant 0 : index
    %7 = vector.load %arg4[%c0_6, %c0_7, %c0_8] : memref<4x31x49xf32, #tpu.memory_space<vmem>>, vector<1x31x49xf32>
    %8 = vector.shape_cast %7 : vector<1x31x49xf32> to vector<31x49xf32>
    %9 = vector.shape_cast %6 : vector<31x49xf32> to vector<1x31x49xf32>
    tpu.vector_store %arg4[%c0_6, %c0_7, %c0_8], %9 {strides = array<i32>} : memref<4x31x49xf32, #tpu.memory_space<vmem>>, vector<1x31x49xf32>,
    %c1 = arith.constant 1 : index
    %c0_9 = arith.constant 0 : index
    %c0_10 = arith.constant 0 : index
    %10 = vector.load %arg1[%c1, %c0_9, %c0_10] : memref<4x2048x49xf32, #tpu.memory_space<vmem>>, vector<1x2048x49xf32>
    %11 = vector.shape_cast %10 : vector<1x2048x49xf32> to vector<2048x49xf32>
    %cst_11 = arith.constant dense<0.000000e+00> : vector<31x49xf32>
    %12 = tpu.matmul %0, %11, %cst_11 {dimension_numbers = #tpu.dot_dimension_numbers<[1], [0], [0], [1], [0, 0, 1, 1], [], []>} : vector<31x2048xf32>, vector<2048x49xf32>, vector<31x49xf32> -> vector<31x49xf32>
    %13 = vector.broadcast %1 : vector<31x1xf32> to vector<31x49xf32>
    %14 = arith.addf %12, %13 : vector<31x49xf32>
    %c1_12 = arith.constant 1 : index
    %c0_13 = arith.constant 0 : index
    %c0_14 = arith.constant 0 : index
    %15 = vector.load %arg4[%c1_12, %c0_13, %c0_14] : memref<4x31x49xf32, #tpu.memory_space<vmem>>, vector<1x31x49xf32>
    %16 = vector.shape_cast %15 : vector<1x31x49xf32> to vector<31x49xf32>
    %17 = vector.shape_cast %14 : vector<31x49xf32> to vector<1x31x49xf32>
    tpu.vector_store %arg4[%c1_12, %c0_13, %c0_14], %17 {strides = array<i32>} : memref<4x31x49xf32, #tpu.memory_space<vmem>>, vector<1x31x49xf32>,
    %c2 = arith.constant 2 : index
    %c0_15 = arith.constant 0 : index
    %c0_16 = arith.constant 0 : index
    %18 = vector.load %arg1[%c2, %c0_15, %c0_16] : memref<4x2048x49xf32, #tpu.memory_space<vmem>>, vector<1x2048x49xf32>
    %19 = vector.shape_cast %18 : vector<1x2048x49xf32> to vector<2048x49xf32>
    %cst_17 = arith.constant dense<0.000000e+00> : vector<31x49xf32>
    %20 = tpu.matmul %0, %19, %cst_17 {dimension_numbers = #tpu.dot_dimension_numbers<[1], [0], [0], [1], [0, 0, 1, 1], [], []>} : vector<31x2048xf32>, vector<2048x49xf32>, vector<31x49xf32> -> vector<31x49xf32>
    %21 = vector.broadcast %1 : vector<31x1xf32> to vector<31x49xf32>
    %22 = arith.addf %20, %21 : vector<31x49xf32>
    %c2_18 = arith.constant 2 : index
    %c0_19 = arith.constant 0 : index
    %c0_20 = arith.constant 0 : index
    %23 = vector.load %arg4[%c2_18, %c0_19, %c0_20] : memref<4x31x49xf32, #tpu.memory_space<vmem>>, vector<1x31x49xf32>
    %24 = vector.shape_cast %23 : vector<1x31x49xf32> to vector<31x49xf32>
    %25 = vector.shape_cast %22 : vector<31x49xf32> to vector<1x31x49xf32>
    tpu.vector_store %arg4[%c2_18, %c0_19, %c0_20], %25 {strides = array<i32>} : memref<4x31x49xf32, #tpu.memory_space<vmem>>, vector<1x31x49xf32>,
    %c3 = arith.constant 3 : index
    %c0_21 = arith.constant 0 : index
    %c0_22 = arith.constant 0 : index
    %26 = vector.load %arg1[%c3, %c0_21, %c0_22] : memref<4x2048x49xf32, #tpu.memory_space<vmem>>, vector<1x2048x49xf32>
    %27 = vector.shape_cast %26 : vector<1x2048x49xf32> to vector<2048x49xf32>
    %cst_23 = arith.constant dense<0.000000e+00> : vector<31x49xf32>
    %28 = tpu.matmul %0, %27, %cst_23 {dimension_numbers = #tpu.dot_dimension_numbers<[1], [0], [0], [1], [0, 0, 1, 1], [], []>} : vector<31x2048xf32>, vector<2048x49xf32>, vector<31x49xf32> -> vector<31x49xf32>
    %29 = vector.broadcast %1 : vector<31x1xf32> to vector<31x49xf32>
    %30 = arith.addf %28, %29 : vector<31x49xf32>
    %c3_24 = arith.constant 3 : index
    %c0_25 = arith.constant 0 : index
    %c0_26 = arith.constant 0 : index
    %31 = vector.load %arg4[%c3_24, %c0_25, %c0_26] : memref<4x31x49xf32, #tpu.memory_space<vmem>>, vector<1x31x49xf32>
    %32 = vector.shape_cast %31 : vector<1x31x49xf32> to vector<31x49xf32>
    %33 = vector.shape_cast %30 : vector<31x49xf32> to vector<1x31x49xf32>
    tpu.vector_store %arg4[%c3_24, %c0_25, %c0_26], %33 {strides = array<i32>} : memref<4x31x49xf32, #tpu.memory_space<vmem>>, vector<1x31x49xf32>,
    %c0_27 = arith.constant 0 : index
    %c0_28 = arith.constant 0 : index
    %c0_29 = arith.constant 0 : index
    %34 = vector.load %arg4[%c0_27, %c0_28, %c0_29] : memref<4x31x49xf32, #tpu.memory_space<vmem>>, vector<4x31x49xf32>
    %cst_30 = arith.constant dense<0.000000e+00> : vector<4x31xf32>
    %35 = vector.multi_reduction <add>, %34, %cst_30 [2] : vector<4x31x49xf32> to vector<4x31xf32>
    %cst_31 = arith.constant 0.0204081628 : f32
    %36 = vector.broadcast %cst_31 : f32 to vector<4x31xf32>
    %37 = arith.mulf %35, %36 : vector<4x31xf32>
    %c0_32 = arith.constant 0 : index
    %c0_33 = arith.constant 0 : index
    %38 = vector.load %arg5[%c0_32, %c0_33] : memref<4x31xf32, #tpu.memory_space<vmem>>, vector<4x31xf32>
    tpu.vector_store %arg5[%c0_32, %c0_33], %37 {strides = array<i32>} : memref<4x31xf32, #tpu.memory_space<vmem>>, vector<4x31xf32>,
    return
  }
  func.func @transform_0(%arg0: i32) -> (i32, i32, i32) {
    %c0_i32 = arith.constant 0 : i32
    %c0_i32_0 = arith.constant 0 : i32
    %c0_i32_1 = arith.constant 0 : i32
    return %arg0, %c0_i32, %c0_i32_0 : i32, i32, i32
  }
  func.func @transform_1(%arg0: i32) -> (i32, i32) {
    %c0_i32 = arith.constant 0 : i32
    %c0_i32_0 = arith.constant 0 : i32
    %c0_i32_1 = arith.constant 0 : i32
    return %c0_i32, %c0_i32_0 : i32, i32
  }
  func.func @transform_2(%arg0: i32) -> (i32, i32) {
    %c0_i32 = arith.constant 0 : i32
    %c0_i32_0 = arith.constant 0 : i32
    %c0_i32_1 = arith.constant 0 : i32
    return %c0_i32, %c0_i32_0 : i32, i32
  }
  func.func @transform_3(%arg0: i32) -> (i32, i32, i32) {
    %c0_i32 = arith.constant 0 : i32
    %c0_i32_0 = arith.constant 0 : i32
    %c0_i32_1 = arith.constant 0 : i32
    return %arg0, %c0_i32, %c0_i32_0 : i32, i32, i32
  }
  func.func @transform_4(%arg0: i32) -> (i32, i32) {
    %c0_i32 = arith.constant 0 : i32
    %c0_i32_0 = arith.constant 0 : i32
    return %arg0, %c0_i32 : i32, i32
  }
}

</mosaic_0001>

<bundles_post_ra>
// kernel: classifier_forward.1
= control target key start
LH: loop header
LB: loop body
LE: loop exit
PB: predicated region body
PF: predicated region fallthrough
CT: control target
= control target key end

     0   :  { %s8656_s0 = inlined_call_operand.vmem [shape: f32[4,2048,49], index: 0, kind: input, shape index: {}]   ;;  %s8657_s1 = inlined_call_operand.vmem [shape: f32[31,2048], index: 1, kind: input, shape index: {}]   ;;  %s8658_s2 = inlined_call_operand.vmem [shape: f32[31,1], index: 2, kind: input, shape index: {}]   ;;  %s8659_s3 = inlined_call_operand.vmem [shape: f32[4,31,49], index: 3, kind: output, shape index: {0}]   ;;  %s8660_s4 = inlined_call_operand.hbm [shape: f32[4,31], index: 4, kind: output, shape index: {1}]  }
   0x1   :  { %v100_v0 = vld [vmem:[%s8656_s0 + $0x78] sm:$0xff]  ;;  %v99_v2 = vld [vmem:[%s8656_s0 + $0x70] sm:$0xff]  ;;  %v98_v6 = vld [vmem:[%s8656_s0 + $0x68] sm:$0xff] }
   0x2   :  { %v132_v1 = vld [vmem:[%s8656_s0 + $0x178] sm:$0xff]  ;;  %361 = vmatpush.msra.mxu0 %v100_v0  ;;  %v131_v4 = vld [vmem:[%s8656_s0 + $0x170] sm:$0xff]  ;;  %v130_v8 = vld [vmem:[%s8656_s0 + $0x168] sm:$0xff] }
   0x3   :  { %419 = vmatpush.msra.mxu2 %v132_v1  ;;  %v116_v3 = vld [vmem:[%s8656_s0 + $0xf8] sm:$0xff]  ;;  %v115_v7 = vld [vmem:[%s8656_s0 + $0xf0] sm:$0xff]  ;;  %v114_v10 = vld [vmem:[%s8656_s0 + $0xe8] sm:$0xff] }
   0x4   :  { %v148_v5 = vld [vmem:[%s8656_s0 + $0x1f8] sm:$0xff]  ;;  %390 = vmatpush.msra.mxu1 %v116_v3  ;;  %362 = vmatpush.msra.mxu0 %v99_v2  ;;  %v147_v9 = vld [vmem:[%s8656_s0 + $0x1f0] sm:$0xff]  ;;  %v97_v11 = vld [vmem:[%s8656_s0 + $0x60] sm:$0xff] }
   0x5   :  { %448 = vmatpush.msra.mxu3 %v148_v5  ;;  %420 = vmatpush.msra.mxu2 %v131_v4  ;;  %v129_v12 = vld [vmem:[%s8656_s0 + $0x160] sm:$0xff]  ;;  %v146_v13 = vld [vmem:[%s8656_s0 + $0x1e8] sm:$0xff]  ;;  %v96_v16 = vld [vmem:[%s8656_s0 + $0x58] sm:$0xff] }
   0x6   :  { %391 = vmatpush.msra.mxu1 %v115_v7  ;;  %363 = vmatpush.msra.mxu0 %v98_v6  ;;  %v113_v14 = vld [vmem:[%s8656_s0 + $0xe0] sm:$0xff]  ;;  %v128_v17 = vld [vmem:[%s8656_s0 + $0x158] sm:$0xff]  ;;  %v95_v20 = vld [vmem:[%s8656_s0 + $0x50] sm:$0xff] }
   0x7   :  { %449 = vmatpush.msra.mxu3 %v147_v9  ;;  %421 = vmatpush.msra.mxu2 %v130_v8  ;;  %v145_v15 = vld [vmem:[%s8656_s0 + $0x1e0] sm:$0xff]  ;;  %v112_v18 = vld [vmem:[%s8656_s0 + $0xd8] sm:$0xff]  ;;  %v127_v21 = vld [vmem:[%s8656_s0 + $0x150] sm:$0xff] }
   0x8   :  { %392 = vmatpush.msra.mxu1 %v114_v10  ;;  %364 = vmatpush.msra.mxu0 %v97_v11  ;;  %v144_v19 = vld [vmem:[%s8656_s0 + $0x1d8] sm:$0xff]  ;;  %v111_v22 = vld [vmem:[%s8656_s0 + $0xd0] sm:$0xff]  ;;  %v94_v24 = vld [vmem:[%s8656_s0 + $0x48] sm:$0xff] }
   0x9   :  { %450 = vmatpush.msra.mxu3 %v146_v13  ;;  %422 = vmatpush.msra.mxu2 %v129_v12  ;;  %v143_v23 = vld [vmem:[%s8656_s0 + $0x1d0] sm:$0xff]  ;;  %v126_v25 = vld [vmem:[%s8656_s0 + $0x148] sm:$0xff]  ;;  %v93_v28 = vld [vmem:[%s8656_s0 + $0x40] sm:$0xff] }
   0xa   :  { %393 = vmatpush.msra.mxu1 %v113_v14  ;;  %365 = vmatpush.msra.mxu0 %v96_v16  ;;  %v110_v26 = vld [vmem:[%s8656_s0 + $0xc8] sm:$0xff]  ;;  %v125_v29 = vld [vmem:[%s8656_s0 + $0x140] sm:$0xff]  ;;  %v92_v32 = vld [vmem:[%s8656_s0 + $0x38] sm:$0xff] }
   0xb   :  { %451 = vmatpush.msra.mxu3 %v145_v15  ;;  %423 = vmatpush.msra.mxu2 %v128_v17  ;;  %v142_v27 = vld [vmem:[%s8656_s0 + $0x1c8] sm:$0xff]  ;;  %v109_v30 = vld [vmem:[%s8656_s0 + $0xc0] sm:$0xff]  ;;  %v124_v33 = vld [vmem:[%s8656_s0 + $0x138] sm:$0xff] }
   0xc   :  { %394 = vmatpush.msra.mxu1 %v112_v18  ;;  %366 = vmatpush.msra.mxu0 %v95_v20  ;;  %v141_v31 = vld [vmem:[%s8656_s0 + $0x1c0] sm:$0xff]  ;;  %v108_v34 = vld [vmem:[%s8656_s0 + $0xb8] sm:$0xff]  ;;  %v91_v36 = vld [vmem:[%s8656_s0 + $0x30] sm:$0xff] }
   0xd   :  { %452 = vmatpush.msra.mxu3 %v144_v19  ;;  %424 = vmatpush.msra.mxu2 %v127_v21  ;;  %v140_v35 = vld [vmem:[%s8656_s0 + $0x1b8] sm:$0xff]  ;;  %v123_v37 = vld [vmem:[%s8656_s0 + $0x130] sm:$0xff]  ;;  %v90_v40 = vld [vmem:[%s8656_s0 + $0x28] sm:$0xff] }
   0xe   :  { %395 = vmatpush.msra.mxu1 %v111_v22  ;;  %367 = vmatpush.msra.mxu0 %v94_v24  ;;  %v107_v38 = vld [vmem:[%s8656_s0 + $0xb0] sm:$0xff]  ;;  %v122_v41 = vld [vmem:[%s8656_s0 + $0x128] sm:$0xff]  ;;  %v89_v44 = vld [vmem:[%s8656_s0 + $0x20] sm:$0xff] }
   0xf   :  { %453 = vmatpush.msra.mxu3 %v143_v23  ;;  %425 = vmatpush.msra.mxu2 %v126_v25  ;;  %v139_v39 = vld [vmem:[%s8656_s0 + $0x1b0] sm:$0xff]  ;;  %v106_v42 = vld [vmem:[%s8656_s0 + $0xa8] sm:$0xff]  ;;  %v121_v45 = vld [vmem:[%s8656_s0 + $0x120] sm:$0xff] }
  0x10   :  { %396 = vmatpush.msra.mxu1 %v110_v26  ;;  %368 = vmatpush.msra.mxu0 %v93_v28  ;;  %v138_v43 = vld [vmem:[%s8656_s0 + $0x1a8] sm:$0xff]  ;;  %v105_v46 = vld [vmem:[%s8656_s0 + $0xa0] sm:$0xff]  ;;  %v88_v48 = vld [vmem:[%s8656_s0 + $0x18] sm:$0xff] }
  0x11   :  { %454 = vmatpush.msra.mxu3 %v142_v27  ;;  %426 = vmatpush.msra.mxu2 %v125_v29  ;;  %v137_v47 = vld [vmem:[%s8656_s0 + $0x1a0] sm:$0xff]  ;;  %v120_v49 = vld [vmem:[%s8656_s0 + $0x118] sm:$0xff]  ;;  %v87_v52 = vld [vmem:[%s8656_s0 + $0x10] sm:$0xff] }
  0x12   :  { %397 = vmatpush.msra.mxu1 %v109_v30  ;;  %369 = vmatpush.msra.mxu0 %v92_v32  ;;  %v104_v50 = vld [vmem:[%s8656_s0 + $0x98] sm:$0xff]  ;;  %v119_v53 = vld [vmem:[%s8656_s0 + $0x110] sm:$0xff]  ;;  %v86_v56 = vld [vmem:[%s8656_s0 + $0x8] sm:$0xff] }
  0x13   :  { %455 = vmatpush.msra.mxu3 %v141_v31  ;;  %427 = vmatpush.msra.mxu2 %v124_v33  ;;  %v136_v51 = vld [vmem:[%s8656_s0 + $0x198] sm:$0xff]  ;;  %v103_v54 = vld [vmem:[%s8656_s0 + $0x90] sm:$0xff]  ;;  %v118_v57 = vld [vmem:[%s8656_s0 + $0x108] sm:$0xff] }
  0x14   :  { %398 = vmatpush.msra.mxu1 %v108_v34  ;;  %370 = vmatpush.msra.mxu0 %v91_v36  ;;  %v135_v55 = vld [vmem:[%s8656_s0 + $0x190] sm:$0xff]  ;;  %v102_v58 = vld [vmem:[%s8656_s0 + $0x88] sm:$0xff]  ;;  %v85_v60 = vld [vmem:[%s8656_s0] sm:$0xff] }
  0x15   :  { %456 = vmatpush.msra.mxu3 %v140_v35  ;;  %428 = vmatpush.msra.mxu2 %v123_v37  ;;  %v134_v59 = vld [vmem:[%s8656_s0 + $0x188] sm:$0xff]  ;;  %v117_v61 = vld [vmem:[%s8656_s0 + $0x100] sm:$0xff]  ;;  %v19_v63 = vld [vmem:[%s8657_s1 + $0x10] sm:$0xff]  ;;  %v4172_v35 = vmov 0  }
  0x16   :  { %399 = vmatpush.msra.mxu1 %v107_v38  ;;  %371 = vmatpush.msra.mxu0 %v90_v40  ;;  %v17_v62 = vld [vmem:[%s8657_s1] sm:$0xff]  ;;  %v196_v0 = vld [vmem:[%s8656_s0 + $0x378] sm:$0xff]  ;;  %v18_v4 = vld [vmem:[%s8657_s1 + $0x8] sm:$0xff] }
  0x17   :  { %457 = vmatpush.msra.mxu3 %v139_v39  ;;  %429 = vmatpush.msra.mxu2 %v122_v41  ;;  %v101_v1 = vld [vmem:[%s8656_s0 + $0x80] sm:$0xff]  ;;  %v164_v3 = vld [vmem:[%s8656_s0 + $0x278] sm:$0xff]  ;;  %v195_v6 = vld [vmem:[%s8656_s0 + $0x370] sm:$0xff] }
  0x18   :  { %400 = vmatpush.msra.mxu1 %v106_v42  ;;  %372 = vmatpush.msra.mxu0 %v89_v44  ;;  %v133_v2 = vld [vmem:[%s8656_s0 + $0x180] sm:$0xff]  ;;  %v20_v5 = vld [vmem:[%s8657_s1 + $0x18] sm:$0xff]  ;;  %v163_v8 = vld [vmem:[%s8656_s0 + $0x270] sm:$0xff] }
  0x19   :  { %458 = vmatpush.msra.mxu3 %v138_v43  ;;  %430 = vmatpush.msra.mxu2 %v121_v45  ;;  %v212_v7 = vld [vmem:[%s8656_s0 + $0x3f8] sm:$0xff]  ;;  %v194_v10 = vld [vmem:[%s8656_s0 + $0x368] sm:$0xff]  ;;  %v211_v11 = vld [vmem:[%s8656_s0 + $0x3f0] sm:$0xff] }
  0x1a   :  { %401 = vmatpush.msra.mxu1 %v105_v46  ;;  %373 = vmatpush.msra.mxu0 %v88_v48  ;;  %v180_v9 = vld [vmem:[%s8656_s0 + $0x2f8] sm:$0xff]  ;;  %v162_v12 = vld [vmem:[%s8656_s0 + $0x268] sm:$0xff]  ;;  %v179_v13 = vld [vmem:[%s8656_s0 + $0x2f0] sm:$0xff] }
  0x1b   :  { %459 = vmatpush.msra.mxu3 %v137_v47  ;;  %431 = vmatpush.msra.mxu2 %v120_v49  ;;  %v193_v14 = vld [vmem:[%s8656_s0 + $0x360] sm:$0xff]  ;;  %v210_v15 = vld [vmem:[%s8656_s0 + $0x3e8] sm:$0xff]  ;;  %v35_v19 = vld [vmem:[%s8657_s1 + $0x90] sm:$0xff] }
  0x1c   :  { %402 = vmatpush.msra.mxu1 %v104_v50  ;;  %374 = vmatpush.msra.mxu0 %v87_v52  ;;  %v161_v16 = vld [vmem:[%s8656_s0 + $0x260] sm:$0xff]  ;;  %v178_v17 = vld [vmem:[%s8656_s0 + $0x2e8] sm:$0xff]  ;;  %v192_v20 = vld [vmem:[%s8656_s0 + $0x358] sm:$0xff] }
  0x1d   :  { %460 = vmatpush.msra.mxu3 %v136_v51  ;;  %432 = vmatpush.msra.mxu2 %v119_v53  ;;  %v33_v18 = vld [vmem:[%s8657_s1 + $0x80] sm:$0xff]  ;;  %v160_v22 = vld [vmem:[%s8656_s0 + $0x258] sm:$0xff]  ;;  %v34_v24 = vld [vmem:[%s8657_s1 + $0x88] sm:$0xff] }
  0x1e   :  { %403 = vmatpush.msra.mxu1 %v103_v54  ;;  %375 = vmatpush.msra.mxu0 %v86_v56  ;;  %v209_v21 = vld [vmem:[%s8656_s0 + $0x3e0] sm:$0xff]  ;;  %v36_v25 = vld [vmem:[%s8657_s1 + $0x98] sm:$0xff]  ;;  %v191_v26 = vld [vmem:[%s8656_s0 + $0x350] sm:$0xff] }
  0x1f   :  { %461 = vmatpush.msra.mxu3 %v135_v55  ;;  %433 = vmatpush.msra.mxu2 %v118_v57  ;;  %v177_v23 = vld [vmem:[%s8656_s0 + $0x2e0] sm:$0xff]  ;;  %v208_v27 = vld [vmem:[%s8656_s0 + $0x3d8] sm:$0xff]  ;;  %v159_v28 = vld [vmem:[%s8656_s0 + $0x250] sm:$0xff] }
  0x20   :  { %404 = vmatpush.msra.mxu1 %v102_v58  ;;  %376 = vmatpush.msra.mxu0 %v85_v60  ;;  %v176_v29 = vld [vmem:[%s8656_s0 + $0x2d8] sm:$0xff]  ;;  %v190_v30 = vld [vmem:[%s8656_s0 + $0x348] sm:$0xff]  ;;  %v207_v31 = vld [vmem:[%s8656_s0 + $0x3d0] sm:$0xff] }
  0x21   :  { %462 = vmatpush.msra.mxu3 %v134_v59  ;;  %434 = vmatpush.msra.mxu2 %v117_v61  ;;  %v158_v32 = vld [vmem:[%s8656_s0 + $0x248] sm:$0xff]  ;;  %v175_v33 = vld [vmem:[%s8656_s0 + $0x2d0] sm:$0xff]  ;;  %v81_v34 = vld [vmem:[%s8658_s2] sm:$0xff] }
  0x22   :  { %377 = vmatmul.f32.vlgmr.msra.gmra.mxu0 %v17_v62  ;;  %435 = vmatmul.f32.vlgmr.msra.gmra.mxu2 %v19_v63  ;;  %v189_v36 = vld [vmem:[%s8656_s0 + $0x340] sm:$0xff]  ;;  %v206_v37 = vld [vmem:[%s8656_s0 + $0x3c8] sm:$0xff]  ;;  %v51_v41 = vld [vmem:[%s8657_s1 + $0x110] sm:$0xff] }
  0x23   :  { %535 = vmatpush.msrb.mxu2 %v196_v0  ;;  %405 = vmatpush.msra.mxu1 %v101_v1  ;;  %v157_v38 = vld [vmem:[%s8656_s0 + $0x240] sm:$0xff]  ;;  %v174_v39 = vld [vmem:[%s8656_s0 + $0x2c8] sm:$0xff]  ;;  %v188_v42 = vld [vmem:[%s8656_s0 + $0x338] sm:$0xff] }
  0x24   :  { %463 = vmatpush.msra.mxu3 %v133_v2  ;;  %477 = vmatpush.msrb.mxu0 %v164_v3  ;;  %v49_v40 = vld [vmem:[%s8657_s1 + $0x100] sm:$0xff]  ;;  %v156_v44 = vld [vmem:[%s8656_s0 + $0x238] sm:$0xff]  ;;  %v50_v46 = vld [vmem:[%s8657_s1 + $0x108] sm:$0xff] }
  0x25   :  { %406 = vmatmul.f32.vlgmr.msra.gmra.mxu1 %v18_v4  ;;  %464 = vmatmul.f32.vlgmr.msra.gmra.mxu3 %v20_v5  ;;  %v205_v43 = vld [vmem:[%s8656_s0 + $0x3c0] sm:$0xff]  ;;  %v52_v47 = vld [vmem:[%s8657_s1 + $0x118] sm:$0xff]  ;;  %v187_v48 = vld [vmem:[%s8656_s0 + $0x330] sm:$0xff] }
  0x26   :  { %536 = vmatpush.msrb.mxu2 %v195_v6  ;;  %564 = vmatpush.msrb.mxu3 %v212_v7  ;;  %v173_v45 = vld [vmem:[%s8656_s0 + $0x2c0] sm:$0xff]  ;;  %v204_v49 = vld [vmem:[%s8656_s0 + $0x3b8] sm:$0xff]  ;;  %v155_v50 = vld [vmem:[%s8656_s0 + $0x230] sm:$0xff] }
  0x27   :  { %478 = vmatpush.msrb.mxu0 %v163_v8  ;;  %506 = vmatpush.msrb.mxu1 %v180_v9  ;;  %v172_v51 = vld [vmem:[%s8656_s0 + $0x2b8] sm:$0xff]  ;;  %v186_v52 = vld [vmem:[%s8656_s0 + $0x328] sm:$0xff]  ;;  %v203_v53 = vld [vmem:[%s8656_s0 + $0x3b0] sm:$0xff] }
  0x28   :  { %537 = vmatpush.msrb.mxu2 %v194_v10  ;;  %565 = vmatpush.msrb.mxu3 %v211_v11  ;;  %v154_v54 = vld [vmem:[%s8656_s0 + $0x228] sm:$0xff]  ;;  %v171_v55 = vld [vmem:[%s8656_s0 + $0x2b0] sm:$0xff]  ;;  %v185_v57 = vld [vmem:[%s8656_s0 + $0x320] sm:$0xff] }
  0x29   :  { %479 = vmatpush.msrb.mxu0 %v162_v12  ;;  %507 = vmatpush.msrb.mxu1 %v179_v13  ;;  %v82_v56 = vld [vmem:[%s8658_s2 + $0x8] sm:$0xff]  ;;  %v153_v59 = vld [vmem:[%s8656_s0 + $0x220] sm:$0xff]  ;;  %v67_v62 = vld [vmem:[%s8657_s1 + $0x190] sm:$0x7f] }
  0x2a   :  { %538 = vmatpush.msrb.mxu2 %v193_v14  ;;  %566 = vmatpush.msrb.mxu3 %v210_v15  ;;  %v202_v58 = vld [vmem:[%s8656_s0 + $0x3a8] sm:$0xff]  ;;  %v65_v61 = vld [vmem:[%s8657_s1 + $0x180] sm:$0x7f]  ;;  %v184_v0 = vld [vmem:[%s8656_s0 + $0x318] sm:$0xff] }
  0x2b   :  { %480 = vmatpush.msrb.mxu0 %v161_v16  ;;  %508 = vmatpush.msrb.mxu1 %v178_v17  ;;  %v170_v60 = vld [vmem:[%s8656_s0 + $0x2a8] sm:$0xff]  ;;  %v201_v63 = vld [vmem:[%s8656_s0 + $0x3a0] sm:$0xff]  ;;  %v152_v1 = vld [vmem:[%s8656_s0 + $0x218] sm:$0xff] }
  0x2c   :  { %380 = vmatmul.f32.gmra.mxu0 %v33_v18  ;;  %438 = vmatmul.f32.gmra.mxu2 %v35_v19 }
  0x2d   :  { %539 = vmatpush.msrb.mxu2 %v192_v20  ;;  %567 = vmatpush.msrb.mxu3 %v209_v21 }
  0x2e   :  { %481 = vmatpush.msrb.mxu0 %v160_v22  ;;  %509 = vmatpush.msrb.mxu1 %v177_v23 }
  0x2f   :  { %409 = vmatmul.f32.gmra.mxu1 %v34_v24  ;;  %467 = vmatmul.f32.gmra.mxu3 %v36_v25 }
  0x30   :  { %540 = vmatpush.msrb.mxu2 %v191_v26  ;;  %568 = vmatpush.msrb.mxu3 %v208_v27 }
  0x31   :  { %482 = vmatpush.msrb.mxu0 %v159_v28  ;;  %510 = vmatpush.msrb.mxu1 %v176_v29 }
  0x32   :  { %3952 = vset.pattern.permute.xlu0 %v4172_v35  ;;  %541 = vmatpush.msrb.mxu2 %v190_v30 }
  0x33   :  { %569 = vmatpush.msrb.mxu3 %v207_v31  ;;  %483 = vmatpush.msrb.mxu0 %v158_v32 }
  0x34   :  { %511 = vmatpush.msrb.mxu1 %v175_v33  ;;  %343 = vperm.xlu0 %3952, %v81_v34  }
  0x35   :  { %542 = vmatpush.msrb.mxu2 %v189_v36  ;;  %570 = vmatpush.msrb.mxu3 %v206_v37 }
  0x36   :  { %484 = vmatpush.msrb.mxu0 %v157_v38  ;;  %512 = vmatpush.msrb.mxu1 %v174_v39 }
  0x37   :  { %383 = vmatmul.f32.gmra.mxu0 %v49_v40  ;;  %441 = vmatmul.f32.gmra.mxu2 %v51_v41 }
  0x38   :  { %543 = vmatpush.msrb.mxu2 %v188_v42  ;;  %571 = vmatpush.msrb.mxu3 %v205_v43 }
  0x39   :  { %485 = vmatpush.msrb.mxu0 %v156_v44  ;;  %513 = vmatpush.msrb.mxu1 %v173_v45 }
  0x3a   :  { %412 = vmatmul.f32.gmra.mxu1 %v50_v46  ;;  %470 = vmatmul.f32.gmra.mxu3 %v52_v47 }
  0x3b   :  { %544 = vmatpush.msrb.mxu2 %v187_v48  ;;  %572 = vmatpush.msrb.mxu3 %v204_v49 }
  0x3c   :  { %486 = vmatpush.msrb.mxu0 %v155_v50  ;;  %514 = vmatpush.msrb.mxu1 %v172_v51 }
  0x3d   :  { %545 = vmatpush.msrb.mxu2 %v186_v52  ;;  %573 = vmatpush.msrb.mxu3 %v203_v53 }
  0x3e   :  { %487 = vmatpush.msrb.mxu0 %v154_v54  ;;  %515 = vmatpush.msrb.mxu1 %v171_v55 }
  0x3f   :  { %348 = vperm.xlu0 %3952, %v82_v56   ;;  %546 = vmatpush.msrb.mxu2 %v185_v57 }
  0x40   :  { %574 = vmatpush.msrb.mxu3 %v202_v58  ;;  %488 = vmatpush.msrb.mxu0 %v153_v59 }
  0x41   :  { %10 = vsyncpa [#allocation3], 0  ;;  %516 = vmatpush.msrb.mxu1 %v170_v60  ;;  %386 = vmatmul.f32.gmra.mxu0 %v65_v61  ;;  %v169_v2 = vld [vmem:[%s8656_s0 + $0x2a0] sm:$0xff]  ;;  %v68_v3 = vld [vmem:[%s8657_s1 + $0x198] sm:$0x7f]  ;;  %vm825_vm0 = vcmask 400384  }
  0x42   :  { %444 = vmatmul.f32.gmra.mxu2 %v67_v62  ;;  %575 = vmatpush.msrb.mxu3 %v201_v63  ;;  %v66_v4 = vld [vmem:[%s8657_s1 + $0x188] sm:$0x7f]  ;;  %v183_v5 = vld [vmem:[%s8656_s0 + $0x310] sm:$0xff]  ;;  %v200_v6 = vld [vmem:[%s8656_s0 + $0x398] sm:$0xff]  ;;  %vm829_vm1 = vcmask 399360   ;;  %vm3110_vm2 = vcmask 130112  }
  0x43   :  { %547 = vmatpush.msrb.mxu2 %v184_v0  ;;  %489 = vmatpush.msrb.mxu0 %v152_v1  ;;  %v151_v7 = vld [vmem:[%s8656_s0 + $0x210] sm:$0xff]  ;;  %v168_v8 = vld [vmem:[%s8656_s0 + $0x298] sm:$0xff]  ;;  %v182_v9 = vld [vmem:[%s8656_s0 + $0x308] sm:$0xff]  ;;  %vm3114_vm3 = vcmask 195712   ;;  %vm3118_vm4 = vcmask 261312   ;;  %vm3141_vm5 = vcmask 1041409  }
  0x44   :  { %517 = vmatpush.msrb.mxu1 %v169_v2  ;;  %473 = vmatmul.f32.gmra.mxu3 %v68_v3  ;;  %v199_v10 = vld [vmem:[%s8656_s0 + $0x390] sm:$0xff]  ;;  %v150_v11 = vld [vmem:[%s8656_s0 + $0x208] sm:$0xff]  ;;  %v181_v14 = vld [vmem:[%s8656_s0 + $0x300] sm:$0xff]  ;;  %vm3143_vm6 = vcmask 1042434   ;;  %s3159_s13 = sshll.u32 %s8660_s4, 4  ;;  %vm3145_vm7 = vcmask 1043459   ;;  %s3160_s13 = int_to_ptr.hbm [resolvable:$true] %s3159_s13 }
  0x45   :  { %415 = vmatmul.f32.gmra.mxu1 %v66_v4  ;;  %548 = vmatpush.msrb.mxu2 %v183_v5  ;;  %v167_v12 = vld [vmem:[%s8656_s0 + $0x290] sm:$0xff]  ;;  %v198_v15 = vld [vmem:[%s8656_s0 + $0x388] sm:$0xff]  ;;  %v149_v16 = vld [vmem:[%s8656_s0 + $0x200] sm:$0xff]  ;;  %vm3148_vm8 = vcmask 248832  }
  0x46   :  { %576 = vmatpush.msrb.mxu3 %v200_v6  ;;  %490 = vmatpush.msrb.mxu0 %v151_v7  ;;  %v83_v13 = vld [vmem:[%s8658_s2 + $0x10] sm:$0xff]  ;;  %v166_v17 = vld [vmem:[%s8656_s0 + $0x288] sm:$0xff]  ;;  %v21_v18 = vld [vmem:[%s8657_s1 + $0x20] sm:$0xff] }
  0x47   :  { %518 = vmatpush.msrb.mxu1 %v168_v8  ;;  %3953 = vset.pattern.permute.xlu1 %v4172_v35  ;;  %v23_v19 = vld [vmem:[%s8657_s1 + $0x30] sm:$0xff]  ;;  %v197_v20 = vld [vmem:[%s8656_s0 + $0x380] sm:$0xff]  ;;  %v260_v21 = vld [vmem:[%s8656_s0 + $0x578] sm:$0xff] }
  0x48   :  { %549 = vmatpush.msrb.mxu2 %v182_v9  ;;  %577 = vmatpush.msrb.mxu3 %v199_v10  ;;  %v165_v22 = vld [vmem:[%s8656_s0 + $0x280] sm:$0xff]  ;;  %v228_v23 = vld [vmem:[%s8656_s0 + $0x478] sm:$0xff]  ;;  %v22_v24 = vld [vmem:[%s8657_s1 + $0x28] sm:$0xff] }
  0x49   :  { %491 = vmatpush.msrb.mxu0 %v150_v11  ;;  %519 = vmatpush.msrb.mxu1 %v167_v12  ;;  %v24_v25 = vld [vmem:[%s8657_s1 + $0x38] sm:$0xff]  ;;  %v259_v26 = vld [vmem:[%s8656_s0 + $0x570] sm:$0xff]  ;;  %v258_v30 = vld [vmem:[%s8656_s0 + $0x568] sm:$0xff] }
  0x4a   :  { %353 = vperm.xlu1 %3953, %v83_v13   ;;  %550 = vmatpush.msrb.mxu2 %v181_v14  ;;  %v276_v27 = vld [vmem:[%s8656_s0 + $0x5f8] sm:$0xff]  ;;  %v227_v28 = vld [vmem:[%s8656_s0 + $0x470] sm:$0xff]  ;;  %v226_v33 = vld [vmem:[%s8656_s0 + $0x468] sm:$0xff] }
  0x4b   :  { %578 = vmatpush.msrb.mxu3 %v198_v15  ;;  %492 = vmatpush.msrb.mxu0 %v149_v16  ;;  %v244_v29 = vld [vmem:[%s8656_s0 + $0x4f8] sm:$0xff]  ;;  %v275_v31 = vld [vmem:[%s8656_s0 + $0x5f0] sm:$0xff]  ;;  %v257_v35 = vld [vmem:[%s8656_s0 + $0x560] sm:$0xff] }
  0x4c   :  { %520 = vmatpush.msrb.mxu1 %v166_v17  ;;  %493 = vmatmul.f32.vlgmr.msrb.gmra.mxu0 %v21_v18  ;;  %v84_v32 = vld [vmem:[%s8658_s2 + $0x18] sm:$0x7f]  ;;  %v243_v34 = vld [vmem:[%s8656_s0 + $0x4f0] sm:$0xff]  ;;  %v274_v36 = vld [vmem:[%s8656_s0 + $0x5e8] sm:$0xff] }
  0x4d   :  { %551 = vmatmul.f32.vlgmr.msrb.gmra.mxu2 %v23_v19  ;;  %579 = vmatpush.msrb.mxu3 %v197_v20  ;;  %v225_v37 = vld [vmem:[%s8656_s0 + $0x460] sm:$0xff]  ;;  %v242_v38 = vld [vmem:[%s8656_s0 + $0x4e8] sm:$0xff]  ;;  %v39_v40 = vld [vmem:[%s8657_s1 + $0xb0] sm:$0xff] }
  0x4e   :  { %651 = vmatpush.msra.mxu2 %v260_v21  ;;  %521 = vmatpush.msrb.mxu1 %v165_v22  ;;  %v37_v39 = vld [vmem:[%s8657_s1 + $0xa0] sm:$0xff]  ;;  %v256_v41 = vld [vmem:[%s8656_s0 + $0x558] sm:$0xff]  ;;  %v38_v45 = vld [vmem:[%s8657_s1 + $0xa8] sm:$0xff] }
  0x4f   :  { %593 = vmatpush.msra.mxu0 %v228_v23  ;;  %522 = vmatmul.f32.vlgmr.msrb.gmra.mxu1 %v22_v24  ;;  %v273_v42 = vld [vmem:[%s8656_s0 + $0x5e0] sm:$0xff]  ;;  %v224_v43 = vld [vmem:[%s8656_s0 + $0x458] sm:$0xff]  ;;  %v255_v47 = vld [vmem:[%s8656_s0 + $0x550] sm:$0xff] }
  0x50   :  { %580 = vmatmul.f32.vlgmr.msrb.gmra.mxu3 %v24_v25  ;;  %652 = vmatpush.msra.mxu2 %v259_v26  ;;  %v241_v44 = vld [vmem:[%s8656_s0 + $0x4e0] sm:$0xff]  ;;  %v40_v46 = vld [vmem:[%s8657_s1 + $0xb8] sm:$0xff]  ;;  %v223_v49 = vld [vmem:[%s8656_s0 + $0x450] sm:$0xff] }
  0x51   :  { %680 = vmatpush.msra.mxu3 %v276_v27  ;;  %594 = vmatpush.msra.mxu0 %v227_v28  ;;  %v272_v48 = vld [vmem:[%s8656_s0 + $0x5d8] sm:$0xff]  ;;  %v254_v51 = vld [vmem:[%s8656_s0 + $0x548] sm:$0xff]  ;;  %v271_v52 = vld [vmem:[%s8656_s0 + $0x5d0] sm:$0xff] }
  0x52   :  { %622 = vmatpush.msra.mxu1 %v244_v29  ;;  %653 = vmatpush.msra.mxu2 %v258_v30  ;;  %v240_v50 = vld [vmem:[%s8656_s0 + $0x4d8] sm:$0xff]  ;;  %v222_v53 = vld [vmem:[%s8656_s0 + $0x448] sm:$0xff]  ;;  %v239_v54 = vld [vmem:[%s8656_s0 + $0x4d0] sm:$0xff] }
  0x53   :  { %681 = vmatpush.msra.mxu3 %v275_v31  ;;  %358 = vperm.xlu1 %3953, %v84_v32   ;;  %v253_v55 = vld [vmem:[%s8656_s0 + $0x540] sm:$0xff]  ;;  %v270_v56 = vld [vmem:[%s8656_s0 + $0x5c8] sm:$0xff]  ;;  %v55_v60 = vld [vmem:[%s8657_s1 + $0x130] sm:$0xff] }
  0x54   :  { %595 = vmatpush.msra.mxu0 %v226_v33  ;;  %623 = vmatpush.msra.mxu1 %v243_v34  ;;  %v221_v57 = vld [vmem:[%s8656_s0 + $0x440] sm:$0xff]  ;;  %v238_v58 = vld [vmem:[%s8656_s0 + $0x4c8] sm:$0xff]  ;;  %v252_v61 = vld [vmem:[%s8656_s0 + $0x538] sm:$0xff] }
  0x55   :  { %654 = vmatpush.msra.mxu2 %v257_v35  ;;  %682 = vmatpush.msra.mxu3 %v274_v36  ;;  %v53_v59 = vld [vmem:[%s8657_s1 + $0x120] sm:$0xff]  ;;  %v220_v63 = vld [vmem:[%s8656_s0 + $0x438] sm:$0xff]  ;;  %v54_v1 = vld [vmem:[%s8657_s1 + $0x128] sm:$0xff] }
  0x56   :  { %596 = vmatpush.msra.mxu0 %v225_v37  ;;  %624 = vmatpush.msra.mxu1 %v242_v38  ;;  %v269_v62 = vld [vmem:[%s8656_s0 + $0x5c0] sm:$0xff]  ;;  %v56_v2 = vld [vmem:[%s8657_s1 + $0x138] sm:$0xff]  ;;  %v251_v3 = vld [vmem:[%s8656_s0 + $0x530] sm:$0xff] }
  0x57   :  { %496 = vmatmul.f32.gmra.mxu0 %v37_v39  ;;  %554 = vmatmul.f32.gmra.mxu2 %v39_v40  ;;  %v237_v0 = vld [vmem:[%s8656_s0 + $0x4c0] sm:$0xff]  ;;  %v268_v4 = vld [vmem:[%s8656_s0 + $0x5b8] sm:$0xff]  ;;  %v219_v5 = vld [vmem:[%s8656_s0 + $0x430] sm:$0xff] }
  0x58   :  { %655 = vmatpush.msra.mxu2 %v256_v41  ;;  %683 = vmatpush.msra.mxu3 %v273_v42  ;;  %v236_v6 = vld [vmem:[%s8656_s0 + $0x4b8] sm:$0xff]  ;;  %v250_v7 = vld [vmem:[%s8656_s0 + $0x528] sm:$0xff]  ;;  %v267_v8 = vld [vmem:[%s8656_s0 + $0x5b0] sm:$0xff] }
  0x59   :  { %597 = vmatpush.msra.mxu0 %v224_v43  ;;  %625 = vmatpush.msra.mxu1 %v241_v44  ;;  %v218_v9 = vld [vmem:[%s8656_s0 + $0x428] sm:$0xff]  ;;  %v235_v10 = vld [vmem:[%s8656_s0 + $0x4b0] sm:$0xff]  ;;  %v249_v11 = vld [vmem:[%s8656_s0 + $0x520] sm:$0xff] }
  0x5a   :  { %525 = vmatmul.f32.gmra.mxu1 %v38_v45  ;;  %583 = vmatmul.f32.gmra.mxu3 %v40_v46  ;;  %v266_v12 = vld [vmem:[%s8656_s0 + $0x5a8] sm:$0xff]  ;;  %v217_v13 = vld [vmem:[%s8656_s0 + $0x420] sm:$0xff]  ;;  %v71_v16 = vld [vmem:[%s8657_s1 + $0x1b0] sm:$0x7f] }
  0x5b   :  { %656 = vmatpush.msra.mxu2 %v255_v47  ;;  %684 = vmatpush.msra.mxu3 %v272_v48  ;;  %v234_v14 = vld [vmem:[%s8656_s0 + $0x4a8] sm:$0xff]  ;;  %v69_v15 = vld [vmem:[%s8657_s1 + $0x1a0] sm:$0x7f]  ;;  %v248_v17 = vld [vmem:[%s8656_s0 + $0x518] sm:$0xff] }
  0x5c   :  { %598 = vmatpush.msra.mxu0 %v223_v49  ;;  %626 = vmatpush.msra.mxu1 %v240_v50  ;;  %v265_v18 = vld [vmem:[%s8656_s0 + $0x5a0] sm:$0xff]  ;;  %v216_v19 = vld [vmem:[%s8656_s0 + $0x418] sm:$0xff]  ;;  %v70_v21 = vld [vmem:[%s8657_s1 + $0x1a8] sm:$0x7f] }
  0x5d   :  { %657 = vmatpush.msra.mxu2 %v254_v51  ;;  %685 = vmatpush.msra.mxu3 %v271_v52  ;;  %v233_v20 = vld [vmem:[%s8656_s0 + $0x4a0] sm:$0xff]  ;;  %v72_v22 = vld [vmem:[%s8657_s1 + $0x1b8] sm:$0x7f]  ;;  %v247_v23 = vld [vmem:[%s8656_s0 + $0x510] sm:$0xff] }
  0x5e   :  { %599 = vmatpush.msra.mxu0 %v222_v53  ;;  %627 = vmatpush.msra.mxu1 %v239_v54  ;;  %v264_v24 = vld [vmem:[%s8656_s0 + $0x598] sm:$0xff]  ;;  %v215_v25 = vld [vmem:[%s8656_s0 + $0x410] sm:$0xff]  ;;  %v246_v27 = vld [vmem:[%s8656_s0 + $0x508] sm:$0xff] }
  0x5f   :  { %658 = vmatpush.msra.mxu2 %v253_v55  ;;  %686 = vmatpush.msra.mxu3 %v270_v56  ;;  %v232_v26 = vld [vmem:[%s8656_s0 + $0x498] sm:$0xff]  ;;  %v263_v28 = vld [vmem:[%s8656_s0 + $0x590] sm:$0xff]  ;;  %v214_v29 = vld [vmem:[%s8656_s0 + $0x408] sm:$0xff] }
  0x60   :  { %600 = vmatpush.msra.mxu0 %v221_v57  ;;  %628 = vmatpush.msra.mxu1 %v238_v58  ;;  %v231_v30 = vld [vmem:[%s8656_s0 + $0x490] sm:$0xff]  ;;  %v245_v31 = vld [vmem:[%s8656_s0 + $0x500] sm:$0xff]  ;;  %v262_v32 = vld [vmem:[%s8656_s0 + $0x588] sm:$0xff] }
  0x61   :  { %499 = vmatmul.f32.gmra.mxu0 %v53_v59  ;;  %557 = vmatmul.f32.gmra.mxu2 %v55_v60  ;;  %v213_v33 = vld [vmem:[%s8656_s0 + $0x400] sm:$0xff]  ;;  %v230_v34 = vld [vmem:[%s8656_s0 + $0x488] sm:$0xff]  ;;  %v27_v36 = vld [vmem:[%s8657_s1 + $0x50] sm:$0xff] }
  0x62   :  { %659 = vmatpush.msra.mxu2 %v252_v61  ;;  %687 = vmatpush.msra.mxu3 %v269_v62  ;;  %v25_v35 = vld [vmem:[%s8657_s1 + $0x40] sm:$0xff]  ;;  %v324_v38 = vld [vmem:[%s8656_s0 + $0x778] sm:$0xff]  ;;  %v26_v41 = vld [vmem:[%s8657_s1 + $0x48] sm:$0xff] }
  0x63   :  { %601 = vmatpush.msra.mxu0 %v220_v63  ;;  %629 = vmatpush.msra.mxu1 %v237_v0  ;;  %v261_v37 = vld [vmem:[%s8656_s0 + $0x580] sm:$0xff]  ;;  %v292_v40 = vld [vmem:[%s8656_s0 + $0x678] sm:$0xff]  ;;  %v323_v43 = vld [vmem:[%s8656_s0 + $0x770] sm:$0xff] }
  0x64   :  { %528 = vmatmul.f32.gmra.mxu1 %v54_v1  ;;  %586 = vmatmul.f32.gmra.mxu3 %v56_v2  ;;  %v229_v39 = vld [vmem:[%s8656_s0 + $0x480] sm:$0xff]  ;;  %v28_v42 = vld [vmem:[%s8657_s1 + $0x58] sm:$0xff]  ;;  %v291_v45 = vld [vmem:[%s8656_s0 + $0x670] sm:$0xff] }
  0x65   :  { %660 = vmatpush.msra.mxu2 %v251_v3  ;;  %688 = vmatpush.msra.mxu3 %v268_v4  ;;  %v340_v44 = vld [vmem:[%s8656_s0 + $0x7f8] sm:$0xff]  ;;  %v322_v47 = vld [vmem:[%s8656_s0 + $0x768] sm:$0xff]  ;;  %v339_v48 = vld [vmem:[%s8656_s0 + $0x7f0] sm:$0xff] }
  0x66   :  { %602 = vmatpush.msra.mxu0 %v219_v5  ;;  %630 = vmatpush.msra.mxu1 %v236_v6  ;;  %v308_v46 = vld [vmem:[%s8656_s0 + $0x6f8] sm:$0xff]  ;;  %v290_v49 = vld [vmem:[%s8656_s0 + $0x668] sm:$0xff]  ;;  %v307_v50 = vld [vmem:[%s8656_s0 + $0x6f0] sm:$0xff] }
  0x67   :  { %661 = vmatpush.msra.mxu2 %v250_v7  ;;  %689 = vmatpush.msra.mxu3 %v267_v8  ;;  %v321_v51 = vld [vmem:[%s8656_s0 + $0x760] sm:$0xff]  ;;  %v338_v52 = vld [vmem:[%s8656_s0 + $0x7e8] sm:$0xff]  ;;  %v43_v56 = vld [vmem:[%s8657_s1 + $0xd0] sm:$0xff] }
  0x68   :  { %603 = vmatpush.msra.mxu0 %v218_v9  ;;  %631 = vmatpush.msra.mxu1 %v235_v10  ;;  %v289_v53 = vld [vmem:[%s8656_s0 + $0x660] sm:$0xff]  ;;  %v306_v54 = vld [vmem:[%s8656_s0 + $0x6e8] sm:$0xff]  ;;  %v320_v57 = vld [vmem:[%s8656_s0 + $0x758] sm:$0xff] }
  0x69   :  { %662 = vmatpush.msra.mxu2 %v249_v11  ;;  %690 = vmatpush.msra.mxu3 %v266_v12  ;;  %v41_v55 = vld [vmem:[%s8657_s1 + $0xc0] sm:$0xff]  ;;  %v288_v59 = vld [vmem:[%s8656_s0 + $0x658] sm:$0xff]  ;;  %v42_v61 = vld [vmem:[%s8657_s1 + $0xc8] sm:$0xff] }
  0x6a   :  { %604 = vmatpush.msra.mxu0 %v217_v13  ;;  %632 = vmatpush.msra.mxu1 %v234_v14  ;;  %v337_v58 = vld [vmem:[%s8656_s0 + $0x7e0] sm:$0xff]  ;;  %v44_v62 = vld [vmem:[%s8657_s1 + $0xd8] sm:$0xff]  ;;  %v319_v63 = vld [vmem:[%s8656_s0 + $0x750] sm:$0xff] }
  0x6b   :  { %502 = vmatmul.f32.gmra.mxu0 %v69_v15  ;;  %560 = vmatmul.f32.gmra.mxu2 %v71_v16  ;;  %v305_v60 = vld [vmem:[%s8656_s0 + $0x6e0] sm:$0xff]  ;;  %v336_v0 = vld [vmem:[%s8656_s0 + $0x7d8] sm:$0xff]  ;;  %v287_v1 = vld [vmem:[%s8656_s0 + $0x650] sm:$0xff] }
  0x6c   :  { %663 = vmatpush.msra.mxu2 %v248_v17  ;;  %691 = vmatpush.msra.mxu3 %v265_v18  ;;  %v304_v2 = vld [vmem:[%s8656_s0 + $0x6d8] sm:$0xff]  ;;  %v318_v3 = vld [vmem:[%s8656_s0 + $0x748] sm:$0xff]  ;;  %v335_v4 = vld [vmem:[%s8656_s0 + $0x7d0] sm:$0xff] }
  0x6d   :  { %605 = vmatpush.msra.mxu0 %v216_v19  ;;  %633 = vmatpush.msra.mxu1 %v233_v20  ;;  %v286_v5 = vld [vmem:[%s8656_s0 + $0x648] sm:$0xff]  ;;  %v303_v6 = vld [vmem:[%s8656_s0 + $0x6d0] sm:$0xff]  ;;  %v317_v7 = vld [vmem:[%s8656_s0 + $0x740] sm:$0xff] }
  0x6e   :  { %531 = vmatmul.f32.gmra.mxu1 %v70_v21  ;;  %589 = vmatmul.f32.gmra.mxu3 %v72_v22  ;;  %v334_v8 = vld [vmem:[%s8656_s0 + $0x7c8] sm:$0xff]  ;;  %v285_v9 = vld [vmem:[%s8656_s0 + $0x640] sm:$0xff]  ;;  %v59_v12 = vld [vmem:[%s8657_s1 + $0x150] sm:$0xff] }
  0x6f   :  { %664 = vmatpush.msra.mxu2 %v247_v23  ;;  %692 = vmatpush.msra.mxu3 %v264_v24  ;;  %v302_v10 = vld [vmem:[%s8656_s0 + $0x6c8] sm:$0xff]  ;;  %v57_v11 = vld [vmem:[%s8657_s1 + $0x140] sm:$0xff]  ;;  %v316_v13 = vld [vmem:[%s8656_s0 + $0x738] sm:$0xff] }
  0x70   :  { %606 = vmatpush.msra.mxu0 %v215_v25  ;;  %634 = vmatpush.msra.mxu1 %v232_v26  ;;  %v333_v14 = vld [vmem:[%s8656_s0 + $0x7c0] sm:$0xff]  ;;  %v284_v15 = vld [vmem:[%s8656_s0 + $0x638] sm:$0xff]  ;;  %v58_v17 = vld [vmem:[%s8657_s1 + $0x148] sm:$0xff] }
  0x71   :  { %665 = vmatpush.msra.mxu2 %v246_v27  ;;  %693 = vmatpush.msra.mxu3 %v263_v28  ;;  %v301_v16 = vld [vmem:[%s8656_s0 + $0x6c0] sm:$0xff]  ;;  %v60_v18 = vld [vmem:[%s8657_s1 + $0x158] sm:$0xff]  ;;  %v315_v19 = vld [vmem:[%s8656_s0 + $0x730] sm:$0xff] }
  0x72   :  { %607 = vmatpush.msra.mxu0 %v214_v29  ;;  %635 = vmatpush.msra.mxu1 %v231_v30  ;;  %v332_v20 = vld [vmem:[%s8656_s0 + $0x7b8] sm:$0xff]  ;;  %v283_v21 = vld [vmem:[%s8656_s0 + $0x630] sm:$0xff]  ;;  %v314_v23 = vld [vmem:[%s8656_s0 + $0x728] sm:$0xff] }
  0x73   :  { %666 = vmatpush.msra.mxu2 %v245_v31  ;;  %694 = vmatpush.msra.mxu3 %v262_v32  ;;  %v300_v22 = vld [vmem:[%s8656_s0 + $0x6b8] sm:$0xff]  ;;  %v331_v24 = vld [vmem:[%s8656_s0 + $0x7b0] sm:$0xff]  ;;  %v282_v25 = vld [vmem:[%s8656_s0 + $0x628] sm:$0xff] }
  0x74   :  { %608 = vmatpush.msra.mxu0 %v213_v33  ;;  %636 = vmatpush.msra.mxu1 %v230_v34  ;;  %v299_v26 = vld [vmem:[%s8656_s0 + $0x6b0] sm:$0xff]  ;;  %v313_v27 = vld [vmem:[%s8656_s0 + $0x720] sm:$0xff]  ;;  %v330_v28 = vld [vmem:[%s8656_s0 + $0x7a8] sm:$0xff] }
  0x75   :  { %609 = vmatmul.f32.vlgmr.msra.gmra.mxu0 %v25_v35  ;;  %667 = vmatmul.f32.vlgmr.msra.gmra.mxu2 %v27_v36  ;;  %v281_v29 = vld [vmem:[%s8656_s0 + $0x620] sm:$0xff]  ;;  %v298_v30 = vld [vmem:[%s8656_s0 + $0x6a8] sm:$0xff]  ;;  %v75_v32 = vld [vmem:[%s8657_s1 + $0x1d0] sm:$0x7f] }
  0x76   :  { %695 = vmatpush.msra.mxu3 %v261_v37  ;;  %767 = vmatpush.msrb.mxu2 %v324_v38  ;;  %v73_v31 = vld [vmem:[%s8657_s1 + $0x1c0] sm:$0x7f]  ;;  %v312_v33 = vld [vmem:[%s8656_s0 + $0x718] sm:$0xff]  ;;  %v74_v37 = vld [vmem:[%s8657_s1 + $0x1c8] sm:$0x7f] }
  0x77   :  { %637 = vmatpush.msra.mxu1 %v229_v39  ;;  %709 = vmatpush.msrb.mxu0 %v292_v40  ;;  %v329_v34 = vld [vmem:[%s8656_s0 + $0x7a0] sm:$0xff]  ;;  %v280_v35 = vld [vmem:[%s8656_s0 + $0x618] sm:$0xff]  ;;  %v311_v39 = vld [vmem:[%s8656_s0 + $0x710] sm:$0xff] }
  0x78   :  { %638 = vmatmul.f32.vlgmr.msra.gmra.mxu1 %v26_v41  ;;  %696 = vmatmul.f32.vlgmr.msra.gmra.mxu3 %v28_v42  ;;  %v297_v36 = vld [vmem:[%s8656_s0 + $0x6a0] sm:$0xff]  ;;  %v76_v38 = vld [vmem:[%s8657_s1 + $0x1d8] sm:$0x7f]  ;;  %v279_v41 = vld [vmem:[%s8656_s0 + $0x610] sm:$0xff] }
  0x79   :  { %768 = vmatpush.msrb.mxu2 %v323_v43  ;;  %796 = vmatpush.msrb.mxu3 %v340_v44  ;;  %v328_v40 = vld [vmem:[%s8656_s0 + $0x798] sm:$0xff]  ;;  %v310_v43 = vld [vmem:[%s8656_s0 + $0x708] sm:$0xff]  ;;  %v327_v44 = vld [vmem:[%s8656_s0 + $0x790] sm:$0xff] }
  0x7a   :  { %710 = vmatpush.msrb.mxu0 %v291_v45  ;;  %738 = vmatpush.msrb.mxu1 %v308_v46  ;;  %v296_v42 = vld [vmem:[%s8656_s0 + $0x698] sm:$0xff]  ;;  %v278_v45 = vld [vmem:[%s8656_s0 + $0x608] sm:$0xff]  ;;  %v295_v46 = vld [vmem:[%s8656_s0 + $0x690] sm:$0xff] }
  0x7b   :  { %769 = vmatpush.msrb.mxu2 %v322_v47  ;;  %797 = vmatpush.msrb.mxu3 %v339_v48  ;;  %v309_v47 = vld [vmem:[%s8656_s0 + $0x700] sm:$0xff]  ;;  %v326_v48 = vld [vmem:[%s8656_s0 + $0x788] sm:$0xff] }
  0x7c   :  { %711 = vmatpush.msrb.mxu0 %v290_v49  ;;  %739 = vmatpush.msrb.mxu1 %v307_v50  ;;  %v277_v49 = vld [vmem:[%s8656_s0 + $0x600] sm:$0xff]  ;;  %v294_v50 = vld [vmem:[%s8656_s0 + $0x688] sm:$0xff] }
  0x7d   :  { %770 = vmatpush.msrb.mxu2 %v321_v51  ;;  %798 = vmatpush.msrb.mxu3 %v338_v52  ;;  %v29_v51 = vld [vmem:[%s8657_s1 + $0x60] sm:$0xff]  ;;  %v31_v52 = vld [vmem:[%s8657_s1 + $0x70] sm:$0xff] }
  0x7e   :  { %712 = vmatpush.msrb.mxu0 %v289_v53  ;;  %740 = vmatpush.msrb.mxu1 %v306_v54  ;;  %v325_v53 = vld [vmem:[%s8656_s0 + $0x780] sm:$0xff]  ;;  %v3217_v54 = vld [vmem:[%s8656_s0 + $0x978] sm:$0xff] }
  0x7f   :  { %612 = vmatmul.f32.gmra.mxu0 %v41_v55  ;;  %670 = vmatmul.f32.gmra.mxu2 %v43_v56  ;;  %v293_v55 = vld [vmem:[%s8656_s0 + $0x680] sm:$0xff]  ;;  %v3185_v56 = vld [vmem:[%s8656_s0 + $0x878] sm:$0xff] }
  0x80   :  { %771 = vmatpush.msrb.mxu2 %v320_v57  ;;  %799 = vmatpush.msrb.mxu3 %v337_v58  ;;  %v30_v57 = vld [vmem:[%s8657_s1 + $0x68] sm:$0xff]  ;;  %v32_v58 = vld [vmem:[%s8657_s1 + $0x78] sm:$0xff] }
  0x81   :  { %713 = vmatpush.msrb.mxu0 %v288_v59  ;;  %741 = vmatpush.msrb.mxu1 %v305_v60  ;;  %v3216_v59 = vld [vmem:[%s8656_s0 + $0x970] sm:$0xff]  ;;  %v3233_v60 = vld [vmem:[%s8656_s0 + $0x9f8] sm:$0xff] }
  0x82   :  { %641 = vmatmul.f32.gmra.mxu1 %v42_v61  ;;  %699 = vmatmul.f32.gmra.mxu3 %v44_v62  ;;  %v3184_v61 = vld [vmem:[%s8656_s0 + $0x870] sm:$0xff]  ;;  %v3201_v62 = vld [vmem:[%s8656_s0 + $0x8f8] sm:$0xff] }
  0x83   :  { %772 = vmatpush.msrb.mxu2 %v319_v63  ;;  %800 = vmatpush.msrb.mxu3 %v336_v0  ;;  %v3215_v63 = vld [vmem:[%s8656_s0 + $0x968] sm:$0xff]  ;;  %v3232_v0 = vld [vmem:[%s8656_s0 + $0x9f0] sm:$0xff] }
  0x84   :  { %714 = vmatpush.msrb.mxu0 %v287_v1  ;;  %742 = vmatpush.msrb.mxu1 %v304_v2  ;;  %v3183_v1 = vld [vmem:[%s8656_s0 + $0x868] sm:$0xff]  ;;  %v3200_v2 = vld [vmem:[%s8656_s0 + $0x8f0] sm:$0xff] }
  0x85   :  { %773 = vmatpush.msrb.mxu2 %v318_v3  ;;  %801 = vmatpush.msrb.mxu3 %v335_v4  ;;  %v3214_v3 = vld [vmem:[%s8656_s0 + $0x960] sm:$0xff]  ;;  %v3231_v4 = vld [vmem:[%s8656_s0 + $0x9e8] sm:$0xff] }
  0x86   :  { %715 = vmatpush.msrb.mxu0 %v286_v5  ;;  %743 = vmatpush.msrb.mxu1 %v303_v6  ;;  %v3182_v6 = vld [vmem:[%s8656_s0 + $0x860] sm:$0xff] }
  0x87   :  { %774 = vmatpush.msrb.mxu2 %v317_v7  ;;  %802 = vmatpush.msrb.mxu3 %v334_v8  ;;  %v3199_v7 = vld [vmem:[%s8656_s0 + $0x8e8] sm:$0xff]  ;;  %v45_v8 = vld [vmem:[%s8657_s1 + $0xe0] sm:$0xff] }
  0x88   :  { %716 = vmatpush.msrb.mxu0 %v285_v9  ;;  %744 = vmatpush.msrb.mxu1 %v302_v10  ;;  %v47_v9 = vld [vmem:[%s8657_s1 + $0xf0] sm:$0xff]  ;;  %v3213_v10 = vld [vmem:[%s8656_s0 + $0x958] sm:$0xff] }
  0x89   :  { %615 = vmatmul.f32.gmra.mxu0 %v57_v11  ;;  %673 = vmatmul.f32.gmra.mxu2 %v59_v12  ;;  %v3230_v11 = vld [vmem:[%s8656_s0 + $0x9e0] sm:$0xff] }
  0x8a   :  { %775 = vmatpush.msrb.mxu2 %v316_v13  ;;  %803 = vmatpush.msrb.mxu3 %v333_v14  ;;  %v3181_v13 = vld [vmem:[%s8656_s0 + $0x858] sm:$0xff]  ;;  %v3198_v14 = vld [vmem:[%s8656_s0 + $0x8e0] sm:$0xff] }
  0x8b   :  { %717 = vmatpush.msrb.mxu0 %v284_v15  ;;  %745 = vmatpush.msrb.mxu1 %v301_v16  ;;  %v46_v15 = vld [vmem:[%s8657_s1 + $0xe8] sm:$0xff]  ;;  %v48_v16 = vld [vmem:[%s8657_s1 + $0xf8] sm:$0xff] }
  0x8c   :  { %644 = vmatmul.f32.gmra.mxu1 %v58_v17  ;;  %702 = vmatmul.f32.gmra.mxu3 %v60_v18  ;;  %v3212_v17 = vld [vmem:[%s8656_s0 + $0x950] sm:$0xff]  ;;  %v3229_v18 = vld [vmem:[%s8656_s0 + $0x9d8] sm:$0xff] }
  0x8d   :  { %776 = vmatpush.msrb.mxu2 %v315_v19  ;;  %804 = vmatpush.msrb.mxu3 %v332_v20  ;;  %v3180_v19 = vld [vmem:[%s8656_s0 + $0x850] sm:$0xff]  ;;  %v3197_v20 = vld [vmem:[%s8656_s0 + $0x8d8] sm:$0xff] }
  0x8e   :  { %718 = vmatpush.msrb.mxu0 %v283_v21  ;;  %746 = vmatpush.msrb.mxu1 %v300_v22  ;;  %v3211_v22 = vld [vmem:[%s8656_s0 + $0x948] sm:$0xff] }
  0x8f   :  { %777 = vmatpush.msrb.mxu2 %v314_v23  ;;  %805 = vmatpush.msrb.mxu3 %v331_v24  ;;  %v3228_v23 = vld [vmem:[%s8656_s0 + $0x9d0] sm:$0xff]  ;;  %v3179_v24 = vld [vmem:[%s8656_s0 + $0x848] sm:$0xff] }
  0x90   :  { %719 = vmatpush.msrb.mxu0 %v282_v25  ;;  %747 = vmatpush.msrb.mxu1 %v299_v26  ;;  %v3196_v25 = vld [vmem:[%s8656_s0 + $0x8d0] sm:$0xff] }
  0x91   :  { %778 = vmatpush.msrb.mxu2 %v313_v27  ;;  %806 = vmatpush.msrb.mxu3 %v330_v28  ;;  %v3210_v27 = vld [vmem:[%s8656_s0 + $0x940] sm:$0xff]  ;;  %v3227_v28 = vld [vmem:[%s8656_s0 + $0x9c8] sm:$0xff] }
  0x92   :  { %720 = vmatpush.msrb.mxu0 %v281_v29  ;;  %748 = vmatpush.msrb.mxu1 %v298_v30  ;;  %v3178_v30 = vld [vmem:[%s8656_s0 + $0x840] sm:$0xff] }
  0x93   :  { %618 = vmatmul.f32.gmra.mxu0 %v73_v31  ;;  %676 = vmatmul.f32.gmra.mxu2 %v75_v32  ;;  %v3195_v31 = vld [vmem:[%s8656_s0 + $0x8c8] sm:$0xff]  ;;  %v61_v32 = vld [vmem:[%s8657_s1 + $0x160] sm:$0xff] }
  0x94   :  { %779 = vmatpush.msrb.mxu2 %v312_v33  ;;  %807 = vmatpush.msrb.mxu3 %v329_v34  ;;  %v63_v33 = vld [vmem:[%s8657_s1 + $0x170] sm:$0xff]  ;;  %v3209_v34 = vld [vmem:[%s8656_s0 + $0x938] sm:$0xff] }
  0x95   :  { %721 = vmatpush.msrb.mxu0 %v280_v35  ;;  %749 = vmatpush.msrb.mxu1 %v297_v36  ;;  %v3226_v35 = vld [vmem:[%s8656_s0 + $0x9c0] sm:$0xff] }
  0x96   :  { %647 = vmatmul.f32.gmra.mxu1 %v74_v37  ;;  %705 = vmatmul.f32.gmra.mxu3 %v76_v38  ;;  %v3177_v37 = vld [vmem:[%s8656_s0 + $0x838] sm:$0xff]  ;;  %v3194_v38 = vld [vmem:[%s8656_s0 + $0x8c0] sm:$0xff] }
  0x97   :  { %780 = vmatpush.msrb.mxu2 %v311_v39  ;;  %808 = vmatpush.msrb.mxu3 %v328_v40  ;;  %v62_v39 = vld [vmem:[%s8657_s1 + $0x168] sm:$0xff]  ;;  %v64_v40 = vld [vmem:[%s8657_s1 + $0x178] sm:$0xff] }
  0x98   :  { %722 = vmatpush.msrb.mxu0 %v279_v41  ;;  %750 = vmatpush.msrb.mxu1 %v296_v42  ;;  %v3208_v41 = vld [vmem:[%s8656_s0 + $0x930] sm:$0xff]  ;;  %v3225_v42 = vld [vmem:[%s8656_s0 + $0x9b8] sm:$0xff] }
  0x99   :  { %781 = vmatpush.msrb.mxu2 %v310_v43  ;;  %809 = vmatpush.msrb.mxu3 %v327_v44  ;;  %v3176_v43 = vld [vmem:[%s8656_s0 + $0x830] sm:$0xff]  ;;  %v3193_v44 = vld [vmem:[%s8656_s0 + $0x8b8] sm:$0xff] }
  0x9a   :  { %723 = vmatpush.msrb.mxu0 %v278_v45  ;;  %751 = vmatpush.msrb.mxu1 %v295_v46  ;;  %v3207_v46 = vld [vmem:[%s8656_s0 + $0x928] sm:$0xff] }
  0x9b   :  { %782 = vmatpush.msrb.mxu2 %v309_v47  ;;  %810 = vmatpush.msrb.mxu3 %v326_v48  ;;  %v3224_v47 = vld [vmem:[%s8656_s0 + $0x9b0] sm:$0xff]  ;;  %v3175_v48 = vld [vmem:[%s8656_s0 + $0x828] sm:$0xff] }
  0x9c   :  { %724 = vmatpush.msrb.mxu0 %v277_v49  ;;  %752 = vmatpush.msrb.mxu1 %v294_v50  ;;  %v3192_v49 = vld [vmem:[%s8656_s0 + $0x8b0] sm:$0xff] }
  0x9d   :  { %725 = vmatmul.f32.vlgmr.msrb.gmra.mxu0 %v29_v51  ;;  %783 = vmatmul.f32.vlgmr.msrb.gmra.mxu2 %v31_v52  ;;  %v3206_v51 = vld [vmem:[%s8656_s0 + $0x920] sm:$0xff]  ;;  %v3223_v52 = vld [vmem:[%s8656_s0 + $0x9a8] sm:$0xff] }
  0x9e   :  { %811 = vmatpush.msrb.mxu3 %v325_v53  ;;  %1146 = vmatpush.msra.mxu2 %v3217_v54  ;;  %v3174_v54 = vld [vmem:[%s8656_s0 + $0x820] sm:$0xff] }
  0x9f   :  { %753 = vmatpush.msrb.mxu1 %v293_v55  ;;  %1088 = vmatpush.msra.mxu0 %v3185_v56  ;;  %v5173_v5 = vpop.f32.mrf.mxu0  ;;  %v3191_v55 = vld [vmem:[%s8656_s0 + $0x8a8] sm:$0xff]  ;;  %v77_v56 = vld [vmem:[%s8657_s1 + $0x1e0] sm:$0x7f] }
  0xa0   :  { %754 = vmatmul.f32.vlgmr.msrb.gmra.mxu1 %v30_v57  ;;  %812 = vmatmul.f32.vlgmr.msrb.gmra.mxu3 %v32_v58  ;;  %v79_v57 = vld [vmem:[%s8657_s1 + $0x1f0] sm:$0x7f]  ;;  %v3205_v58 = vld [vmem:[%s8656_s0 + $0x918] sm:$0xff] }
  0xa1   :  { %1147 = vmatpush.msra.mxu2 %v3216_v59  ;;  %1175 = vmatpush.msra.mxu3 %v3233_v60  ;;  %v3222_v59 = vld [vmem:[%s8656_s0 + $0x9a0] sm:$0xff] }
  0xa2   :  { %1089 = vmatpush.msra.mxu0 %v3184_v61  ;;  %1117 = vmatpush.msra.mxu1 %v3201_v62  ;;  %v5193_v12 = vpop.f32.mrf.mxu1  ;;  %v3173_v61 = vld [vmem:[%s8656_s0 + $0x818] sm:$0xff]  ;;  %v3190_v62 = vld [vmem:[%s8656_s0 + $0x8a0] sm:$0xff] }
  0xa3   :  { %1148 = vmatpush.msra.mxu2 %v3215_v63  ;;  %1176 = vmatpush.msra.mxu3 %v3232_v0  ;;  %v78_v63 = vld [vmem:[%s8657_s1 + $0x1e8] sm:$0x7f]  ;;  %v80_v0 = vld [vmem:[%s8657_s1 + $0x1f8] sm:$0x7f] }
  0xa4   :  { %1090 = vmatpush.msra.mxu0 %v3183_v1  ;;  %1118 = vmatpush.msra.mxu1 %v3200_v2  ;;  %v3204_v1 = vld [vmem:[%s8656_s0 + $0x910] sm:$0xff]  ;;  %v3221_v2 = vld [vmem:[%s8656_s0 + $0x998] sm:$0xff] }
  0xa5   :  { %1149 = vmatpush.msra.mxu2 %v3214_v3  ;;  %1177 = vmatpush.msra.mxu3 %v3231_v4  ;;  %v5219_v21 = vpop.f32.mrf.mxu2  ;;  %v3172_v3 = vld [vmem:[%s8656_s0 + $0x810] sm:$0xff]  ;;  %v3189_v4 = vld [vmem:[%s8656_s0 + $0x898] sm:$0xff] }
  0xa6   :  { %1091 = vmatpush.msra.mxu0 %v3182_v6  ;;  %1119 = vmatpush.msra.mxu1 %v3199_v7  ;;  %v3203_v7 = vld [vmem:[%s8656_s0 + $0x908] sm:$0xff] }
  0xa7   :  { %728 = vmatmul.f32.gmra.mxu0 %v45_v8  ;;  %786 = vmatmul.f32.gmra.mxu2 %v47_v9  ;;  %v3220_v8 = vld [vmem:[%s8656_s0 + $0x990] sm:$0xff]  ;;  %v3171_v9 = vld [vmem:[%s8656_s0 + $0x808] sm:$0xff] }
  0xa8   :  { %1150 = vmatpush.msra.mxu2 %v3213_v10  ;;  %1178 = vmatpush.msra.mxu3 %v3230_v11  ;;  %v5233_v26 = vpop.f32.mrf.mxu3  ;;  %v3188_v10 = vld [vmem:[%s8656_s0 + $0x890] sm:$0xff] }
  0xa9   :  { %1092 = vmatpush.msra.mxu0 %v3181_v13  ;;  %1120 = vmatpush.msra.mxu1 %v3198_v14  ;;  %v5241_v29 = vpop.f32.mrf.mxu0  ;;  %v3202_v13 = vld [vmem:[%s8656_s0 + $0x900] sm:$0xff]  ;;  %v3219_v14 = vld [vmem:[%s8656_s0 + $0x988] sm:$0xff] }
  0xaa   :  { %757 = vmatmul.f32.gmra.mxu1 %v46_v15  ;;  %815 = vmatmul.f32.gmra.mxu3 %v48_v16  ;;  %v3170_v16 = vld [vmem:[%s8656_s0 + $0x800] sm:$0xff] }
  0xab   :  { %1151 = vmatpush.msra.mxu2 %v3212_v17  ;;  %1179 = vmatpush.msra.mxu3 %v3229_v18  ;;  %v3187_v17 = vld [vmem:[%s8656_s0 + $0x888] sm:$0xff]  ;;  %v3218_v18 = vld [vmem:[%s8656_s0 + $0x980] sm:$0xff] }
  0xac   :  { %1093 = vmatpush.msra.mxu0 %v3180_v19  ;;  %1121 = vmatpush.msra.mxu1 %v3197_v20  ;;  %v5261_v36 = vpop.f32.mrf.mxu1  ;;  %v3281_v19 = vld [vmem:[%s8656_s0 + $0xb78] sm:$0xff] }
  0xad   :  { %1152 = vmatpush.msra.mxu2 %v3211_v22  ;;  %1180 = vmatpush.msra.mxu3 %v3228_v23  ;;  %v3186_v22 = vld [vmem:[%s8656_s0 + $0x880] sm:$0xff]  ;;  %v3249_v23 = vld [vmem:[%s8656_s0 + $0xa78] sm:$0xff] }
  0xae   :  { %1094 = vmatpush.msra.mxu0 %v3179_v24  ;;  %1122 = vmatpush.msra.mxu1 %v3196_v25  ;;  %v3954_v24 = vld [vmem:[%s8657_s1] sm:$0xff]  ;;  %v3955_v25 = vld [vmem:[%s8657_s1 + $0x10] sm:$0xff] }
  0xaf   :  { %1153 = vmatpush.msra.mxu2 %v3210_v27  ;;  %1181 = vmatpush.msra.mxu3 %v3227_v28  ;;  %v5287_v45 = vpop.f32.mrf.mxu2  ;;  %v3280_v27 = vld [vmem:[%s8656_s0 + $0xb70] sm:$0xff]  ;;  %v3297_v28 = vld [vmem:[%s8656_s0 + $0xbf8] sm:$0xff] }
  0xb0   :  { %1095 = vmatpush.msra.mxu0 %v3178_v30  ;;  %1123 = vmatpush.msra.mxu1 %v3195_v31  ;;  %v3248_v30 = vld [vmem:[%s8656_s0 + $0xa70] sm:$0xff]  ;;  %v3265_v31 = vld [vmem:[%s8656_s0 + $0xaf8] sm:$0xff] }
  0xb1   :  { %731 = vmatmul.f32.gmra.mxu0 %v61_v32  ;;  %789 = vmatmul.f32.gmra.mxu2 %v63_v33  ;;  %v3956_v33 = vld [vmem:[%s8657_s1 + $0x8] sm:$0xff] }
  0xb2   :  { %1154 = vmatpush.msra.mxu2 %v3209_v34  ;;  %1182 = vmatpush.msra.mxu3 %v3226_v35  ;;  %v5301_v50 = vpop.f32.mrf.mxu3  ;;  %v3957_v34 = vld [vmem:[%s8657_s1 + $0x18] sm:$0xff]  ;;  %v3279_v35 = vld [vmem:[%s8656_s0 + $0xb68] sm:$0xff] }
  0xb3   :  { %1096 = vmatpush.msra.mxu0 %v3177_v37  ;;  %1124 = vmatpush.msra.mxu1 %v3194_v38  ;;  %v3296_v37 = vld [vmem:[%s8656_s0 + $0xbf0] sm:$0xff]  ;;  %v3247_v38 = vld [vmem:[%s8656_s0 + $0xa68] sm:$0xff] }
  0xb4   :  { %760 = vmatmul.f32.gmra.mxu1 %v62_v39  ;;  %818 = vmatmul.f32.gmra.mxu3 %v64_v40  ;;  %v5309_v53 = vpop.f32.mrf.mxu0  ;;  %v3264_v39 = vld [vmem:[%s8656_s0 + $0xaf0] sm:$0xff] }
  0xb5   :  { %1155 = vmatpush.msra.mxu2 %v3208_v41  ;;  %1183 = vmatpush.msra.mxu3 %v3225_v42  ;;  %v3278_v41 = vld [vmem:[%s8656_s0 + $0xb60] sm:$0xff]  ;;  %v3295_v42 = vld [vmem:[%s8656_s0 + $0xbe8] sm:$0xff] }
  0xb6   :  { %1097 = vmatpush.msra.mxu0 %v3176_v43  ;;  %1125 = vmatpush.msra.mxu1 %v3193_v44  ;;  %v3246_v44 = vld [vmem:[%s8656_s0 + $0xa60] sm:$0xff] }
  0xb7   :  { %1156 = vmatpush.msra.mxu2 %v3207_v46  ;;  %1184 = vmatpush.msra.mxu3 %v3224_v47  ;;  %v5329_v60 = vpop.f32.mrf.mxu1  ;;  %v3263_v46 = vld [vmem:[%s8656_s0 + $0xae8] sm:$0xff]  ;;  %v3277_v47 = vld [vmem:[%s8656_s0 + $0xb58] sm:$0xff] }
  0xb8   :  { %1098 = vmatpush.msra.mxu0 %v3175_v48  ;;  %1126 = vmatpush.msra.mxu1 %v3192_v49  ;;  %v3294_v48 = vld [vmem:[%s8656_s0 + $0xbe0] sm:$0xff] }
  0xb9   :  { %1157 = vmatpush.msra.mxu2 %v3206_v51  ;;  %1185 = vmatpush.msra.mxu3 %v3223_v52  ;;  %v3245_v51 = vld [vmem:[%s8656_s0 + $0xa58] sm:$0xff]  ;;  %v3262_v52 = vld [vmem:[%s8656_s0 + $0xae0] sm:$0xff] }
  0xba   :  { %1099 = vmatpush.msra.mxu0 %v3174_v54  ;;  %1127 = vmatpush.msra.mxu1 %v3191_v55  ;;  %v5355_v6 = vpop.f32.mrf.mxu2  ;;  %v3958_v54 = vld [vmem:[%s8657_s1 + $0x80] sm:$0xff]  ;;  %v3959_v55 = vld [vmem:[%s8657_s1 + $0x90] sm:$0xff] }
  0xbb   :  { %734 = vmatmul.f32.gmra.mxu0 %v77_v56  ;;  %792 = vmatmul.f32.gmra.mxu2 %v79_v57  ;;  %v3276_v56 = vld [vmem:[%s8656_s0 + $0xb50] sm:$0xff]  ;;  %v3293_v57 = vld [vmem:[%s8656_s0 + $0xbd8] sm:$0xff] }
  0xbc   :  { %1158 = vmatpush.msra.mxu2 %v3205_v58  ;;  %1186 = vmatpush.msra.mxu3 %v3222_v59  ;;  %v3244_v58 = vld [vmem:[%s8656_s0 + $0xa50] sm:$0xff]  ;;  %v3261_v59 = vld [vmem:[%s8656_s0 + $0xad8] sm:$0xff] }
  0xbd   :  { %1100 = vmatpush.msra.mxu0 %v3173_v61  ;;  %1128 = vmatpush.msra.mxu1 %v3190_v62  ;;  %v5369_v11 = vpop.f32.mrf.mxu3  ;;  %v3960_v62 = vld [vmem:[%s8657_s1 + $0x88] sm:$0xff] }
  0xbe   :  { %763 = vmatmul.f32.gmra.mxu1 %v78_v63  ;;  %821 = vmatmul.f32.gmra.mxu3 %v80_v0  ;;  %v5377_v15 = vpop.f32.mrf.mxu0  ;;  %v3961_v63 = vld [vmem:[%s8657_s1 + $0x98] sm:$0xff]  ;;  %v3275_v0 = vld [vmem:[%s8656_s0 + $0xb48] sm:$0xff] }
  0xbf   :  { %1159 = vmatpush.msra.mxu2 %v3204_v1  ;;  %1187 = vmatpush.msra.mxu3 %v3221_v2  ;;  %v3292_v1 = vld [vmem:[%s8656_s0 + $0xbd0] sm:$0xff]  ;;  %v3243_v2 = vld [vmem:[%s8656_s0 + $0xa48] sm:$0xff] }
  0xc0   :  { %1101 = vmatpush.msra.mxu0 %v3172_v3  ;;  %1129 = vmatpush.msra.mxu1 %v3189_v4  ;;  %v3260_v3 = vld [vmem:[%s8656_s0 + $0xad0] sm:$0xff] }
  0xc1   :  { %1160 = vmatpush.msra.mxu2 %v3203_v7  ;;  %1188 = vmatpush.msra.mxu3 %v3220_v8  ;;  %v3274_v7 = vld [vmem:[%s8656_s0 + $0xb40] sm:$0xff]  ;;  %v3291_v8 = vld [vmem:[%s8656_s0 + $0xbc8] sm:$0xff] }
  0xc2   :  { %1102 = vmatpush.msra.mxu0 %v3171_v9  ;;  %1130 = vmatpush.msra.mxu1 %v3188_v10  ;;  %v5391_v20 = vpop.f32.mrf.mxu1  ;;  %v3242_v10 = vld [vmem:[%s8656_s0 + $0xa40] sm:$0xff] }
  0xc3   :  { %1161 = vmatpush.msra.mxu2 %v3202_v13  ;;  %1189 = vmatpush.msra.mxu3 %v3219_v14  ;;  %v3259_v13 = vld [vmem:[%s8656_s0 + $0xac8] sm:$0xff]  ;;  %v3273_v14 = vld [vmem:[%s8656_s0 + $0xb38] sm:$0xff] }
  0xc4   :  { %1103 = vmatpush.msra.mxu0 %v3170_v16  ;;  %1131 = vmatpush.msra.mxu1 %v3187_v17  ;;  %v3290_v16 = vld [vmem:[%s8656_s0 + $0xbc0] sm:$0xff] }
  0xc5   :  { %1104 = vmatmul.f32.vlgmr.msra.gmra.mxu0 %v3954_v24  ;;  %1162 = vmatmul.f32.vlgmr.msra.gmra.mxu2 %v3955_v25  ;;  %v5417_v32 = vpop.f32.mrf.mxu2  ;;  %v3272_v24 = vld [vmem:[%s8656_s0 + $0xb30] sm:$0xff]  ;;  %v3289_v25 = vld [vmem:[%s8656_s0 + $0xbb8] sm:$0xff] }
  0xc6   :  { %1190 = vmatpush.msra.mxu3 %v3218_v18  ;;  %1262 = vmatpush.msrb.mxu2 %v3281_v19  ;;  %v3241_v18 = vld [vmem:[%s8656_s0 + $0xa38] sm:$0xff]  ;;  %v3258_v19 = vld [vmem:[%s8656_s0 + $0xac0] sm:$0xff] }
  0xc7   :  { %1132 = vmatpush.msra.mxu1 %v3186_v22  ;;  %1204 = vmatpush.msrb.mxu0 %v3249_v23  ;;  %v5437_v40 = vpop.f32.mrf.mxu3  ;;  %v3962_v22 = vld [vmem:[%s8657_s1 + $0x100] sm:$0xff]  ;;  %v3963_v23 = vld [vmem:[%s8657_s1 + $0x110] sm:$0xff] }
  0xc8   :  { %1133 = vmatmul.f32.vlgmr.msra.gmra.mxu1 %v3956_v33  ;;  %1191 = vmatmul.f32.vlgmr.msra.gmra.mxu3 %v3957_v34  ;;  %v3965_v33 = vld [vmem:[%s8657_s1 + $0x118] sm:$0xff]  ;;  %v3271_v34 = vld [vmem:[%s8656_s0 + $0xb28] sm:$0xff] }
  0xc9   :  { %1263 = vmatpush.msrb.mxu2 %v3280_v27  ;;  %1291 = vmatpush.msrb.mxu3 %v3297_v28  ;;  %v5445_v43 = vpop.f32.mrf.mxu0  ;;  %v3240_v27 = vld [vmem:[%s8656_s0 + $0xa30] sm:$0xff]  ;;  %v3257_v28 = vld [vmem:[%s8656_s0 + $0xab8] sm:$0xff] }
  0xca   :  { %1205 = vmatpush.msrb.mxu0 %v3248_v30  ;;  %1233 = vmatpush.msrb.mxu1 %v3265_v31  ;;  %v3964_v31 = vld [vmem:[%s8657_s1 + $0x108] sm:$0xff] }
  0xcb   :  { %1264 = vmatpush.msrb.mxu2 %v3279_v35  ;;  %1292 = vmatpush.msrb.mxu3 %v3296_v37  ;;  %v3288_v35 = vld [vmem:[%s8656_s0 + $0xbb0] sm:$0xff]  ;;  %v3239_v37 = vld [vmem:[%s8656_s0 + $0xa28] sm:$0xff] }
  0xcc   :  { %1206 = vmatpush.msrb.mxu0 %v3247_v38  ;;  %1234 = vmatpush.msrb.mxu1 %v3264_v39  ;;  %v5459_v49 = vpop.f32.mrf.mxu1  ;;  %v3256_v38 = vld [vmem:[%s8656_s0 + $0xab0] sm:$0xff] }
  0xcd   :  { %1265 = vmatpush.msrb.mxu2 %v3278_v41  ;;  %1293 = vmatpush.msrb.mxu3 %v3295_v42  ;;  %v3270_v41 = vld [vmem:[%s8656_s0 + $0xb20] sm:$0xff]  ;;  %v3287_v42 = vld [vmem:[%s8656_s0 + $0xba8] sm:$0xff] }
  0xce   :  { %1207 = vmatpush.msrb.mxu0 %v3246_v44  ;;  %1235 = vmatpush.msrb.mxu1 %v3263_v46  ;;  %v3238_v46 = vld [vmem:[%s8656_s0 + $0xa20] sm:$0xff] }
  0xcf   :  { %1107 = vmatmul.f32.gmra.mxu0 %v3958_v54  ;;  %1165 = vmatmul.f32.gmra.mxu2 %v3959_v55  ;;  %v3237_v54 = vld [vmem:[%s8656_s0 + $0xa18] sm:$0xff]  ;;  %v3254_v55 = vld [vmem:[%s8656_s0 + $0xaa0] sm:$0xff] }
  0xd0   :  { %1266 = vmatpush.msrb.mxu2 %v3277_v47  ;;  %1294 = vmatpush.msrb.mxu3 %v3294_v48  ;;  %v5485_v61 = vpop.f32.mrf.mxu2  ;;  %v3255_v47 = vld [vmem:[%s8656_s0 + $0xaa8] sm:$0xff]  ;;  %v3269_v48 = vld [vmem:[%s8656_s0 + $0xb18] sm:$0xff] }
  0xd1   :  { %1208 = vmatpush.msrb.mxu0 %v3245_v51  ;;  %1236 = vmatpush.msrb.mxu1 %v3262_v52  ;;  %v3286_v51 = vld [vmem:[%s8656_s0 + $0xba0] sm:$0xff] }
  0xd2   :  { %1136 = vmatmul.f32.gmra.mxu1 %v3960_v62  ;;  %1194 = vmatmul.f32.gmra.mxu3 %v3961_v63  ;;  %v3236_v62 = vld [vmem:[%s8656_s0 + $0xa10] sm:$0xff]  ;;  %v3253_v63 = vld [vmem:[%s8656_s0 + $0xa98] sm:$0xff] }
  0xd3   :  { %1267 = vmatpush.msrb.mxu2 %v3276_v56  ;;  %1295 = vmatpush.msrb.mxu3 %v3293_v57  ;;  %v5505_v4 = vpop.f32.mrf.mxu3  ;;  %v3966_v56 = vld [vmem:[%s8657_s1 + $0x180] sm:$0x7f]  ;;  %v3967_v57 = vld [vmem:[%s8657_s1 + $0x190] sm:$0x7f] }
  0xd4   :  { %1209 = vmatpush.msrb.mxu0 %v3244_v58  ;;  %1237 = vmatpush.msrb.mxu1 %v3261_v59  ;;  %v5513_v9 = vpop.f32.mrf.mxu0  ;;  %v3268_v58 = vld [vmem:[%s8656_s0 + $0xb10] sm:$0xff]  ;;  %v3285_v59 = vld [vmem:[%s8656_s0 + $0xb98] sm:$0xff] }
  0xd5   :  { %1268 = vmatpush.msrb.mxu2 %v3275_v0  ;;  %1296 = vmatpush.msrb.mxu3 %v3292_v1  ;;  %v3968_v1 = vld [vmem:[%s8657_s1 + $0x188] sm:$0x7f] }
  0xd6   :  { %1210 = vmatpush.msrb.mxu0 %v3243_v2  ;;  %1238 = vmatpush.msrb.mxu1 %v3260_v3  ;;  %v3969_v2 = vld [vmem:[%s8657_s1 + $0x198] sm:$0x7f]  ;;  %v3267_v3 = vld [vmem:[%s8656_s0 + $0xb08] sm:$0xff] }
  0xd7   :  { %1269 = vmatpush.msrb.mxu2 %v3274_v7  ;;  %1297 = vmatpush.msrb.mxu3 %v3291_v8  ;;  %v5527_v17 = vpop.f32.mrf.mxu1  ;;  %v3284_v7 = vld [vmem:[%s8656_s0 + $0xb90] sm:$0xff]  ;;  %v3235_v8 = vld [vmem:[%s8656_s0 + $0xa08] sm:$0xff] }
  0xd8   :  { %1211 = vmatpush.msrb.mxu0 %v3242_v10  ;;  %1239 = vmatpush.msrb.mxu1 %v3259_v13  ;;  %v3252_v10 = vld [vmem:[%s8656_s0 + $0xa90] sm:$0xff] }
  0xd9   :  { %1110 = vmatmul.f32.gmra.mxu0 %v3962_v22  ;;  %1168 = vmatmul.f32.gmra.mxu2 %v3963_v23  ;;  %v3251_v22 = vld [vmem:[%s8656_s0 + $0xa88] sm:$0xff]  ;;  %v3282_v23 = vld [vmem:[%s8656_s0 + $0xb80] sm:$0xff] }
  0xda   :  { %1270 = vmatpush.msrb.mxu2 %v3273_v14  ;;  %1298 = vmatpush.msrb.mxu3 %v3290_v16  ;;  %v5553_v30 = vpop.f32.mrf.mxu2  ;;  %v3266_v14 = vld [vmem:[%s8656_s0 + $0xb00] sm:$0xff]  ;;  %v3283_v16 = vld [vmem:[%s8656_s0 + $0xb88] sm:$0xff] }
  0xdb   :  { %1212 = vmatpush.msrb.mxu0 %v3241_v18  ;;  %1240 = vmatpush.msrb.mxu1 %v3258_v19  ;;  %v3234_v19 = vld [vmem:[%s8656_s0 + $0xa00] sm:$0xff] }
  0xdc   :  { %1139 = vmatmul.f32.gmra.mxu1 %v3964_v31  ;;  %1197 = vmatmul.f32.gmra.mxu3 %v3965_v33  ;;  %v3970_v31 = vld [vmem:[%s8657_s1 + $0x20] sm:$0xff]  ;;  %v3971_v33 = vld [vmem:[%s8657_s1 + $0x30] sm:$0xff] }
  0xdd   :  { %1271 = vmatpush.msrb.mxu2 %v3272_v24  ;;  %1299 = vmatpush.msrb.mxu3 %v3289_v25  ;;  %v5573_v39 = vpop.f32.mrf.mxu3  ;;  %v3345_v24 = vld [vmem:[%s8656_s0 + $0xd78] sm:$0xff] }
  0xde   :  { %1213 = vmatpush.msrb.mxu0 %v3240_v27  ;;  %1241 = vmatpush.msrb.mxu1 %v3257_v28  ;;  %v5581_v44 = vpop.f32.mrf.mxu0  ;;  %v3250_v27 = vld [vmem:[%s8656_s0 + $0xa80] sm:$0xff]  ;;  %v3313_v28 = vld [vmem:[%s8656_s0 + $0xc78] sm:$0xff] }
  0xdf   :  { %1272 = vmatpush.msrb.mxu2 %v3271_v34  ;;  %1300 = vmatpush.msrb.mxu3 %v3288_v35  ;;  %v3344_v34 = vld [vmem:[%s8656_s0 + $0xd70] sm:$0xff]  ;;  %v3361_v35 = vld [vmem:[%s8656_s0 + $0xdf8] sm:$0xff] }
  0xe0   :  { %1214 = vmatpush.msrb.mxu0 %v3239_v37  ;;  %1242 = vmatpush.msrb.mxu1 %v3256_v38  ;;  %v3312_v37 = vld [vmem:[%s8656_s0 + $0xc70] sm:$0xff]  ;;  %v3329_v38 = vld [vmem:[%s8656_s0 + $0xcf8] sm:$0xff] }
  0xe1   :  { %1273 = vmatpush.msrb.mxu2 %v3270_v41  ;;  %1301 = vmatpush.msrb.mxu3 %v3287_v42  ;;  %v5595_v52 = vpop.f32.mrf.mxu1  ;;  %v3972_v42 = vld [vmem:[%s8657_s1 + $0x28] sm:$0xff] }
  0xe2   :  { %1215 = vmatpush.msrb.mxu0 %v3238_v46  ;;  %1243 = vmatpush.msrb.mxu1 %v3255_v47  ;;  %v3973_v46 = vld [vmem:[%s8657_s1 + $0x38] sm:$0xff]  ;;  %v3343_v47 = vld [vmem:[%s8656_s0 + $0xd68] sm:$0xff] }
  0xe3   :  { %1113 = vmatmul.f32.gmra.mxu0 %v3966_v56  ;;  %1171 = vmatmul.f32.gmra.mxu2 %v3967_v57  ;;  %v3342_v56 = vld [vmem:[%s8656_s0 + $0xd60] sm:$0xff]  ;;  %v3359_v57 = vld [vmem:[%s8656_s0 + $0xde8] sm:$0xff] }
  0xe4   :  { %1274 = vmatpush.msrb.mxu2 %v3269_v48  ;;  %1302 = vmatpush.msrb.mxu3 %v3286_v51  ;;  %v5621_v0 = vpop.f32.mrf.mxu2  ;;  %v3360_v48 = vld [vmem:[%s8656_s0 + $0xdf0] sm:$0xff]  ;;  %v3311_v51 = vld [vmem:[%s8656_s0 + $0xc68] sm:$0xff] }
  0xe5   :  { %1216 = vmatpush.msrb.mxu0 %v3237_v54  ;;  %1244 = vmatpush.msrb.mxu1 %v3254_v55  ;;  %v3328_v54 = vld [vmem:[%s8656_s0 + $0xcf0] sm:$0xff] }
  0xe6   :  { %1142 = vmatmul.f32.gmra.mxu1 %v3968_v1  ;;  %1200 = vmatmul.f32.gmra.mxu3 %v3969_v2  ;;  %v3341_v1 = vld [vmem:[%s8656_s0 + $0xd58] sm:$0xff]  ;;  %v3358_v2 = vld [vmem:[%s8656_s0 + $0xde0] sm:$0xff] }
  0xe7   :  { %1275 = vmatpush.msrb.mxu2 %v3268_v58  ;;  %1303 = vmatpush.msrb.mxu3 %v3285_v59  ;;  %v5641_v13 = vpop.f32.mrf.mxu3  ;;  %v5719_v59 = vpop.permute.xlu0 %343 }
  0xe8   :  { %1217 = vmatpush.msrb.mxu0 %v3236_v62  ;;  %1245 = vmatpush.msrb.mxu1 %v3253_v63  ;;  %v5649_v18 = vpop.f32.mrf.mxu0  ;;  %v3310_v62 = vld [vmem:[%s8656_s0 + $0xc60] sm:$0xff]  ;;  %v3327_v63 = vld [vmem:[%s8656_s0 + $0xce8] sm:$0xff] }
  0xe9   :  { %1276 = vmatpush.msrb.mxu2 %v3267_v3  ;;  %1304 = vmatpush.msrb.mxu3 %v3284_v7  ;;  %v379_v7 = vadd.f32 %v5173_v5, %v5719_v59  ;;  %v3340_v5 = vld [vmem:[%s8656_s0 + $0xd50] sm:$0xff] }
  0xea   :  { %1218 = vmatpush.msrb.mxu0 %v3235_v8  ;;  %1246 = vmatpush.msrb.mxu1 %v3252_v10  ;;  %v3309_v8 = vld [vmem:[%s8656_s0 + $0xc58] sm:$0xff]  ;;  %v3326_v10 = vld [vmem:[%s8656_s0 + $0xce0] sm:$0xff] }
  0xeb   :  { %1277 = vmatpush.msrb.mxu2 %v3266_v14  ;;  %1305 = vmatpush.msrb.mxu3 %v3283_v16  ;;  %v5663_v25 = vpop.f32.mrf.mxu1  ;;  %v3974_v14 = vld [vmem:[%s8657_s1 + $0xa0] sm:$0xff]  ;;  %v3975_v16 = vld [vmem:[%s8657_s1 + $0xb0] sm:$0xff] }
  0xec   :  { %1219 = vmatpush.msrb.mxu0 %v3234_v19  ;;  %1247 = vmatpush.msrb.mxu1 %v3251_v22  ;;  %v3357_v19 = vld [vmem:[%s8656_s0 + $0xdd8] sm:$0xff]  ;;  %v3308_v22 = vld [vmem:[%s8656_s0 + $0xc50] sm:$0xff] }
  0xed   :  { %1220 = vmatmul.f32.vlgmr.msrb.gmra.mxu0 %v3970_v31  ;;  %1278 = vmatmul.f32.vlgmr.msrb.gmra.mxu2 %v3971_v33  ;;  %v3977_v31 = vld [vmem:[%s8657_s1 + $0xb8] sm:$0xff]  ;;  %v3339_v33 = vld [vmem:[%s8656_s0 + $0xd48] sm:$0xff] }
  0xee   :  { %1306 = vmatpush.msrb.mxu3 %v3282_v23  ;;  %1378 = vmatpush.msra.mxu2 %v3345_v24  ;;  %v5689_v41 = vpop.f32.mrf.mxu2  ;;  %v3325_v23 = vld [vmem:[%s8656_s0 + $0xcd8] sm:$0xff] }
  0xef   :  { %1248 = vmatpush.msrb.mxu1 %v3250_v27  ;;  %1320 = vmatpush.msra.mxu0 %v3313_v28  ;;  %v408_v27 = vadd.f32 %v5193_v12, %v379_v7  ;;  %v3976_v28 = vld [vmem:[%s8657_s1 + $0xa8] sm:$0xff]  ;;  %v3979_v7 = vld [vmem:[%s8657_s1 + $0x130] sm:$0xff] }
  0xf0   :  { %1249 = vmatmul.f32.vlgmr.msrb.gmra.mxu1 %v3972_v42  ;;  %1307 = vmatmul.f32.vlgmr.msrb.gmra.mxu3 %v3973_v46  ;;  %v3307_v12 = vld [vmem:[%s8656_s0 + $0xc48] sm:$0xff] }
  0xf1   :  { %1379 = vmatpush.msra.mxu2 %v3344_v34  ;;  %1407 = vmatpush.msra.mxu3 %v3361_v35  ;;  %v5709_v55 = vpop.f32.mrf.mxu3  ;;  %v3356_v34 = vld [vmem:[%s8656_s0 + $0xdd0] sm:$0xff]  ;;  %v3355_v42 = vld [vmem:[%s8656_s0 + $0xdc8] sm:$0xff] }
  0xf2   :  { %1321 = vmatpush.msra.mxu0 %v3312_v37  ;;  %1349 = vmatpush.msra.mxu1 %v3329_v38  ;;  %v5717_v58 = vpop.f32.mrf.mxu0  ;;  %v3324_v35 = vld [vmem:[%s8656_s0 + $0xcd0] sm:$0xff]  ;;  %v3338_v38 = vld [vmem:[%s8656_s0 + $0xd40] sm:$0xff] }
  0xf3   :  { %1380 = vmatpush.msra.mxu2 %v3343_v47  ;;  %1408 = vmatpush.msra.mxu3 %v3360_v48  ;;  %v5792_v47 = vpop.permute.xlu0 %348  ;;  %v3306_v48 = vld [vmem:[%s8656_s0 + $0xc40] sm:$0xff] }
  0xf4   :  { %1322 = vmatpush.msra.mxu0 %v3311_v51  ;;  %1350 = vmatpush.msra.mxu1 %v3328_v54  ;;  %v3323_v51 = vld [vmem:[%s8656_s0 + $0xcc8] sm:$0xff]  ;;  %v437_v54 = vadd.f32 %v5219_v21, %v408_v27  ;;  %v3305_v21 = vld [vmem:[%s8656_s0 + $0xc38] sm:$0xff] }
  0xf5   :  { %1381 = vmatpush.msra.mxu2 %v3342_v56  ;;  %1409 = vmatpush.msra.mxu3 %v3359_v57  ;;  %v5733_v3 = vpop.f32.mrf.mxu1  ;;  %v3337_v56 = vld [vmem:[%s8656_s0 + $0xd38] sm:$0xff]  ;;  %v3354_v57 = vld [vmem:[%s8656_s0 + $0xdc0] sm:$0xff]  ;;  %v3335_v27 = vld [vmem:[%s8656_s0 + $0xd28] sm:$0xff] }
  0xf6   :  { %1323 = vmatpush.msra.mxu0 %v3310_v62  ;;  %1351 = vmatpush.msra.mxu1 %v3327_v63  ;;  %v382_v63 = vadd.f32 %v5241_v29, %v5792_v47  ;;  %v466_v29 = vadd.f32 %v5233_v26, %v437_v54  ;;  %v3321_v26 = vld [vmem:[%s8656_s0 + $0xcb8] sm:$0xff] }
  0xf7   :  { %1223 = vmatmul.f32.gmra.mxu0 %v3974_v14  ;;  %1281 = vmatmul.f32.gmra.mxu2 %v3975_v16  ;;  %v3304_v14 = vld [vmem:[%s8656_s0 + $0xc30] sm:$0xff]  ;;  %v3333_v54 = vld [vmem:[%s8656_s0 + $0xd18] sm:$0xff] }
  0xf8   :  { %1382 = vmatpush.msra.mxu2 %v3341_v1  ;;  %1410 = vmatpush.msra.mxu3 %v3358_v2  ;;  %v5761_v24 = vpop.f32.mrf.mxu2  ;;  %v3322_v1 = vld [vmem:[%s8656_s0 + $0xcc0] sm:$0xff] }
  0xf9   :  { %1324 = vmatpush.msra.mxu0 %v3309_v8  ;;  %1352 = vmatpush.msra.mxu1 %v3326_v10  ;;  %v3978_v2 = vld [vmem:[%s8657_s1 + $0x120] sm:$0xff]  ;;  %v3336_v8 = vld [vmem:[%s8656_s0 + $0xd30] sm:$0xff]  ;;  %v3353_v10 = vld [vmem:[%s8656_s0 + $0xdb8] sm:$0xff] }
  0xfa   :  { %1252 = vmatmul.f32.gmra.mxu1 %v3976_v28  ;;  %1310 = vmatmul.f32.gmra.mxu3 %v3977_v31  ;;  %v3320_v28 = vld [vmem:[%s8656_s0 + $0xcb0] sm:$0xff] }
  0xfb   :  { %1383 = vmatpush.msra.mxu2 %v3340_v5  ;;  %1411 = vmatpush.msra.mxu3 %v3357_v19  ;;  %v5782_v37 = vpop.f32.mrf.mxu3  ;;  %v411_v5 = vadd.f32 %v5261_v36, %v382_v63  ;;  %v495_v19 = vadd.f32 %v5445_v43, %v466_v29  ;;  %v3352_v36 = vld [vmem:[%s8656_s0 + $0xdb0] sm:$0xff]  ;;  %v3303_v43 = vld [vmem:[%s8656_s0 + $0xc28] sm:$0xff]  ;;  %v3318_v63 = vld [vmem:[%s8656_s0 + $0xca0] sm:$0xff] }
  0xfc   :  { %1325 = vmatpush.msra.mxu0 %v3308_v22  ;;  %1353 = vmatpush.msra.mxu1 %v3325_v23  ;;  %v5790_v46 = vpop.f32.mrf.mxu0  ;;  %v3980_v22 = vld [vmem:[%s8657_s1 + $0x128] sm:$0xff]  ;;  %v3981_v23 = vld [vmem:[%s8657_s1 + $0x138] sm:$0xff]  ;;  %v3300_v29 = vld [vmem:[%s8656_s0 + $0xc10] sm:$0xff] }
  0xfd   :  { %1384 = vmatpush.msra.mxu2 %v3339_v33  ;;  %1412 = vmatpush.msra.mxu3 %v3356_v34  ;;  %v3334_v33 = vld [vmem:[%s8656_s0 + $0xd20] sm:$0xff]  ;;  %v3351_v34 = vld [vmem:[%s8656_s0 + $0xda8] sm:$0xff] }
  0xfe   :  { %1326 = vmatpush.msra.mxu0 %v3307_v12  ;;  %1354 = vmatpush.msra.mxu1 %v3324_v35  ;;  %v3302_v35 = vld [vmem:[%s8656_s0 + $0xc20] sm:$0xff] }
  0xff   :  { %1385 = vmatpush.msra.mxu2 %v3338_v38  ;;  %1413 = vmatpush.msra.mxu3 %v3355_v42  ;;  %v5807_v62 = vpop.f32.mrf.mxu1  ;;  %v3319_v38 = vld [vmem:[%s8656_s0 + $0xca8] sm:$0xff]  ;;  %v440_v42 = vadd.f32 %v5287_v45, %v411_v5  ;;  %v3985_v5 = vld [vmem:[%s8657_s1 + $0x1b8] sm:$0x7f] }
 0x100   :  { %1327 = vmatpush.msra.mxu0 %v3306_v48  ;;  %1355 = vmatpush.msra.mxu1 %v3323_v51  ;;  %v5875_v48 = vpop.permute.xlu1 %353  ;;  %v524_v51 = vadd.f32 %v5459_v49, %v495_v19  ;;  %v3301_v49 = vld [vmem:[%s8656_s0 + $0xc18] sm:$0xff]  ;;  %v3331_v19 = vld [vmem:[%s8656_s0 + $0xd08] sm:$0xff] }
 0x101   :  { %1226 = vmatmul.f32.gmra.mxu0 %v3978_v2  ;;  %1284 = vmatmul.f32.gmra.mxu2 %v3979_v7  ;;  %v469_v2 = vadd.f32 %v5301_v50, %v440_v42  ;;  %v3332_v7 = vld [vmem:[%s8656_s0 + $0xd10] sm:$0xff]  ;;  %v3317_v50 = vld [vmem:[%s8656_s0 + $0xc98] sm:$0xff]  ;;  %v3346_v42 = vld [vmem:[%s8656_s0 + $0xd80] sm:$0xff] }
 0x102   :  { %1386 = vmatpush.msra.mxu2 %v3337_v56  ;;  %1414 = vmatpush.msra.mxu3 %v3354_v57  ;;  %v5836_v16 = vpop.f32.mrf.mxu2  ;;  %v3350_v56 = vld [vmem:[%s8656_s0 + $0xda0] sm:$0xff]  ;;  %v553_v45 = vadd.f32 %v5485_v61, %v524_v51  ;;  %v3983_v61 = vld [vmem:[%s8657_s1 + $0x1b0] sm:$0x7f]  ;;  %v3409_v51 = vld [vmem:[%s8656_s0 + $0xf78] sm:$0xff] }
 0x103   :  { %1328 = vmatpush.msra.mxu0 %v3305_v21  ;;  %1356 = vmatpush.msra.mxu1 %v3322_v1  ;;  %v385_v21 = vadd.f32 %v5309_v53, %v5875_v48  ;;  %v3982_v1 = vld [vmem:[%s8657_s1 + $0x1a0] sm:$0x7f]  ;;  %v3349_v53 = vld [vmem:[%s8656_s0 + $0xd98] sm:$0xff] }
 0x104   :  { %1255 = vmatmul.f32.gmra.mxu1 %v3980_v22  ;;  %1313 = vmatmul.f32.gmra.mxu3 %v3981_v23  ;;  %v3299_v22 = vld [vmem:[%s8656_s0 + $0xc08] sm:$0xff]  ;;  %v3316_v23 = vld [vmem:[%s8656_s0 + $0xc90] sm:$0xff] }
 0x105   :  { %1387 = vmatpush.msra.mxu2 %v3336_v8  ;;  %1415 = vmatpush.msra.mxu3 %v3353_v10  ;;  %v5858_v31 = vpop.f32.mrf.mxu3  ;;  %v498_v10 = vadd.f32 %v5513_v9, %v469_v2  ;;  %v3348_v9 = vld [vmem:[%s8656_s0 + $0xd90] sm:$0xff]  ;;  %v3393_v2 = vld [vmem:[%s8656_s0 + $0xef8] sm:$0xff] }
 0x106   :  { %1329 = vmatpush.msra.mxu0 %v3304_v14  ;;  %1357 = vmatpush.msra.mxu1 %v3321_v26  ;;  %v5866_v12 = vpop.f32.mrf.mxu0  ;;  %v582_v14 = vadd.f32 %v5505_v4, %v553_v45  ;;  %v3984_v26 = vld [vmem:[%s8657_s1 + $0x1a8] sm:$0x7f]  ;;  %v414_v4 = vadd.f32 %v5329_v60, %v385_v21  ;;  %v3330_v60 = vld [vmem:[%s8656_s0 + $0xd00] sm:$0xff]  ;;  %v3377_v45 = vld [vmem:[%s8656_s0 + $0xe78] sm:$0xff] }
 0x107   :  { %1388 = vmatpush.msra.mxu2 %v3335_v27  ;;  %1416 = vmatpush.msra.mxu3 %v3352_v36 }
 0x108   :  { %1330 = vmatpush.msra.mxu0 %v3303_v43  ;;  %1358 = vmatpush.msra.mxu1 %v3320_v28  ;;  %v611_v36 = vadd.f32 %v5717_v58, %v582_v14  ;;  %v3347_v43 = vld [vmem:[%s8656_s0 + $0xd88] sm:$0xff] }
 0x109   :  { %1389 = vmatpush.msra.mxu2 %v3334_v33  ;;  %1417 = vmatpush.msra.mxu3 %v3351_v34  ;;  %v5884_v57 = vpop.f32.mrf.mxu1  ;;  %v3298_v33 = vld [vmem:[%s8656_s0 + $0xc00] sm:$0xff]  ;;  %v3315_v58 = vld [vmem:[%s8656_s0 + $0xc88] sm:$0xff]  ;;  %v5954_v34 = vpop.permute.xlu1 %358 }
 0x10a   :  { %1331 = vmatpush.msra.mxu0 %v3302_v35  ;;  %1359 = vmatpush.msra.mxu1 %v3319_v38  ;;  %v527_v35 = vadd.f32 %v5527_v17, %v498_v10  ;;  %v443_v38 = vadd.f32 %v5355_v6, %v414_v4  ;;  %v640_v17 = vadd.f32 %v5733_v3, %v611_v36  ;;  %v3314_v6 = vld [vmem:[%s8656_s0 + $0xc80] sm:$0xff]  ;;  %v3408_v3 = vld [vmem:[%s8656_s0 + $0xf70] sm:$0xff]  ;;  %v3375_v14 = vld [vmem:[%s8656_s0 + $0xe68] sm:$0xff] }
 0x10b   :  { %1229 = vmatmul.f32.gmra.mxu0 %v3982_v1  ;;  %1287 = vmatmul.f32.gmra.mxu2 %v3983_v61  ;;  %v3376_v61 = vld [vmem:[%s8656_s0 + $0xe70] sm:$0xff] }
 0x10c   :  { %1390 = vmatpush.msra.mxu2 %v3333_v54  ;;  %1418 = vmatpush.msra.mxu3 %v3350_v56  ;;  %v5914_v8 = vpop.f32.mrf.mxu2  ;;  %v556_v56 = vadd.f32 %v5553_v30, %v527_v35  ;;  %v3987_v30 = vld [vmem:[%s8657_s1 + $0x50] sm:$0xff]  ;;  %v669_v21 = vadd.f32 %v5761_v24, %v640_v17  ;;  %v472_v1 = vadd.f32 %v5369_v11, %v443_v38  ;;  %v3988_v24 = vld [vmem:[%s8657_s1 + $0x48] sm:$0xff]  ;;  %v3989_v11 = vld [vmem:[%s8657_s1 + $0x58] sm:$0xff] }
 0x10d   :  { %1332 = vmatpush.msra.mxu0 %v3301_v49  ;;  %1360 = vmatpush.msra.mxu1 %v3318_v63  ;;  %v388_v49 = vadd.f32 %v5377_v15, %v5954_v34  ;;  %v3986_v63 = vld [vmem:[%s8657_s1 + $0x40] sm:$0xff]  ;;  %v3425_v15 = vld [vmem:[%s8656_s0 + $0xff8] sm:$0xff] }
 0x10e   :  { %1258 = vmatmul.f32.gmra.mxu1 %v3984_v26  ;;  %1316 = vmatmul.f32.gmra.mxu3 %v3985_v5  ;;  %v501_v10 = vadd.f32 %v5581_v44, %v472_v1  ;;  %v3392_v26 = vld [vmem:[%s8656_s0 + $0xef0] sm:$0xff]  ;;  %v3406_v44 = vld [vmem:[%s8656_s0 + $0xf60] sm:$0xff]  ;;  %v3371_v1 = vld [vmem:[%s8656_s0 + $0xe48] sm:$0xff] }
 0x10f   :  { %1391 = vmatpush.msra.mxu2 %v3332_v7  ;;  %1419 = vmatpush.msra.mxu3 %v3349_v53  ;;  %v5937_v27 = vpop.f32.mrf.mxu3  ;;  %v585_v53 = vadd.f32 %v5573_v39, %v556_v56  ;;  %v417_v39 = vadd.f32 %v5391_v20, %v388_v49  ;;  %v698_v20 = vadd.f32 %v5782_v37, %v669_v21  ;;  %v3990_v38 = vld [vmem:[%s8657_s1 + $0xc0] sm:$0xff] }
 0x110   :  { %1333 = vmatpush.msra.mxu0 %v3300_v29  ;;  %1361 = vmatpush.msra.mxu1 %v3317_v50  ;;  %v5946_v28 = vpop.f32.mrf.mxu0  ;;  %v3407_v29 = vld [vmem:[%s8656_s0 + $0xf68] sm:$0xff]  ;;  %v3424_v50 = vld [vmem:[%s8656_s0 + $0xff0] sm:$0xff]  ;;  %v530_v36 = vadd.f32 %v5595_v52, %v501_v10  ;;  %v3390_v52 = vld [vmem:[%s8656_s0 + $0xee0] sm:$0xff] }
 0x111   :  { %1392 = vmatpush.msra.mxu2 %v3331_v19  ;;  %1420 = vmatpush.msra.mxu3 %v3348_v9  ;;  %v614_v19 = vadd.f32 %v5790_v46, %v585_v53  ;;  %v3423_v9 = vld [vmem:[%s8656_s0 + $0xfe8] sm:$0xff] }
 0x112   :  { %1334 = vmatpush.msra.mxu0 %v3299_v22  ;;  %1362 = vmatpush.msra.mxu1 %v3316_v23  ;;  %v3374_v22 = vld [vmem:[%s8656_s0 + $0xe60] sm:$0xff]  ;;  %v3391_v46 = vld [vmem:[%s8656_s0 + $0xee8] sm:$0xff]  ;;  %v446_v23 = vadd.f32 %v5417_v32, %v417_v39  ;;  %v3373_v32 = vld [vmem:[%s8656_s0 + $0xe58] sm:$0xff]  ;;  %v559_v35 = vadd.f32 %v5621_v0, %v530_v36 }
 0x113   :  { %1393 = vmatpush.msra.mxu2 %v3330_v60  ;;  %1421 = vmatpush.msra.mxu3 %v3347_v43  ;;  %v5964_v54 = vpop.f32.mrf.mxu1  ;;  %v3405_v60 = vld [vmem:[%s8656_s0 + $0xf58] sm:$0xff]  ;;  %v3422_v43 = vld [vmem:[%s8656_s0 + $0xfe0] sm:$0xff] }
 0x114   :  { %1335 = vmatpush.msra.mxu0 %v3298_v33  ;;  %1363 = vmatpush.msra.mxu1 %v3315_v58  ;;  %v643_v58 = vadd.f32 %v5807_v62, %v614_v19  ;;  %v3991_v62 = vld [vmem:[%s8657_s1 + $0xd0] sm:$0xff]  ;;  %v3421_v0 = vld [vmem:[%s8656_s0 + $0xfd8] sm:$0xff]  ;;  %v475_v17 = vadd.f32 %v5437_v40, %v446_v23  ;;  %v588_v21 = vadd.f32 %v5641_v13, %v559_v35  ;;  %v3402_v13 = vld [vmem:[%s8656_s0 + $0xf40] sm:$0xff] }
 0x115   :  { %1336 = vmatmul.f32.vlgmr.msra.gmra.mxu0 %v3986_v63  ;;  %1394 = vmatmul.f32.vlgmr.msra.gmra.mxu2 %v3987_v30  ;;  %v3992_v63 = vld [vmem:[%s8657_s1 + $0xc8] sm:$0xff]  ;;  %v3993_v40 = vld [vmem:[%s8657_s1 + $0xd8] sm:$0xff]  ;;  %v3420_v30 = vld [vmem:[%s8656_s0 + $0xfd0] sm:$0xff] }
 0x116   :  { %1422 = vmatpush.msra.mxu3 %v3346_v42  ;;  %1494 = vmatpush.msrb.mxu2 %v3409_v51  ;;  %v5996_v7 = vpop.f32.mrf.mxu2  ;;  %v3404_v42 = vld [vmem:[%s8656_s0 + $0xf50] sm:$0xff]  ;;  %v672_v51 = vadd.f32 %v5836_v16, %v643_v58  ;;  %v3403_v16 = vld [vmem:[%s8656_s0 + $0xf48] sm:$0xff]  ;;  %v3369_v19 = vld [vmem:[%s8656_s0 + $0xe38] sm:$0xff] }
 0x117   :  { %1364 = vmatpush.msra.mxu1 %v3314_v6  ;;  %1436 = vmatpush.msrb.mxu0 %v3377_v45  ;;  %v3372_v6 = vld [vmem:[%s8656_s0 + $0xe50] sm:$0xff]  ;;  %v3389_v45 = vld [vmem:[%s8656_s0 + $0xed8] sm:$0xff] }
 0x118   :  { %1365 = vmatmul.f32.vlgmr.msra.gmra.mxu1 %v3988_v24  ;;  %1423 = vmatmul.f32.vlgmr.msra.gmra.mxu3 %v3989_v11  ;;  %v701_v53 = vadd.f32 %v5858_v31, %v672_v51  ;;  %v3387_v31 = vld [vmem:[%s8656_s0 + $0xec8] sm:$0xff]  ;;  %v3385_v23 = vld [vmem:[%s8656_s0 + $0xeb8] sm:$0xff]  ;;  %v3384_v35 = vld [vmem:[%s8656_s0 + $0xeb0] sm:$0xff] }
 0x119   :  { %1495 = vmatpush.msrb.mxu2 %v3408_v3  ;;  %1523 = vmatpush.msrb.mxu3 %v3425_v15  ;;  %v6019_v5 = vpop.f32.mrf.mxu3  ;;  %v504_v15 = vadd.f32 %v5649_v18, %v475_v17  ;;  %v3419_v18 = vld [vmem:[%s8656_s0 + $0xfc8] sm:$0xff]  ;;  %v3366_v17 = vld [vmem:[%s8656_s0 + $0xe20] sm:$0xff] }
 0x11a   :  { %1437 = vmatpush.msrb.mxu0 %v3376_v61  ;;  %1465 = vmatpush.msrb.mxu1 %v3393_v2  ;;  %v726_v4 = vpop.f32.mrf.mxu0  ;;  %v3388_v61 = vld [vmem:[%s8656_s0 + $0xed0] sm:$0xff] }
 0x11b   :  { %1496 = vmatpush.msrb.mxu2 %v3407_v29  ;;  %1524 = vmatpush.msrb.mxu3 %v3424_v50  ;;  %v727_v37 = vadd.f32 %v726_v4, %v698_v20  ;;  %v617_v29 = vadd.f32 %v5866_v12, %v588_v21  ;;  %v3370_v50 = vld [vmem:[%s8656_s0 + $0xe40] sm:$0xff]  ;;  %v533_v10 = vadd.f32 %v5663_v25, %v504_v15  ;;  %v3401_v12 = vld [vmem:[%s8656_s0 + $0xf38] sm:$0xff]  ;;  %v3995_v4 = vld [vmem:[%s8657_s1 + $0x150] sm:$0xff] }
 0x11c   :  { %1438 = vmatpush.msrb.mxu0 %v3375_v14  ;;  %1466 = vmatpush.msrb.mxu1 %v3392_v26  ;;  %v3418_v14 = vld [vmem:[%s8656_s0 + $0xfc0] sm:$0xff]  ;;  %v3396_v15 = vld [vmem:[%s8656_s0 + $0xf10] sm:$0xff] }
 0x11d   :  { %1497 = vmatpush.msrb.mxu2 %v3406_v44  ;;  %1525 = vmatpush.msrb.mxu3 %v3423_v9  ;;  %v755_v33 = vpop.f32.mrf.mxu1  ;;  %v3386_v25 = vld [vmem:[%s8656_s0 + $0xec0] sm:$0xff]  ;;  %v562_v20 = vadd.f32 %v5689_v41, %v533_v10  ;;  %v646_v44 = vadd.f32 %v5884_v57, %v617_v29  ;;  %v3417_v41 = vld [vmem:[%s8656_s0 + $0xfb8] sm:$0xff]  ;;  %v3380_v29 = vld [vmem:[%s8656_s0 + $0xe90] sm:$0xff] }
 0x11e   :  { %1439 = vmatpush.msrb.mxu0 %v3374_v22  ;;  %1467 = vmatpush.msrb.mxu1 %v3391_v46  ;;  %v756_v56 = vadd.f32 %v755_v33, %v727_v37  ;;  %v3994_v9 = vld [vmem:[%s8657_s1 + $0x140] sm:$0xff]  ;;  %v3400_v22 = vld [vmem:[%s8656_s0 + $0xf30] sm:$0xff] }
 0x11f   :  { %1339 = vmatmul.f32.gmra.mxu0 %v3990_v38  ;;  %1397 = vmatmul.f32.gmra.mxu2 %v3991_v62  ;;  %v675_v46 = vadd.f32 %v5914_v8, %v646_v44  ;;  %v3368_v37 = vld [vmem:[%s8656_s0 + $0xe30] sm:$0xff]  ;;  %v3399_v8 = vld [vmem:[%s8656_s0 + $0xf28] sm:$0xff]  ;;  %v3398_v62 = vld [vmem:[%s8656_s0 + $0xf20] sm:$0xff] }
 0x120   :  { %1498 = vmatpush.msrb.mxu2 %v3405_v60  ;;  %1526 = vmatpush.msrb.mxu3 %v3422_v43  ;;  %v784_v49 = vpop.f32.mrf.mxu2  ;;  %v3996_v60 = vld [vmem:[%s8657_s1 + $0x148] sm:$0xff]  ;;  %v3997_v43 = vld [vmem:[%s8657_s1 + $0x158] sm:$0xff]  ;;  %v3416_v33 = vld [vmem:[%s8656_s0 + $0xfb0] sm:$0xff] }
 0x121   :  { %1440 = vmatpush.msrb.mxu0 %v3373_v32  ;;  %1468 = vmatpush.msrb.mxu1 %v3390_v52  ;;  %v785_v3 = vadd.f32 %v784_v49, %v756_v56  ;;  %v591_v32 = vadd.f32 %v5709_v55, %v562_v20  ;;  %v3367_v52 = vld [vmem:[%s8656_s0 + $0xe28] sm:$0xff]  ;;  %v704_v56 = vadd.f32 %v5937_v27, %v675_v46  ;;  %v3397_v27 = vld [vmem:[%s8656_s0 + $0xf18] sm:$0xff]  ;;  %v3410_v20 = vld [vmem:[%s8656_s0 + $0xf80] sm:$0xff] }
 0x122   :  { %1368 = vmatmul.f32.gmra.mxu1 %v3992_v63  ;;  %1426 = vmatmul.f32.gmra.mxu3 %v3993_v40  ;;  %v3415_v55 = vld [vmem:[%s8656_s0 + $0xfa8] sm:$0xff]  ;;  %v3365_v49 = vld [vmem:[%s8656_s0 + $0xe18] sm:$0xff]  ;;  %v3382_v63 = vld [vmem:[%s8656_s0 + $0xea0] sm:$0xff] }
 0x123   :  { %1499 = vmatpush.msrb.mxu2 %v3404_v42  ;;  %1527 = vmatpush.msrb.mxu3 %v3421_v0  ;;  %v813_v2 = vpop.f32.mrf.mxu3  ;;  %v620_v51 = vadd.f32 %v5946_v28, %v591_v32  ;;  %v3414_v28 = vld [vmem:[%s8656_s0 + $0xfa0] sm:$0xff]  ;;  %v3476_v46 = vld [vmem:[%s8656_s0 + $0x1170] sm:$0xff] }
 0x124   :  { %1441 = vmatpush.msrb.mxu0 %v3372_v6  ;;  %1469 = vmatpush.msrb.mxu1 %v3389_v45  ;;  %v729_v24 = vpop.f32.mrf.mxu0  ;;  %v814_v11 = vadd.f32 %v813_v2, %v785_v3  ;;  %v3383_v6 = vld [vmem:[%s8656_s0 + $0xea8] sm:$0xff]  ;;  %v3999_v3 = vld [vmem:[%s8657_s1 + $0x1d0] sm:$0x7f] }
 0x125   :  { %1500 = vmatpush.msrb.mxu2 %v3403_v16  ;;  %1528 = vmatpush.msrb.mxu3 %v3420_v30  ;;  %v730_v39 = vadd.f32 %v729_v24, %v701_v53  ;;  %v649_v16 = vadd.f32 %v5964_v54, %v620_v51  ;;  %v3998_v30 = vld [vmem:[%s8657_s1 + $0x1c0] sm:$0x7f]  ;;  %v3413_v54 = vld [vmem:[%s8656_s0 + $0xf98] sm:$0xff]  ;;  %v4000_v53 = vld [vmem:[%s8657_s1 + $0x1c8] sm:$0x7f] }
 0x126   :  { %1442 = vmatpush.msrb.mxu0 %v3371_v1  ;;  %1470 = vmatpush.msrb.mxu1 %v3388_v61  ;;  %826 = vst.msk [vmem:[%s8659_s3] sm:$0xff] %vm825_vm0, %v814_v11  ;;  %v3364_v1 = vld [vmem:[%s8656_s0 + $0xe10] sm:$0xff]  ;;  %v3381_v61 = vld [vmem:[%s8656_s0 + $0xe98] sm:$0xff]  ;;  %v3363_v11 = vld [vmem:[%s8656_s0 + $0xe08] sm:$0xff] }
 0x127   :  { %1501 = vmatpush.msrb.mxu2 %v3402_v13  ;;  %1529 = vmatpush.msrb.mxu3 %v3419_v18  ;;  %v758_v26 = vpop.f32.mrf.mxu1  ;;  %v678_v21 = vadd.f32 %v5996_v7, %v649_v16  ;;  %v4001_v13 = vld [vmem:[%s8657_s1 + $0x1d8] sm:$0x7f]  ;;  %v3395_v7 = vld [vmem:[%s8656_s0 + $0xf08] sm:$0xff]  ;;  %v3412_v18 = vld [vmem:[%s8656_s0 + $0xf90] sm:$0xff] }
 0x128   :  { %1443 = vmatpush.msrb.mxu0 %v3370_v50  ;;  %1471 = vmatpush.msrb.mxu1 %v3387_v31  ;;  %v759_v57 = vadd.f32 %v758_v26, %v730_v39  ;;  %v3394_v31 = vld [vmem:[%s8656_s0 + $0xf00] sm:$0xff]  ;;  %v3411_v39 = vld [vmem:[%s8656_s0 + $0xf88] sm:$0xff]  ;;  %v3472_v16 = vld [vmem:[%s8656_s0 + $0x1150] sm:$0xff] }
 0x129   :  { %1342 = vmatmul.f32.gmra.mxu0 %v3994_v9  ;;  %1400 = vmatmul.f32.gmra.mxu2 %v3995_v4  ;;  %v3362_v26 = vld [vmem:[%s8656_s0 + $0xe00] sm:$0xff]  ;;  %v3445_v4 = vld [vmem:[%s8656_s0 + $0x1078] sm:$0xff]  ;;  %v3459_v51 = vld [vmem:[%s8656_s0 + $0x10e8] sm:$0xff] }
 0x12a   :  { %1502 = vmatpush.msrb.mxu2 %v3401_v12  ;;  %1530 = vmatpush.msrb.mxu3 %v3418_v14  ;;  %v787_v36 = vpop.f32.mrf.mxu2  ;;  %v707_v14 = vadd.f32 %v6019_v5, %v678_v21  ;;  %v3477_v5 = vld [vmem:[%s8656_s0 + $0x1178] sm:$0xff]  ;;  %v3378_v9 = vld [vmem:[%s8656_s0 + $0xe80] sm:$0xff] }
 0x12b   :  { %1444 = vmatpush.msrb.mxu0 %v3369_v19  ;;  %1472 = vmatpush.msrb.mxu1 %v3386_v25  ;;  %v788_v58 = vadd.f32 %v787_v36, %v759_v57  ;;  %v3379_v19 = vld [vmem:[%s8656_s0 + $0xe88] sm:$0xff]  ;;  %v4003_v57 = vld [vmem:[%s8657_s1 + $0x70] sm:$0xff]  ;;  %v3461_v36 = vld [vmem:[%s8656_s0 + $0x10f8] sm:$0xff] }
 0x12c   :  { %1371 = vmatmul.f32.gmra.mxu1 %v3996_v60  ;;  %1429 = vmatmul.f32.gmra.mxu3 %v3997_v43  ;;  %v4004_v43 = vld [vmem:[%s8657_s1 + $0x68] sm:$0xff]  ;;  %v4009_v21 = vld [vmem:[%s8657_s1 + $0xf8] sm:$0xff] }
 0x12d   :  { %1503 = vmatpush.msrb.mxu2 %v3400_v22  ;;  %1531 = vmatpush.msrb.mxu3 %v3417_v41  ;;  %v816_v38 = vpop.f32.mrf.mxu3  ;;  %v4002_v41 = vld [vmem:[%s8657_s1 + $0x60] sm:$0xff] }
 0x12e   :  { %1445 = vmatpush.msrb.mxu0 %v3368_v37  ;;  %1473 = vmatpush.msrb.mxu1 %v3385_v23  ;;  %v732_v42 = vpop.f32.mrf.mxu0  ;;  %v817_v0 = vadd.f32 %v816_v38, %v788_v58  ;;  %v3493_v37 = vld [vmem:[%s8656_s0 + $0x11f8] sm:$0xff]  ;;  %v3444_v23 = vld [vmem:[%s8656_s0 + $0x1070] sm:$0xff] }
 0x12f   :  { %1504 = vmatpush.msrb.mxu2 %v3399_v8  ;;  %1532 = vmatpush.msrb.mxu3 %v3416_v33  ;;  %v733_v45 = vadd.f32 %v732_v42, %v704_v56  ;;  %v4005_v8 = vld [vmem:[%s8657_s1 + $0x78] sm:$0xff]  ;;  %v3475_v33 = vld [vmem:[%s8656_s0 + $0x1168] sm:$0xff]  ;;  %v3492_v58 = vld [vmem:[%s8656_s0 + $0x11f0] sm:$0xff] }
 0x130   :  { %1446 = vmatpush.msrb.mxu0 %v3367_v52  ;;  %1474 = vmatpush.msrb.mxu1 %v3384_v35  ;;  %827 = vst.msk [vmem:[%s8659_s3 + $0x8] sm:$0xff] %vm825_vm0, %v817_v0  ;;  %v3443_v52 = vld [vmem:[%s8656_s0 + $0x1068] sm:$0xff]  ;;  %v3460_v35 = vld [vmem:[%s8656_s0 + $0x10f0] sm:$0xff]  ;;  %v3442_v0 = vld [vmem:[%s8656_s0 + $0x1060] sm:$0xff] }
 0x131   :  { %1505 = vmatpush.msrb.mxu2 %v3398_v62  ;;  %1533 = vmatpush.msrb.mxu3 %v3415_v55  ;;  %v761_v40 = vpop.f32.mrf.mxu1  ;;  %v3474_v62 = vld [vmem:[%s8656_s0 + $0x1160] sm:$0xff]  ;;  %v3491_v55 = vld [vmem:[%s8656_s0 + $0x11e8] sm:$0xff] }
 0x132   :  { %1447 = vmatpush.msrb.mxu0 %v3366_v17  ;;  %1475 = vmatpush.msrb.mxu1 %v3383_v6  ;;  %v762_v2 = vadd.f32 %v761_v40, %v733_v45  ;;  %v3473_v6 = vld [vmem:[%s8656_s0 + $0x1158] sm:$0xff]  ;;  %v3458_v45 = vld [vmem:[%s8656_s0 + $0x10e0] sm:$0xff] }
 0x133   :  { %1345 = vmatmul.f32.gmra.mxu0 %v3998_v30  ;;  %1403 = vmatmul.f32.gmra.mxu2 %v3999_v3  ;;  %v3489_v30 = vld [vmem:[%s8656_s0 + $0x11d8] sm:$0xff]  ;;  %v3440_v3 = vld [vmem:[%s8656_s0 + $0x1050] sm:$0xff] }
 0x134   :  { %1506 = vmatpush.msrb.mxu2 %v3397_v27  ;;  %1534 = vmatpush.msrb.mxu3 %v3414_v28  ;;  %v790_v24 = vpop.f32.mrf.mxu2  ;;  %v3490_v27 = vld [vmem:[%s8656_s0 + $0x11e0] sm:$0xff]  ;;  %v3441_v28 = vld [vmem:[%s8656_s0 + $0x1058] sm:$0xff] }
 0x135   :  { %1448 = vmatpush.msrb.mxu0 %v3365_v49  ;;  %1476 = vmatpush.msrb.mxu1 %v3382_v63  ;;  %v791_v50 = vadd.f32 %v790_v24, %v762_v2  ;;  %v4006_v49 = vld [vmem:[%s8657_s1 + $0xe0] sm:$0xff]  ;;  %v4007_v63 = vld [vmem:[%s8657_s1 + $0xf0] sm:$0xff]  ;;  %v3439_v2 = vld [vmem:[%s8656_s0 + $0x1048] sm:$0xff] }
 0x136   :  { %1374 = vmatmul.f32.gmra.mxu1 %v4000_v53  ;;  %1432 = vmatmul.f32.gmra.mxu3 %v4001_v13  ;;  %v3456_v53 = vld [vmem:[%s8656_s0 + $0x10d0] sm:$0xff]  ;;  %v3438_v24 = vld [vmem:[%s8656_s0 + $0x1040] sm:$0xff] }
 0x137   :  { %1507 = vmatpush.msrb.mxu2 %v3396_v15  ;;  %1535 = vmatpush.msrb.mxu3 %v3413_v54  ;;  %v819_v12 = vpop.f32.mrf.mxu3  ;;  %v3457_v15 = vld [vmem:[%s8656_s0 + $0x10d8] sm:$0xff]  ;;  %v4008_v54 = vld [vmem:[%s8657_s1 + $0xe8] sm:$0xff] }
 0x138   :  { %1449 = vmatpush.msrb.mxu0 %v3364_v1  ;;  %1477 = vmatpush.msrb.mxu1 %v3381_v61  ;;  %v735_v10 = vpop.f32.mrf.mxu0  ;;  %v820_v25 = vadd.f32 %v819_v12, %v791_v50  ;;  %v3471_v1 = vld [vmem:[%s8656_s0 + $0x1148] sm:$0xff]  ;;  %v3488_v61 = vld [vmem:[%s8656_s0 + $0x11d0] sm:$0xff]  ;;  %v3437_v12 = vld [vmem:[%s8656_s0 + $0x1038] sm:$0xff] }
 0x139   :  { %1508 = vmatpush.msrb.mxu2 %v3395_v7  ;;  %1536 = vmatpush.msrb.mxu3 %v3412_v18  ;;  %v736_v44 = vadd.f32 %v735_v10, %v707_v14  ;;  %v3470_v7 = vld [vmem:[%s8656_s0 + $0x1140] sm:$0xff]  ;;  %v3487_v18 = vld [vmem:[%s8656_s0 + $0x11c8] sm:$0xff] }
 0x13a   :  { %1450 = vmatpush.msrb.mxu0 %v3363_v11  ;;  %1478 = vmatpush.msrb.mxu1 %v3380_v29  ;;  %828 = vst.msk [vmem:[%s8659_s3 + $0x10] sm:$0xff] %vm825_vm0, %v820_v25  ;;  %v3455_v11 = vld [vmem:[%s8656_s0 + $0x10c8] sm:$0xff]  ;;  %v3486_v10 = vld [vmem:[%s8656_s0 + $0x11c0] sm:$0xff] }
 0x13b   :  { %1509 = vmatpush.msrb.mxu2 %v3394_v31  ;;  %1537 = vmatpush.msrb.mxu3 %v3411_v39  ;;  %v764_v22 = vpop.f32.mrf.mxu1  ;;  %v3009_v31 = vld [vmem:[%s8659_s3] sm:$0xff]  ;;  %v3469_v39 = vld [vmem:[%s8656_s0 + $0x1138] sm:$0xff] }
 0x13c   :  { %1451 = vmatpush.msrb.mxu0 %v3362_v26  ;;  %1479 = vmatpush.msrb.mxu1 %v3379_v19  ;;  %v765_v60 = vadd.f32 %v764_v22, %v736_v44  ;;  %v3454_v14 = vld [vmem:[%s8656_s0 + $0x10c0] sm:$0xff]  ;;  %v4011_v19 = vld [vmem:[%s8657_s1 + $0x170] sm:$0xff]  ;;  %v3025_v25 = vsel %vm825_vm0, %v3009_v31, 0.0  ;;  %v3485_v44 = vld [vmem:[%s8656_s0 + $0x11b8] sm:$0xff] }
 0x13d   :  { %1452 = vmatmul.f32.vlgmr.msrb.gmra.mxu0 %v4002_v41  ;;  %1510 = vmatmul.f32.vlgmr.msrb.gmra.mxu2 %v4003_v57  ;;  %v4010_v26 = vld [vmem:[%s8657_s1 + $0x160] sm:$0xff]  ;;  %v3453_v22 = vld [vmem:[%s8656_s0 + $0x10b8] sm:$0xff]  ;;  %v3467_v41 = vld [vmem:[%s8656_s0 + $0x1128] sm:$0xff] }
 0x13e   :  { %1538 = vmatpush.msrb.mxu3 %v3410_v20  ;;  %1872 = vmatpush.msra.mxu2 %v3477_v5  ;;  %v793_v32 = vpop.f32.mrf.mxu2  ;;  %v3468_v5 = vld [vmem:[%s8656_s0 + $0x1130] sm:$0xff]  ;;  %v4013_v57 = vld [vmem:[%s8657_s1 + $0x178] sm:$0xff]  ;;  %v3446_v31 = vld [vmem:[%s8656_s0 + $0x1080] sm:$0xff] }
 0x13f   :  { %1480 = vmatpush.msrb.mxu1 %v3378_v9  ;;  %1814 = vmatpush.msra.mxu0 %v3445_v4  ;;  %v794_v38 = vadd.f32 %v793_v32, %v765_v60  ;;  %v3436_v9 = vld [vmem:[%s8656_s0 + $0x1030] sm:$0xff]  ;;  %v4012_v4 = vld [vmem:[%s8657_s1 + $0x168] sm:$0xff]  ;;  %v3466_v60 = vld [vmem:[%s8656_s0 + $0x1120] sm:$0xff] }
 0x140   :  { %1481 = vmatmul.f32.vlgmr.msrb.gmra.mxu1 %v4004_v43  ;;  %1539 = vmatmul.f32.vlgmr.msrb.gmra.mxu3 %v4005_v8  ;;  %v3483_v43 = vld [vmem:[%s8656_s0 + $0x11a8] sm:$0xff]  ;;  %v3434_v8 = vld [vmem:[%s8656_s0 + $0x1020] sm:$0xff] }
 0x141   :  { %1873 = vmatpush.msra.mxu2 %v3476_v46  ;;  %1901 = vmatpush.msra.mxu3 %v3493_v37  ;;  %v822_v42 = vpop.f32.mrf.mxu3  ;;  %v3484_v46 = vld [vmem:[%s8656_s0 + $0x11b0] sm:$0xff]  ;;  %v3435_v37 = vld [vmem:[%s8656_s0 + $0x1028] sm:$0xff] }
 0x142   :  { %1815 = vmatpush.msra.mxu0 %v3444_v23  ;;  %1843 = vmatpush.msra.mxu1 %v3461_v36  ;;  %v823_v56 = vadd.f32 %v822_v42, %v794_v38  ;;  %v6307_v17 = vpop.f32.mrf.mxu0  ;;  %v3452_v36 = vld [vmem:[%s8656_s0 + $0x10b0] sm:$0xff]  ;;  %v3451_v32 = vld [vmem:[%s8656_s0 + $0x10a8] sm:$0xff]  ;;  %v3465_v38 = vld [vmem:[%s8656_s0 + $0x1118] sm:$0xff] }
 0x143   :  { %1874 = vmatpush.msra.mxu2 %v3475_v33  ;;  %1902 = vmatpush.msra.mxu3 %v3492_v58  ;;  %v3450_v42 = vld [vmem:[%s8656_s0 + $0x10a0] sm:$0xff] }
 0x144   :  { %1816 = vmatpush.msra.mxu0 %v3443_v52  ;;  %1844 = vmatpush.msra.mxu1 %v3460_v35  ;;  %830 = vst.msk [vmem:[%s8659_s3 + $0x18] sm:$0x7f] %vm829_vm1, %v823_v56  ;;  %v3010_v52 = vld [vmem:[%s8659_s3 + $0x8] sm:$0xff]  ;;  %v3482_v35 = vld [vmem:[%s8656_s0 + $0x11a0] sm:$0xff]  ;;  %v4015_v56 = vld [vmem:[%s8657_s1 + $0x1f0] sm:$0x7f] }
 0x145   :  { %1875 = vmatpush.msra.mxu2 %v3474_v62  ;;  %1903 = vmatpush.msra.mxu3 %v3491_v55  ;;  %v6331_v40 = vpop.f32.mrf.mxu1  ;;  %v3433_v62 = vld [vmem:[%s8656_s0 + $0x1018] sm:$0xff]  ;;  %v4014_v55 = vld [vmem:[%s8657_s1 + $0x1e0] sm:$0x7f] }
 0x146   :  { %1817 = vmatpush.msra.mxu0 %v3442_v0  ;;  %1845 = vmatpush.msra.mxu1 %v3459_v51  ;;  %v3028_v0 = vsel %vm825_vm0, %v3010_v52, 0.0  ;;  %v3523_v52 = vld [vmem:[%s8656_s0 + $0x12e8] sm:$0xff] }
 0x147   :  { %1455 = vmatmul.f32.gmra.mxu0 %v4006_v49  ;;  %1513 = vmatmul.f32.gmra.mxu2 %v4007_v63  ;;  %v4016_v49 = vld [vmem:[%s8657_s1 + $0x1e8] sm:$0x7f]  ;;  %v4017_v63 = vld [vmem:[%s8657_s1 + $0x1f8] sm:$0x7f] }
 0x148   :  { %1876 = vmatpush.msra.mxu2 %v3473_v6  ;;  %1904 = vmatpush.msra.mxu3 %v3490_v27  ;;  %v6363_v13 = vpop.f32.mrf.mxu2  ;;  %v3464_v6 = vld [vmem:[%s8656_s0 + $0x1110] sm:$0xff]  ;;  %v3481_v27 = vld [vmem:[%s8656_s0 + $0x1198] sm:$0xff] }
 0x149   :  { %1818 = vmatpush.msra.mxu0 %v3441_v28  ;;  %1846 = vmatpush.msra.mxu1 %v3458_v45  ;;  %v3432_v28 = vld [vmem:[%s8656_s0 + $0x1010] sm:$0xff]  ;;  %v3449_v45 = vld [vmem:[%s8656_s0 + $0x1098] sm:$0xff] }
 0x14a   :  { %1484 = vmatmul.f32.gmra.mxu1 %v4008_v54  ;;  %1542 = vmatmul.f32.gmra.mxu3 %v4009_v21  ;;  %v3448_v54 = vld [vmem:[%s8656_s0 + $0x1090] sm:$0xff]  ;;  %v3462_v21 = vld [vmem:[%s8656_s0 + $0x1100] sm:$0xff] }
 0x14b   :  { %1877 = vmatpush.msra.mxu2 %v3472_v16  ;;  %1905 = vmatpush.msra.mxu3 %v3489_v30  ;;  %v6379_v50 = vpop.f32.mrf.mxu3  ;;  %v3463_v16 = vld [vmem:[%s8656_s0 + $0x1108] sm:$0xff]  ;;  %v3480_v30 = vld [vmem:[%s8656_s0 + $0x1190] sm:$0xff] }
 0x14c   :  { %1819 = vmatpush.msra.mxu0 %v3440_v3  ;;  %1847 = vmatpush.msra.mxu1 %v3457_v15  ;;  %v6377_v29 = vpop.f32.mrf.mxu0  ;;  %v3431_v15 = vld [vmem:[%s8656_s0 + $0x1008] sm:$0xff] }
 0x14d   :  { %1878 = vmatpush.msra.mxu2 %v3471_v1  ;;  %1906 = vmatpush.msra.mxu3 %v3488_v61  ;;  %v3479_v1 = vld [vmem:[%s8656_s0 + $0x1188] sm:$0xff] }
 0x14e   :  { %1820 = vmatpush.msra.mxu0 %v3439_v2  ;;  %1848 = vmatpush.msra.mxu1 %v3456_v53  ;;  %v3430_v53 = vld [vmem:[%s8656_s0 + $0x1000] sm:$0xff] }
 0x14f   :  { %1879 = vmatpush.msra.mxu2 %v3470_v7  ;;  %1907 = vmatpush.msra.mxu3 %v3487_v18  ;;  %v6403_v20 = vpop.f32.mrf.mxu1  ;;  %v3447_v7 = vld [vmem:[%s8656_s0 + $0x1088] sm:$0xff]  ;;  %v3011_v18 = vld [vmem:[%s8659_s3 + $0x10] sm:$0xff] }
 0x150   :  { %1821 = vmatpush.msra.mxu0 %v3438_v24  ;;  %1849 = vmatpush.msra.mxu1 %v3455_v11  ;;  %v3478_v24 = vld [vmem:[%s8656_s0 + $0x1180] sm:$0xff]  ;;  %v3541_v11 = vld [vmem:[%s8656_s0 + $0x1378] sm:$0xff] }
 0x151   :  { %1458 = vmatmul.f32.gmra.mxu0 %v4010_v26  ;;  %1516 = vmatmul.f32.gmra.mxu2 %v4011_v19  ;;  %v3031_v26 = vsel %vm825_vm0, %v3011_v18, 0.0  ;;  %v3540_v19 = vld [vmem:[%s8656_s0 + $0x1370] sm:$0xff] }
 0x152   :  { %1880 = vmatpush.msra.mxu2 %v3469_v39  ;;  %1908 = vmatpush.msra.mxu3 %v3486_v10  ;;  %v6432_v23 = vpop.f32.mrf.mxu2  ;;  %v3509_v39 = vld [vmem:[%s8656_s0 + $0x1278] sm:$0xff] }
 0x153   :  { %1822 = vmatpush.msra.mxu0 %v3437_v12  ;;  %1850 = vmatpush.msra.mxu1 %v3454_v14  ;;  %v4018_v12 = vld [vmem:[%s8657_s1] sm:$0xff]  ;;  %v4019_v14 = vld [vmem:[%s8657_s1 + $0x10] sm:$0xff] }
 0x154   :  { %3026 = vadd.xlane.f32.xlu2 %v3025_v25  ;;  %1487 = vmatmul.f32.gmra.mxu1 %v4012_v4  ;;  %v3557_v25 = vld [vmem:[%s8656_s0 + $0x13f8] sm:$0xff]  ;;  %v3539_v4 = vld [vmem:[%s8656_s0 + $0x1368] sm:$0xff] }
 0x155   :  { %1545 = vmatmul.f32.gmra.mxu3 %v4013_v57  ;;  %1881 = vmatpush.msra.mxu2 %v3468_v5  ;;  %v6448_v58 = vpop.f32.mrf.mxu3  ;;  %v3508_v5 = vld [vmem:[%s8656_s0 + $0x1270] sm:$0xff] }
 0x156   :  { %1909 = vmatpush.msra.mxu3 %v3485_v44  ;;  %1823 = vmatpush.msra.mxu0 %v3436_v9  ;;  %v6446_v33 = vpop.f32.mrf.mxu0  ;;  %v4020_v44 = vld [vmem:[%s8657_s1 + $0x8] sm:$0xff]  ;;  %v3525_v9 = vld [vmem:[%s8656_s0 + $0x12f8] sm:$0xff]  ;;  %v3556_v57 = vld [vmem:[%s8656_s0 + $0x13f0] sm:$0xff] }
 0x157   :  { %1851 = vmatpush.msra.mxu1 %v3453_v22  ;;  %1882 = vmatpush.msra.mxu2 %v3467_v41  ;;  %v4021_v41 = vld [vmem:[%s8657_s1 + $0x18] sm:$0xff] }
 0x158   :  { %1910 = vmatpush.msra.mxu3 %v3484_v46  ;;  %1824 = vmatpush.msra.mxu0 %v3435_v37  ;;  %v3507_v46 = vld [vmem:[%s8656_s0 + $0x1268] sm:$0xff]  ;;  %v3524_v37 = vld [vmem:[%s8656_s0 + $0x12f0] sm:$0xff] }
 0x159   :  { %1852 = vmatpush.msra.mxu1 %v3452_v36  ;;  %1883 = vmatpush.msra.mxu2 %v3466_v60  ;;  %v6472_v51 = vpop.f32.mrf.mxu1  ;;  %v3538_v36 = vld [vmem:[%s8656_s0 + $0x1360] sm:$0xff] }
 0x15a   :  { %1911 = vmatpush.msra.mxu3 %v3483_v43  ;;  %1825 = vmatpush.msra.mxu0 %v3434_v8  ;;  %v3555_v8 = vld [vmem:[%s8656_s0 + $0x13e8] sm:$0xff] }
 0x15b   :  { %1853 = vmatpush.msra.mxu1 %v3451_v32  ;;  %1461 = vmatmul.f32.gmra.mxu0 %v4014_v55  ;;  %v3506_v32 = vld [vmem:[%s8656_s0 + $0x1260] sm:$0xff]  ;;  %v3505_v55 = vld [vmem:[%s8656_s0 + $0x1258] sm:$0xff] }
 0x15c   :  { %1519 = vmatmul.f32.gmra.mxu2 %v4015_v56  ;;  %1912 = vmatpush.msra.mxu3 %v3482_v35  ;;  %v6501_v3 = vpop.f32.mrf.mxu2  ;;  %v3012_v35 = vld [vmem:[%s8659_s3 + $0x18] sm:$0x7f]  ;;  %v3522_v56 = vld [vmem:[%s8656_s0 + $0x12e0] sm:$0xff] }
 0x15d   :  { %1884 = vmatpush.msra.mxu2 %v3465_v38  ;;  %1826 = vmatpush.msra.mxu0 %v3433_v62  ;;  %v3554_v38 = vld [vmem:[%s8656_s0 + $0x13e0] sm:$0xff]  ;;  %v3537_v62 = vld [vmem:[%s8656_s0 + $0x1358] sm:$0xff] }
 0x15e   :  { %1854 = vmatpush.msra.mxu1 %v3450_v42  ;;  %3029 = vadd.xlane.f32.xlu2 %v3028_v0  ;;  %v4022_v0 = vld [vmem:[%s8657_s1 + $0x80] sm:$0xff] }
 0x15f   :  { %1490 = vmatmul.f32.gmra.mxu1 %v4016_v49  ;;  %1548 = vmatmul.f32.gmra.mxu3 %v4017_v63  ;;  %v6517_v2 = vpop.f32.mrf.mxu3  ;;  %v3504_v49 = vld [vmem:[%s8656_s0 + $0x1250] sm:$0xff]  ;;  %v3521_v63 = vld [vmem:[%s8656_s0 + $0x12d8] sm:$0xff] }
 0x160   :  { %1885 = vmatpush.msra.mxu2 %v3464_v6  ;;  %1913 = vmatpush.msra.mxu3 %v3481_v27  ;;  %v6515_v61 = vpop.f32.mrf.mxu0  ;;  %v3034_v6 = vsel %vm829_vm1, %v3012_v35, 0.0  ;;  %v4023_v27 = vld [vmem:[%s8657_s1 + $0x90] sm:$0xff] }
 0x161   :  { %1827 = vmatpush.msra.mxu0 %v3432_v28  ;;  %1855 = vmatpush.msra.mxu1 %v3449_v45  ;;  %v3536_v28 = vld [vmem:[%s8656_s0 + $0x1350] sm:$0xff]  ;;  %v3553_v45 = vld [vmem:[%s8656_s0 + $0x13d8] sm:$0xff] }
 0x162   :  { %1886 = vmatpush.msra.mxu2 %v3463_v16  ;;  %1914 = vmatpush.msra.mxu3 %v3480_v30  ;;  %v4024_v30 = vld [vmem:[%s8657_s1 + $0x88] sm:$0xff]  ;;  %v3516_v35 = vld [vmem:[%s8656_s0 + $0x12b0] sm:$0xff] }
 0x163   :  { %1828 = vmatpush.msra.mxu0 %v3431_v15  ;;  %1856 = vmatpush.msra.mxu1 %v3448_v54  ;;  %v6540_v10 = vpop.f32.mrf.mxu1  ;;  %v4025_v15 = vld [vmem:[%s8657_s1 + $0x98] sm:$0xff]  ;;  %v3535_v54 = vld [vmem:[%s8656_s0 + $0x1348] sm:$0xff] }
 0x164   :  { %1887 = vmatpush.msra.mxu2 %v3462_v21  ;;  %1915 = vmatpush.msra.mxu3 %v3479_v1  ;;  %v3552_v21 = vld [vmem:[%s8656_s0 + $0x13d0] sm:$0xff]  ;;  %v3503_v1 = vld [vmem:[%s8656_s0 + $0x1248] sm:$0xff] }
 0x165   :  { %1829 = vmatpush.msra.mxu0 %v3430_v53  ;;  %1857 = vmatpush.msra.mxu1 %v3447_v7  ;;  %v3520_v53 = vld [vmem:[%s8656_s0 + $0x12d0] sm:$0xff] }
 0x166   :  { %1830 = vmatmul.f32.vlgmr.msra.gmra.mxu0 %v4018_v12  ;;  %1888 = vmatmul.f32.vlgmr.msra.gmra.mxu2 %v4019_v14  ;;  %v6567_v22 = vpop.f32.mrf.mxu2  ;;  %v3533_v12 = vld [vmem:[%s8656_s0 + $0x1338] sm:$0xff]  ;;  %v3550_v14 = vld [vmem:[%s8656_s0 + $0x13c0] sm:$0xff] }
 0x167   :  { %1916 = vmatpush.msra.mxu3 %v3478_v24  ;;  %1988 = vmatpush.msrb.mxu2 %v3541_v11  ;;  %v3534_v24 = vld [vmem:[%s8656_s0 + $0x1340] sm:$0xff]  ;;  %v3551_v11 = vld [vmem:[%s8656_s0 + $0x13c8] sm:$0xff] }
 0x168   :  { %1858 = vmatpush.msra.mxu1 %v3446_v31  ;;  %1930 = vmatpush.msrb.mxu0 %v3509_v39  ;;  %v3502_v31 = vld [vmem:[%s8656_s0 + $0x1240] sm:$0xff]  ;;  %v3519_v39 = vld [vmem:[%s8656_s0 + $0x12c8] sm:$0xff] }
 0x169   :  { %3032 = vadd.xlane.f32.xlu2 %v3031_v26  ;;  %1859 = vmatmul.f32.vlgmr.msra.gmra.mxu1 %v4020_v44  ;;  %v6584_v60 = vpop.f32.mrf.mxu3  ;;  %v4027_v44 = vld [vmem:[%s8657_s1 + $0x110] sm:$0xff] }
 0x16a   :  { %1917 = vmatmul.f32.vlgmr.msra.gmra.mxu3 %v4021_v41  ;;  %1989 = vmatpush.msrb.mxu2 %v3540_v19  ;;  %v6586_v43 = vpop.f32.mrf.mxu0  ;;  %v3501_v19 = vld [vmem:[%s8656_s0 + $0x1238] sm:$0xff]  ;;  %v3500_v41 = vld [vmem:[%s8656_s0 + $0x1230] sm:$0xff] }
 0x16b   :  { %2017 = vmatpush.msrb.mxu3 %v3557_v25  ;;  %1931 = vmatpush.msrb.mxu0 %v3508_v5  ;;  %v3518_v25 = vld [vmem:[%s8656_s0 + $0x12c0] sm:$0xff] }
 0x16c   :  { %1959 = vmatpush.msrb.mxu1 %v3525_v9  ;;  %1990 = vmatpush.msrb.mxu2 %v3539_v4  ;;  %v4026_v5 = vld [vmem:[%s8657_s1 + $0x100] sm:$0xff]  ;;  %v3532_v9 = vld [vmem:[%s8656_s0 + $0x1330] sm:$0xff]  ;;  %v3549_v4 = vld [vmem:[%s8656_s0 + $0x13b8] sm:$0xff] }
 0x16d   :  { %2018 = vmatpush.msrb.mxu3 %v3556_v57  ;;  %1932 = vmatpush.msrb.mxu0 %v3507_v46  ;;  %v6609_v42 = vpop.f32.mrf.mxu1  ;;  %v3517_v57 = vld [vmem:[%s8656_s0 + $0x12b8] sm:$0xff] }
 0x16e   :  { %1960 = vmatpush.msrb.mxu1 %v3524_v37  ;;  %1991 = vmatpush.msrb.mxu2 %v3538_v36  ;;  %v4028_v37 = vld [vmem:[%s8657_s1 + $0x108] sm:$0xff]  ;;  %v4029_v36 = vld [vmem:[%s8657_s1 + $0x118] sm:$0xff] }
 0x16f   :  { %2019 = vmatpush.msrb.mxu3 %v3555_v8  ;;  %1933 = vmatpush.msrb.mxu0 %v3506_v32  ;;  %v3531_v8 = vld [vmem:[%s8656_s0 + $0x1328] sm:$0xff]  ;;  %v3548_v32 = vld [vmem:[%s8656_s0 + $0x13b0] sm:$0xff] }
 0x170   :  { %1961 = vmatpush.msrb.mxu1 %v3523_v52  ;;  %1833 = vmatmul.f32.gmra.mxu0 %v4022_v0  ;;  %v6633_v16 = vpop.f32.mrf.mxu2  ;;  %v3499_v52 = vld [vmem:[%s8656_s0 + $0x1228] sm:$0xff] }
 0x171   :  { %1891 = vmatmul.f32.gmra.mxu2 %v4023_v27  ;;  %2020 = vmatpush.msrb.mxu3 %v3554_v38  ;;  %v3547_v0 = vld [vmem:[%s8656_s0 + $0x13a8] sm:$0xff]  ;;  %v3529_v27 = vld [vmem:[%s8656_s0 + $0x1318] sm:$0xff] }
 0x172   :  { %1992 = vmatpush.msrb.mxu2 %v3537_v62  ;;  %1934 = vmatpush.msrb.mxu0 %v3505_v55  ;;  %v3530_v55 = vld [vmem:[%s8656_s0 + $0x1320] sm:$0xff] }
 0x173   :  { %1962 = vmatpush.msrb.mxu1 %v3522_v56  ;;  %3035 = vadd.xlane.f32.xlu2 %v3034_v6  ;;  %v6655_v18 = vpop.f32.mrf.mxu3  ;;  %v3498_v56 = vld [vmem:[%s8656_s0 + $0x1220] sm:$0xff]  ;;  %v3515_v6 = vld [vmem:[%s8656_s0 + $0x12a8] sm:$0xff] }
 0x174   :  { %1862 = vmatmul.f32.gmra.mxu1 %v4024_v30  ;;  %1920 = vmatmul.f32.gmra.mxu3 %v4025_v15  ;;  %v6653_v7 = vpop.f32.mrf.mxu0  ;;  %v4030_v30 = vld [vmem:[%s8657_s1 + $0x180] sm:$0x7f]  ;;  %v4031_v15 = vld [vmem:[%s8657_s1 + $0x190] sm:$0x7f] }
 0x175   :  { %1993 = vmatpush.msrb.mxu2 %v3536_v28  ;;  %2021 = vmatpush.msrb.mxu3 %v3553_v45  ;;  %v3546_v28 = vld [vmem:[%s8656_s0 + $0x13a0] sm:$0xff] }
 0x176   :  { %1935 = vmatpush.msrb.mxu0 %v3504_v49  ;;  %1963 = vmatpush.msrb.mxu1 %v3521_v63  ;;  %v3497_v49 = vld [vmem:[%s8656_s0 + $0x1218] sm:$0xff]  ;;  %v3514_v63 = vld [vmem:[%s8656_s0 + $0x12a0] sm:$0xff] }
 0x177   :  { %1994 = vmatpush.msrb.mxu2 %v3535_v54  ;;  %2022 = vmatpush.msrb.mxu3 %v3552_v21  ;;  %v6675_v26 = vpop.f32.mrf.mxu1  ;;  %v3528_v54 = vld [vmem:[%s8656_s0 + $0x1310] sm:$0xff]  ;;  %v3545_v21 = vld [vmem:[%s8656_s0 + $0x1398] sm:$0xff] }
 0x178   :  { %1936 = vmatpush.msrb.mxu0 %v3503_v1  ;;  %1964 = vmatpush.msrb.mxu1 %v3520_v53  ;;  %v3496_v1 = vld [vmem:[%s8656_s0 + $0x1210] sm:$0xff]  ;;  %v3513_v53 = vld [vmem:[%s8656_s0 + $0x1298] sm:$0xff] }
 0x179   :  { %1995 = vmatpush.msrb.mxu2 %v3534_v24  ;;  %2023 = vmatpush.msrb.mxu3 %v3551_v11  ;;  %v4032_v11 = vld [vmem:[%s8657_s1 + $0x188] sm:$0x7f] }
 0x17a   :  { %1937 = vmatpush.msrb.mxu0 %v3502_v31  ;;  %1965 = vmatpush.msrb.mxu1 %v3519_v39  ;;  %v6701_v46 = vpop.f32.mrf.mxu2  ;;  %v4033_v31 = vld [vmem:[%s8657_s1 + $0x198] sm:$0x7f]  ;;  %v3527_v39 = vld [vmem:[%s8656_s0 + $0x1308] sm:$0xff] }
 0x17b   :  { %1836 = vmatmul.f32.gmra.mxu0 %v4026_v5  ;;  %1894 = vmatmul.f32.gmra.mxu2 %v4027_v44  ;;  %v3526_v44 = vld [vmem:[%s8656_s0 + $0x1300] sm:$0xff] }
 0x17c   :  { %1996 = vmatpush.msrb.mxu2 %v3533_v12  ;;  %2024 = vmatpush.msrb.mxu3 %v3550_v14  ;;  %v3544_v12 = vld [vmem:[%s8656_s0 + $0x1390] sm:$0xff]  ;;  %v3495_v14 = vld [vmem:[%s8656_s0 + $0x1208] sm:$0xff] }
 0x17d   :  { %1938 = vmatpush.msrb.mxu0 %v3501_v19  ;;  %1966 = vmatpush.msrb.mxu1 %v3518_v25  ;;  %v6723_v62 = vpop.f32.mrf.mxu3  ;;  %v3512_v19 = vld [vmem:[%s8656_s0 + $0x1290] sm:$0xff] }
 0x17e   :  { %1865 = vmatmul.f32.gmra.mxu1 %v4028_v37  ;;  %1923 = vmatmul.f32.gmra.mxu3 %v4029_v36  ;;  %v6721_v38 = vpop.f32.mrf.mxu0  ;;  %v3605_v37 = vld [vmem:[%s8656_s0 + $0x1578] sm:$0xff] }
 0x17f   :  { %1997 = vmatpush.msrb.mxu2 %v3532_v9  ;;  %2025 = vmatpush.msrb.mxu3 %v3549_v4  ;;  %v3543_v9 = vld [vmem:[%s8656_s0 + $0x1388] sm:$0xff]  ;;  %v3494_v4 = vld [vmem:[%s8656_s0 + $0x1200] sm:$0xff] }
 0x180   :  { %1939 = vmatpush.msrb.mxu0 %v3500_v41  ;;  %1967 = vmatpush.msrb.mxu1 %v3517_v57  ;;  %v3511_v41 = vld [vmem:[%s8656_s0 + $0x1288] sm:$0xff]  ;;  %v3542_v57 = vld [vmem:[%s8656_s0 + $0x1380] sm:$0xff] }
 0x181   :  { %1998 = vmatpush.msrb.mxu2 %v3531_v8  ;;  %2026 = vmatpush.msrb.mxu3 %v3548_v32  ;;  %v6743_v45 = vpop.f32.mrf.mxu1  ;;  %v3510_v8 = vld [vmem:[%s8656_s0 + $0x1280] sm:$0xff]  ;;  %v3573_v32 = vld [vmem:[%s8656_s0 + $0x1478] sm:$0xff] }
 0x182   :  { %1940 = vmatpush.msrb.mxu0 %v3499_v52  ;;  %1968 = vmatpush.msrb.mxu1 %v3516_v35  ;;  %v4034_v52 = vld [vmem:[%s8657_s1 + $0x20] sm:$0xff]  ;;  %v4035_v35 = vld [vmem:[%s8657_s1 + $0x30] sm:$0xff] }
 0x183   :  { %1999 = vmatpush.msrb.mxu2 %v3530_v55  ;;  %2027 = vmatpush.msrb.mxu3 %v3547_v0  ;;  %v3604_v55 = vld [vmem:[%s8656_s0 + $0x1570] sm:$0xff]  ;;  %v3621_v0 = vld [vmem:[%s8656_s0 + $0x15f8] sm:$0xff] }
 0x184   :  { %1941 = vmatpush.msrb.mxu0 %v3498_v56  ;;  %1969 = vmatpush.msrb.mxu1 %v3515_v6  ;;  %v6769_v24 = vpop.f32.mrf.mxu2  ;;  %v3572_v56 = vld [vmem:[%s8656_s0 + $0x1470] sm:$0xff]  ;;  %v3589_v6 = vld [vmem:[%s8656_s0 + $0x14f8] sm:$0xff] }
 0x185   :  { %1839 = vmatmul.f32.gmra.mxu0 %v4030_v30  ;;  %1897 = vmatmul.f32.gmra.mxu2 %v4031_v15  ;;  %v3620_v30 = vld [vmem:[%s8656_s0 + $0x15f0] sm:$0xff]  ;;  %v3571_v15 = vld [vmem:[%s8656_s0 + $0x1468] sm:$0xff] }
 0x186   :  { %2000 = vmatpush.msrb.mxu2 %v3529_v27  ;;  %2028 = vmatpush.msrb.mxu3 %v3546_v28  ;;  %v4036_v28 = vld [vmem:[%s8657_s1 + $0x28] sm:$0xff] }
 0x187   :  { %1942 = vmatpush.msrb.mxu0 %v3497_v49  ;;  %1970 = vmatpush.msrb.mxu1 %v3514_v63  ;;  %v6791_v5 = vpop.f32.mrf.mxu3  ;;  %v4037_v49 = vld [vmem:[%s8657_s1 + $0x38] sm:$0xff]  ;;  %v3603_v63 = vld [vmem:[%s8656_s0 + $0x1568] sm:$0xff] }
 0x188   :  { %1868 = vmatmul.f32.gmra.mxu1 %v4032_v11  ;;  %1926 = vmatmul.f32.gmra.mxu3 %v4033_v31  ;;  %v6789_v25 = vpop.f32.mrf.mxu0  ;;  %v3619_v11 = vld [vmem:[%s8656_s0 + $0x15e8] sm:$0xff]  ;;  %v3570_v31 = vld [vmem:[%s8656_s0 + $0x1460] sm:$0xff] }
 0x189   :  { %2001 = vmatpush.msrb.mxu2 %v3528_v54  ;;  %2029 = vmatpush.msrb.mxu3 %v3545_v21  ;;  %v3588_v54 = vld [vmem:[%s8656_s0 + $0x14f0] sm:$0xff] }
 0x18a   :  { %1943 = vmatpush.msrb.mxu0 %v3496_v1  ;;  %1971 = vmatpush.msrb.mxu1 %v3513_v53  ;;  %v3602_v53 = vld [vmem:[%s8656_s0 + $0x1560] sm:$0xff] }
 0x18b   :  { %2002 = vmatpush.msrb.mxu2 %v3527_v39  ;;  %2030 = vmatpush.msrb.mxu3 %v3544_v12  ;;  %v6811_v36 = vpop.f32.mrf.mxu1  ;;  %v3587_v39 = vld [vmem:[%s8656_s0 + $0x14e8] sm:$0xff]  ;;  %v3601_v12 = vld [vmem:[%s8656_s0 + $0x1558] sm:$0xff] }
 0x18c   :  { %1944 = vmatpush.msrb.mxu0 %v3495_v14  ;;  %1972 = vmatpush.msrb.mxu1 %v3512_v19  ;;  %v3618_v14 = vld [vmem:[%s8656_s0 + $0x15e0] sm:$0xff] }
 0x18d   :  { %2003 = vmatpush.msrb.mxu2 %v3526_v44  ;;  %2031 = vmatpush.msrb.mxu3 %v3543_v9  ;;  %v1106_v44 = vadd.f32 %v6307_v17, %v5719_v59  ;;  %v3569_v9 = vld [vmem:[%s8656_s0 + $0x1458] sm:$0xff]  ;;  %v3600_v17 = vld [vmem:[%s8656_s0 + $0x1550] sm:$0xff] }
 0x18e   :  { %1945 = vmatpush.msrb.mxu0 %v3494_v4  ;;  %1973 = vmatpush.msrb.mxu1 %v3511_v41  ;;  %v6837_v27 = vpop.f32.mrf.mxu2  ;;  %v3586_v4 = vld [vmem:[%s8656_s0 + $0x14e0] sm:$0xff] }
 0x18f   :  { %1946 = vmatmul.f32.vlgmr.msrb.gmra.mxu0 %v4034_v52  ;;  %2004 = vmatmul.f32.vlgmr.msrb.gmra.mxu2 %v4035_v35  ;;  %v4038_v41 = vld [vmem:[%s8657_s1 + $0xa0] sm:$0xff]  ;;  %v1135_v35 = vadd.f32 %v6331_v40, %v1106_v44  ;;  %v3567_v40 = vld [vmem:[%s8656_s0 + $0x1448] sm:$0xff] }
 0x190   :  { %2032 = vmatpush.msrb.mxu3 %v3542_v57  ;;  %2104 = vmatpush.msra.mxu2 %v3605_v37  ;;  %v4039_v57 = vld [vmem:[%s8657_s1 + $0xb0] sm:$0xff]  ;;  %v3617_v37 = vld [vmem:[%s8656_s0 + $0x15d8] sm:$0xff]  ;;  %v3582_v44 = vld [vmem:[%s8656_s0 + $0x14c0] sm:$0xff] }
 0x191   :  { %1974 = vmatpush.msrb.mxu1 %v3510_v8  ;;  %2046 = vmatpush.msra.mxu0 %v3573_v32  ;;  %v6857_v21 = vpop.f32.mrf.mxu3  ;;  %v3568_v8 = vld [vmem:[%s8656_s0 + $0x1450] sm:$0xff]  ;;  %v3585_v32 = vld [vmem:[%s8656_s0 + $0x14d8] sm:$0xff] }
 0x192   :  { %1975 = vmatmul.f32.vlgmr.msrb.gmra.mxu1 %v4036_v28  ;;  %2033 = vmatmul.f32.vlgmr.msrb.gmra.mxu3 %v4037_v49  ;;  %v6859_v1 = vpop.f32.mrf.mxu0  ;;  %v3584_v28 = vld [vmem:[%s8656_s0 + $0x14d0] sm:$0xff] }
 0x193   :  { %2105 = vmatpush.msra.mxu2 %v3604_v55  ;;  %2133 = vmatpush.msra.mxu3 %v3621_v0  ;;  %v4040_v55 = vld [vmem:[%s8657_s1 + $0xa8] sm:$0xff]  ;;  %v4041_v0 = vld [vmem:[%s8657_s1 + $0xb8] sm:$0xff] }
 0x194   :  { %2047 = vmatpush.msra.mxu0 %v3572_v56  ;;  %2075 = vmatpush.msra.mxu1 %v3589_v6  ;;  %v3599_v56 = vld [vmem:[%s8656_s0 + $0x1548] sm:$0xff]  ;;  %v3616_v6 = vld [vmem:[%s8656_s0 + $0x15d0] sm:$0xff] }
 0x195   :  { %2106 = vmatpush.msra.mxu2 %v3603_v63  ;;  %2134 = vmatpush.msra.mxu3 %v3620_v30  ;;  %v6879_v19 = vpop.f32.mrf.mxu1  ;;  %v3598_v30 = vld [vmem:[%s8656_s0 + $0x1540] sm:$0xff] }
 0x196   :  { %2048 = vmatpush.msra.mxu0 %v3571_v15  ;;  %2076 = vmatpush.msra.mxu1 %v3588_v54  ;;  %v3615_v15 = vld [vmem:[%s8656_s0 + $0x15c8] sm:$0xff]  ;;  %v3566_v54 = vld [vmem:[%s8656_s0 + $0x1440] sm:$0xff] }
 0x197   :  { %2107 = vmatpush.msra.mxu2 %v3602_v53  ;;  %2135 = vmatpush.msra.mxu3 %v3619_v11  ;;  %v3583_v53 = vld [vmem:[%s8656_s0 + $0x14c8] sm:$0xff]  ;;  %v1164_v11 = vadd.f32 %v6363_v13, %v1135_v35  ;;  %v3565_v13 = vld [vmem:[%s8656_s0 + $0x1438] sm:$0xff] }
 0x198   :  { %2049 = vmatpush.msra.mxu0 %v3570_v31  ;;  %2077 = vmatpush.msra.mxu1 %v3587_v39  ;;  %v6907_v52 = vpop.f32.mrf.mxu2  ;;  %v3597_v31 = vld [vmem:[%s8656_s0 + $0x1538] sm:$0xff]  ;;  %v3614_v39 = vld [vmem:[%s8656_s0 + $0x15c0] sm:$0xff]  ;;  %v4044_v35 = vld [vmem:[%s8657_s1 + $0x128] sm:$0xff] }
 0x199   :  { %1949 = vmatmul.f32.gmra.mxu0 %v4038_v41  ;;  %2007 = vmatmul.f32.gmra.mxu2 %v4039_v57  ;;  %v3596_v41 = vld [vmem:[%s8656_s0 + $0x1530] sm:$0xff]  ;;  %v3613_v57 = vld [vmem:[%s8656_s0 + $0x15b8] sm:$0xff] }
 0x19a   :  { %2108 = vmatpush.msra.mxu2 %v3601_v12  ;;  %2136 = vmatpush.msra.mxu3 %v3618_v14  ;;  %v1109_v14 = vadd.f32 %v6377_v29, %v5792_v47  ;;  %v1193_v29 = vadd.f32 %v6379_v50, %v1164_v11  ;;  %v3581_v50 = vld [vmem:[%s8656_s0 + $0x14b8] sm:$0xff] }
 0x19b   :  { %2050 = vmatpush.msra.mxu0 %v3569_v9  ;;  %2078 = vmatpush.msra.mxu1 %v3586_v4  ;;  %v6930_v63 = vpop.f32.mrf.mxu3  ;;  %v4042_v9 = vld [vmem:[%s8657_s1 + $0x120] sm:$0xff]  ;;  %v4043_v4 = vld [vmem:[%s8657_s1 + $0x130] sm:$0xff] }
 0x19c   :  { %1978 = vmatmul.f32.gmra.mxu1 %v4040_v55  ;;  %2036 = vmatmul.f32.gmra.mxu3 %v4041_v0  ;;  %v6928_v49 = vpop.f32.mrf.mxu0  ;;  %v4045_v55 = vld [vmem:[%s8657_s1 + $0x138] sm:$0xff]  ;;  %v3595_v0 = vld [vmem:[%s8656_s0 + $0x1528] sm:$0xff] }
 0x19d   :  { %2109 = vmatpush.msra.mxu2 %v3600_v17  ;;  %2137 = vmatpush.msra.mxu3 %v3617_v37  ;;  %v3564_v17 = vld [vmem:[%s8656_s0 + $0x1430] sm:$0xff] }
 0x19e   :  { %2051 = vmatpush.msra.mxu0 %v3568_v8  ;;  %2079 = vmatpush.msra.mxu1 %v3585_v32  ;;  %v1138_v8 = vadd.f32 %v6403_v20, %v1109_v14  ;;  %v1222_v32 = vadd.f32 %v6586_v43, %v1193_v29  ;;  %v3612_v20 = vld [vmem:[%s8656_s0 + $0x15b0] sm:$0xff]  ;;  %v3563_v43 = vld [vmem:[%s8656_s0 + $0x1428] sm:$0xff] }
 0x19f   :  { %2110 = vmatpush.msra.mxu2 %v3599_v56  ;;  %2138 = vmatpush.msra.mxu3 %v3616_v6  ;;  %v6951_v12 = vpop.f32.mrf.mxu1  ;;  %v3580_v56 = vld [vmem:[%s8656_s0 + $0x14b0] sm:$0xff] }
 0x1a0   :  { %2052 = vmatpush.msra.mxu0 %v3567_v40  ;;  %2080 = vmatpush.msra.mxu1 %v3584_v28  ;;  %v3594_v28 = vld [vmem:[%s8656_s0 + $0x1520] sm:$0xff]  ;;  %v1251_v11 = vadd.f32 %v6609_v42, %v1222_v32  ;;  %v3592_v29 = vld [vmem:[%s8656_s0 + $0x1510] sm:$0xff]  ;;  %v4049_v32 = vld [vmem:[%s8657_s1 + $0x1b8] sm:$0x7f] }
 0x1a1   :  { %2111 = vmatpush.msra.mxu2 %v3598_v30  ;;  %2139 = vmatpush.msra.mxu3 %v3615_v15  ;;  %v3611_v30 = vld [vmem:[%s8656_s0 + $0x15a8] sm:$0xff]  ;;  %v3562_v15 = vld [vmem:[%s8656_s0 + $0x1420] sm:$0xff] }
 0x1a2   :  { %2053 = vmatpush.msra.mxu0 %v3566_v54  ;;  %2081 = vmatpush.msra.mxu1 %v3583_v53  ;;  %v6980_v37 = vpop.f32.mrf.mxu2  ;;  %v3579_v54 = vld [vmem:[%s8656_s0 + $0x14a8] sm:$0xff]  ;;  %v1167_v53 = vadd.f32 %v6432_v23, %v1138_v8  ;;  %v3561_v23 = vld [vmem:[%s8656_s0 + $0x1418] sm:$0xff]  ;;  %v3578_v42 = vld [vmem:[%s8656_s0 + $0x14a0] sm:$0xff] }
 0x1a3   :  { %1952 = vmatmul.f32.gmra.mxu0 %v4042_v9  ;;  %2010 = vmatmul.f32.gmra.mxu2 %v4043_v4  ;;  %v4046_v9 = vld [vmem:[%s8657_s1 + $0x1a0] sm:$0x7f]  ;;  %v4048_v8 = vld [vmem:[%s8657_s1 + $0x1a8] sm:$0x7f] }
 0x1a4   :  { %2112 = vmatpush.msra.mxu2 %v3597_v31  ;;  %2140 = vmatpush.msra.mxu3 %v3614_v39  ;;  %v3593_v31 = vld [vmem:[%s8656_s0 + $0x1518] sm:$0xff]  ;;  %v3610_v39 = vld [vmem:[%s8656_s0 + $0x15a0] sm:$0xff]  ;;  %v1196_v4 = vadd.f32 %v6448_v58, %v1167_v53 }
 0x1a5   :  { %2054 = vmatpush.msra.mxu0 %v3565_v13  ;;  %2082 = vmatpush.msra.mxu1 %v3582_v44  ;;  %v7004_v40 = vpop.f32.mrf.mxu3  ;;  %v1280_v13 = vadd.f32 %v6633_v16, %v1251_v11  ;;  %v1112_v44 = vadd.f32 %v6446_v33, %v5875_v48  ;;  %v4047_v16 = vld [vmem:[%s8657_s1 + $0x1b0] sm:$0x7f]  ;;  %v3609_v33 = vld [vmem:[%s8656_s0 + $0x1598] sm:$0xff]  ;;  %v3606_v53 = vld [vmem:[%s8656_s0 + $0x1580] sm:$0xff] }
 0x1a6   :  { %1981 = vmatmul.f32.gmra.mxu1 %v4044_v35  ;;  %2039 = vmatmul.f32.gmra.mxu3 %v4045_v55  ;;  %v7002_v6 = vpop.f32.mrf.mxu0  ;;  %v3577_v58 = vld [vmem:[%s8656_s0 + $0x1498] sm:$0xff]  ;;  %v3591_v35 = vld [vmem:[%s8656_s0 + $0x1508] sm:$0xff] }
 0x1a7   :  { %2113 = vmatpush.msra.mxu2 %v3596_v41  ;;  %2141 = vmatpush.msra.mxu3 %v3613_v57  ;;  %v3560_v41 = vld [vmem:[%s8656_s0 + $0x1410] sm:$0xff]  ;;  %v3559_v55 = vld [vmem:[%s8656_s0 + $0x1408] sm:$0xff]  ;;  %v3669_v11 = vld [vmem:[%s8656_s0 + $0x1778] sm:$0xff] }
 0x1a8   :  { %2055 = vmatpush.msra.mxu0 %v3564_v17  ;;  %2083 = vmatpush.msra.mxu1 %v3581_v50  ;;  %v1225_v17 = vadd.f32 %v6653_v7, %v1196_v4  ;;  %v1309_v50 = vadd.f32 %v6655_v18, %v1280_v13  ;;  %v3608_v7 = vld [vmem:[%s8656_s0 + $0x1590] sm:$0xff]  ;;  %v1141_v18 = vadd.f32 %v6472_v51, %v1112_v44  ;;  %v3590_v51 = vld [vmem:[%s8656_s0 + $0x1500] sm:$0xff]  ;;  %v3637_v13 = vld [vmem:[%s8656_s0 + $0x1678] sm:$0xff] }
 0x1a9   :  { %2114 = vmatpush.msra.mxu2 %v3595_v0  ;;  %2142 = vmatpush.msra.mxu3 %v3612_v20  ;;  %v7026_v14 = vpop.f32.mrf.mxu1  ;;  %v3576_v0 = vld [vmem:[%s8656_s0 + $0x1490] sm:$0xff]  ;;  %v3653_v4 = vld [vmem:[%s8656_s0 + $0x16f8] sm:$0xff] }
 0x1aa   :  { %2056 = vmatpush.msra.mxu0 %v3563_v43  ;;  %2084 = vmatpush.msra.mxu1 %v3580_v56  ;;  %v1338_v56 = vadd.f32 %v6859_v1, %v1309_v50  ;;  %v1254_v1 = vadd.f32 %v6675_v26, %v1225_v17  ;;  %v3635_v50 = vld [vmem:[%s8656_s0 + $0x1668] sm:$0xff] }
 0x1ab   :  { %2115 = vmatpush.msra.mxu2 %v3594_v28  ;;  %2143 = vmatpush.msra.mxu3 %v3611_v30  ;;  %v3607_v28 = vld [vmem:[%s8656_s0 + $0x1588] sm:$0xff]  ;;  %v3558_v30 = vld [vmem:[%s8656_s0 + $0x1400] sm:$0xff] }
 0x1ac   :  { %2057 = vmatpush.msra.mxu0 %v3562_v15  ;;  %2085 = vmatpush.msra.mxu1 %v3579_v54  ;;  %v7056_v57 = vpop.f32.mrf.mxu2  ;;  %v3575_v15 = vld [vmem:[%s8656_s0 + $0x1488] sm:$0xff]  ;;  %v1170_v54 = vadd.f32 %v6501_v3, %v1141_v18  ;;  %v1367_v26 = vadd.f32 %v6879_v19, %v1338_v56  ;;  %v3574_v3 = vld [vmem:[%s8656_s0 + $0x1480] sm:$0xff]  ;;  %v3668_v19 = vld [vmem:[%s8656_s0 + $0x1770] sm:$0xff] }
 0x1ad   :  { %1955 = vmatmul.f32.gmra.mxu0 %v4046_v9  ;;  %2013 = vmatmul.f32.gmra.mxu2 %v4047_v16  ;;  %v3636_v16 = vld [vmem:[%s8656_s0 + $0x1670] sm:$0xff]  ;;  %v3683_v18 = vld [vmem:[%s8656_s0 + $0x17e8] sm:$0xff] }
 0x1ae   :  { %2116 = vmatpush.msra.mxu2 %v3593_v31  ;;  %2144 = vmatpush.msra.mxu3 %v3610_v39  ;;  %v1283_v39 = vadd.f32 %v6701_v46, %v1254_v1  ;;  %v4051_v46 = vld [vmem:[%s8657_s1 + $0x50] sm:$0xff]  ;;  %v1396_v44 = vadd.f32 %v6907_v52, %v1367_v26  ;;  %v1199_v9 = vadd.f32 %v6517_v2, %v1170_v54  ;;  %v4052_v52 = vld [vmem:[%s8657_s1 + $0x48] sm:$0xff]  ;;  %v4053_v2 = vld [vmem:[%s8657_s1 + $0x58] sm:$0xff] }
 0x1af   :  { %2058 = vmatpush.msra.mxu0 %v3561_v23  ;;  %2086 = vmatpush.msra.mxu1 %v3578_v42  ;;  %v7081_v43 = vpop.f32.mrf.mxu3  ;;  %v1115_v23 = vadd.f32 %v6515_v61, %v5954_v34  ;;  %v4050_v42 = vld [vmem:[%s8657_s1 + $0x40] sm:$0xff]  ;;  %v3685_v61 = vld [vmem:[%s8656_s0 + $0x17f8] sm:$0xff] }
 0x1b0   :  { %1984 = vmatmul.f32.gmra.mxu1 %v4048_v8  ;;  %2042 = vmatmul.f32.gmra.mxu3 %v4049_v32  ;;  %v7079_v20 = vpop.f32.mrf.mxu0  ;;  %v1228_v17 = vadd.f32 %v6721_v38, %v1199_v9  ;;  %v3652_v8 = vld [vmem:[%s8656_s0 + $0x16f0] sm:$0xff]  ;;  %v3666_v38 = vld [vmem:[%s8656_s0 + $0x1760] sm:$0xff]  ;;  %v3631_v9 = vld [vmem:[%s8656_s0 + $0x1648] sm:$0xff] }
 0x1b1   :  { %2117 = vmatpush.msra.mxu2 %v3592_v29  ;;  %2145 = vmatpush.msra.mxu3 %v3609_v33  ;;  %v1312_v33 = vadd.f32 %v6723_v62, %v1283_v39  ;;  %v1144_v62 = vadd.f32 %v6540_v10, %v1115_v23  ;;  %v1425_v10 = vadd.f32 %v6930_v63, %v1396_v44  ;;  %v4054_v54 = vld [vmem:[%s8657_s1 + $0xc0] sm:$0xff] }
 0x1b2   :  { %2059 = vmatpush.msra.mxu0 %v3560_v41  ;;  %2087 = vmatpush.msra.mxu1 %v3577_v58  ;;  %v3667_v41 = vld [vmem:[%s8656_s0 + $0x1768] sm:$0xff]  ;;  %v3684_v58 = vld [vmem:[%s8656_s0 + $0x17f0] sm:$0xff]  ;;  %v1257_v56 = vadd.f32 %v6743_v45, %v1228_v17  ;;  %v3650_v45 = vld [vmem:[%s8656_s0 + $0x16e0] sm:$0xff] }
 0x1b3   :  { %2118 = vmatpush.msra.mxu2 %v3591_v35  ;;  %2146 = vmatpush.msra.mxu3 %v3608_v7  ;;  %v7104_v31 = vpop.f32.mrf.mxu1  ;;  %v1341_v7 = vadd.f32 %v6928_v49, %v1312_v33  ;;  %v3651_v49 = vld [vmem:[%s8656_s0 + $0x16e8] sm:$0xff] }
 0x1b4   :  { %2060 = vmatpush.msra.mxu0 %v3559_v55  ;;  %2088 = vmatpush.msra.mxu1 %v3576_v0  ;;  %v3634_v55 = vld [vmem:[%s8656_s0 + $0x1660] sm:$0xff]  ;;  %v1173_v0 = vadd.f32 %v6567_v22, %v1144_v62  ;;  %v3633_v22 = vld [vmem:[%s8656_s0 + $0x1658] sm:$0xff]  ;;  %v1286_v1 = vadd.f32 %v6769_v24, %v1257_v56 }
 0x1b5   :  { %2119 = vmatpush.msra.mxu2 %v3590_v51  ;;  %2147 = vmatpush.msra.mxu3 %v3607_v28  ;;  %v3665_v51 = vld [vmem:[%s8656_s0 + $0x1758] sm:$0xff]  ;;  %v3682_v28 = vld [vmem:[%s8656_s0 + $0x17e0] sm:$0xff] }
 0x1b6   :  { %2061 = vmatpush.msra.mxu0 %v3558_v30  ;;  %2089 = vmatpush.msra.mxu1 %v3575_v15  ;;  %v7136_v29 = vpop.f32.mrf.mxu2  ;;  %v1370_v15 = vadd.f32 %v6951_v12, %v1341_v7  ;;  %v4055_v12 = vld [vmem:[%s8657_s1 + $0xd0] sm:$0xff]  ;;  %v3681_v24 = vld [vmem:[%s8656_s0 + $0x17d8] sm:$0xff]  ;;  %v1202_v26 = vadd.f32 %v6584_v60, %v1173_v0  ;;  %v1315_v44 = vadd.f32 %v6791_v5, %v1286_v1  ;;  %v3679_v5 = vld [vmem:[%s8656_s0 + $0x17c8] sm:$0xff] }
 0x1b7   :  { %2062 = vmatmul.f32.vlgmr.msra.gmra.mxu0 %v4050_v42  ;;  %2120 = vmatmul.f32.vlgmr.msra.gmra.mxu2 %v4051_v46  ;;  %v4056_v42 = vld [vmem:[%s8657_s1 + $0xc8] sm:$0xff]  ;;  %v4057_v60 = vld [vmem:[%s8657_s1 + $0xd8] sm:$0xff]  ;;  %v3680_v46 = vld [vmem:[%s8656_s0 + $0x17d0] sm:$0xff] }
 0x1b8   :  { %2148 = vmatpush.msra.mxu3 %v3606_v53  ;;  %2220 = vmatpush.msrb.mxu2 %v3669_v11  ;;  %v3664_v53 = vld [vmem:[%s8656_s0 + $0x1750] sm:$0xff]  ;;  %v1399_v11 = vadd.f32 %v6980_v37, %v1370_v15  ;;  %v3663_v37 = vld [vmem:[%s8656_s0 + $0x1748] sm:$0xff]  ;;  %v3645_v0 = vld [vmem:[%s8656_s0 + $0x16b8] sm:$0xff] }
 0x1b9   :  { %2090 = vmatpush.msra.mxu1 %v3574_v3  ;;  %2162 = vmatpush.msrb.mxu0 %v3637_v13  ;;  %v7159_v32 = vpop.f32.mrf.mxu3  ;;  %v3632_v3 = vld [vmem:[%s8656_s0 + $0x1650] sm:$0xff]  ;;  %v3649_v13 = vld [vmem:[%s8656_s0 + $0x16d8] sm:$0xff] }
 0x1ba   :  { %2091 = vmatmul.f32.vlgmr.msra.gmra.mxu1 %v4052_v52  ;;  %2149 = vmatmul.f32.vlgmr.msra.gmra.mxu3 %v4053_v2  ;;  %v1453_v35 = vpop.f32.mrf.mxu0  ;;  %v1428_v52 = vadd.f32 %v7004_v40, %v1399_v11  ;;  %v3647_v40 = vld [vmem:[%s8656_s0 + $0x16c8] sm:$0xff]  ;;  %v3644_v1 = vld [vmem:[%s8656_s0 + $0x16b0] sm:$0xff] }
 0x1bb   :  { %2221 = vmatpush.msrb.mxu2 %v3668_v19  ;;  %2249 = vmatpush.msrb.mxu3 %v3685_v61  ;;  %v1454_v63 = vadd.f32 %v1453_v35, %v1425_v10  ;;  %v1231_v61 = vadd.f32 %v6789_v25, %v1202_v26  ;;  %v3662_v25 = vld [vmem:[%s8656_s0 + $0x1740] sm:$0xff]  ;;  %v3629_v35 = vld [vmem:[%s8656_s0 + $0x1638] sm:$0xff] }
 0x1bc   :  { %2163 = vmatpush.msrb.mxu0 %v3636_v16  ;;  %2191 = vmatpush.msrb.mxu1 %v3653_v4  ;;  %v3648_v16 = vld [vmem:[%s8656_s0 + $0x16d0] sm:$0xff]  ;;  %v3626_v26 = vld [vmem:[%s8656_s0 + $0x1620] sm:$0xff] }
 0x1bd   :  { %2222 = vmatpush.msrb.mxu2 %v3667_v41  ;;  %2250 = vmatpush.msrb.mxu3 %v3684_v58  ;;  %v1482_v30 = vpop.f32.mrf.mxu1  ;;  %v1344_v41 = vadd.f32 %v7002_v6, %v1315_v44  ;;  %v3630_v58 = vld [vmem:[%s8656_s0 + $0x1640] sm:$0xff]  ;;  %v1260_v17 = vadd.f32 %v6811_v36, %v1231_v61  ;;  %v3661_v6 = vld [vmem:[%s8656_s0 + $0x1738] sm:$0xff]  ;;  %v3656_v61 = vld [vmem:[%s8656_s0 + $0x1710] sm:$0xff] }
 0x1be   :  { %2164 = vmatpush.msrb.mxu0 %v3635_v50  ;;  %2192 = vmatpush.msrb.mxu1 %v3652_v8  ;;  %v1483_v39 = vadd.f32 %v1482_v30, %v1454_v63  ;;  %v3678_v50 = vld [vmem:[%s8656_s0 + $0x17c0] sm:$0xff]  ;;  %v3628_v63 = vld [vmem:[%s8656_s0 + $0x1630] sm:$0xff] }
 0x1bf   :  { %2223 = vmatpush.msrb.mxu2 %v3666_v38  ;;  %2251 = vmatpush.msrb.mxu3 %v3683_v18  ;;  %v3646_v36 = vld [vmem:[%s8656_s0 + $0x16c0] sm:$0xff]  ;;  %v1289_v7 = vadd.f32 %v6837_v27, %v1260_v17  ;;  %v1373_v10 = vadd.f32 %v7026_v14, %v1344_v41  ;;  %v4059_v18 = vld [vmem:[%s8657_s1 + $0x150] sm:$0xff]  ;;  %v3677_v27 = vld [vmem:[%s8656_s0 + $0x17b8] sm:$0xff] }
 0x1c0   :  { %2165 = vmatpush.msrb.mxu0 %v3634_v55  ;;  %2193 = vmatpush.msrb.mxu1 %v3651_v49  ;;  %v1511_v23 = vpop.f32.mrf.mxu2  ;;  %v4058_v38 = vld [vmem:[%s8657_s1 + $0x140] sm:$0xff]  ;;  %v3660_v55 = vld [vmem:[%s8656_s0 + $0x1730] sm:$0xff] }
 0x1c1   :  { %2065 = vmatmul.f32.gmra.mxu0 %v4054_v54  ;;  %2123 = vmatmul.f32.gmra.mxu2 %v4055_v12  ;;  %v1512_v19 = vadd.f32 %v1511_v23, %v1483_v39  ;;  %v1402_v49 = vadd.f32 %v7056_v57, %v1373_v10  ;;  %v3659_v57 = vld [vmem:[%s8656_s0 + $0x1728] sm:$0xff]  ;;  %v3676_v30 = vld [vmem:[%s8656_s0 + $0x17b0] sm:$0xff]  ;;  %v3658_v12 = vld [vmem:[%s8656_s0 + $0x1720] sm:$0xff] }
 0x1c2   :  { %2224 = vmatpush.msrb.mxu2 %v3665_v51  ;;  %2252 = vmatpush.msrb.mxu3 %v3682_v28  ;;  %v4060_v51 = vld [vmem:[%s8657_s1 + $0x148] sm:$0xff]  ;;  %v4061_v28 = vld [vmem:[%s8657_s1 + $0x158] sm:$0xff]  ;;  %v3640_v41 = vld [vmem:[%s8656_s0 + $0x1690] sm:$0xff] }
 0x1c3   :  { %2166 = vmatpush.msrb.mxu0 %v3633_v22  ;;  %2194 = vmatpush.msrb.mxu1 %v3650_v45  ;;  %v1540_v33 = vpop.f32.mrf.mxu3  ;;  %v1318_v22 = vadd.f32 %v6857_v21, %v1289_v7  ;;  %v3627_v45 = vld [vmem:[%s8656_s0 + $0x1628] sm:$0xff]  ;;  %v1431_v39 = vadd.f32 %v7081_v43, %v1402_v49  ;;  %v3674_v43 = vld [vmem:[%s8656_s0 + $0x17a0] sm:$0xff]  ;;  %v3736_v49 = vld [vmem:[%s8656_s0 + $0x1970] sm:$0xff] }
 0x1c4   :  { %2094 = vmatmul.f32.gmra.mxu1 %v4056_v42  ;;  %2152 = vmatmul.f32.gmra.mxu3 %v4057_v60  ;;  %v1456_v4 = vpop.f32.mrf.mxu0  ;;  %v1541_v2 = vadd.f32 %v1540_v33, %v1512_v19  ;;  %v3675_v21 = vld [vmem:[%s8656_s0 + $0x17a8] sm:$0xff]  ;;  %v3625_v42 = vld [vmem:[%s8656_s0 + $0x1618] sm:$0xff]  ;;  %v3642_v60 = vld [vmem:[%s8656_s0 + $0x16a0] sm:$0xff] }
 0x1c5   :  { %2225 = vmatpush.msrb.mxu2 %v3664_v53  ;;  %2253 = vmatpush.msrb.mxu3 %v3681_v24  ;;  %v1457_v62 = vadd.f32 %v1456_v4, %v1428_v52  ;;  %v1347_v11 = vadd.f32 %v7079_v20, %v1318_v22  ;;  %v3657_v20 = vld [vmem:[%s8656_s0 + $0x1718] sm:$0xff]  ;;  %v4063_v19 = vld [vmem:[%s8657_s1 + $0x1d0] sm:$0x7f]  ;;  %v4064_v33 = vld [vmem:[%s8657_s1 + $0x1c8] sm:$0x7f] }
 0x1c6   :  { %2167 = vmatpush.msrb.mxu0 %v3632_v3  ;;  %2195 = vmatpush.msrb.mxu1 %v3649_v13  ;;  %3426 = vst.msk [vmem:[%s8659_s3 + $0x20] sm:$0xff] %vm825_vm0, %v1541_v2  ;;  %v3643_v3 = vld [vmem:[%s8656_s0 + $0x16a8] sm:$0xff]  ;;  %v4065_v52 = vld [vmem:[%s8657_s1 + $0x1d8] sm:$0x7f]  ;;  %v3670_v7 = vld [vmem:[%s8656_s0 + $0x1780] sm:$0xff] }
 0x1c7   :  { %2226 = vmatpush.msrb.mxu2 %v3663_v37  ;;  %2254 = vmatpush.msrb.mxu3 %v3680_v46  ;;  %v1485_v8 = vpop.f32.mrf.mxu1  ;;  %v1376_v37 = vadd.f32 %v7104_v31, %v1347_v11  ;;  %v4062_v46 = vld [vmem:[%s8657_s1 + $0x1c0] sm:$0x7f]  ;;  %v3673_v31 = vld [vmem:[%s8656_s0 + $0x1798] sm:$0xff]  ;;  %v3623_v2 = vld [vmem:[%s8656_s0 + $0x1608] sm:$0xff] }
 0x1c8   :  { %2168 = vmatpush.msrb.mxu0 %v3631_v9  ;;  %2196 = vmatpush.msrb.mxu1 %v3648_v16  ;;  %v1486_v14 = vadd.f32 %v1485_v8, %v1457_v62  ;;  %v3624_v9 = vld [vmem:[%s8656_s0 + $0x1610] sm:$0xff]  ;;  %v3641_v16 = vld [vmem:[%s8656_s0 + $0x1698] sm:$0xff]  ;;  %v3671_v62 = vld [vmem:[%s8656_s0 + $0x1788] sm:$0xff] }
 0x1c9   :  { %2227 = vmatpush.msrb.mxu2 %v3662_v25  ;;  %2255 = vmatpush.msrb.mxu3 %v3679_v5  ;;  %v1405_v44 = vadd.f32 %v7136_v29, %v1376_v37  ;;  %v3655_v29 = vld [vmem:[%s8656_s0 + $0x1708] sm:$0xff]  ;;  %v3672_v25 = vld [vmem:[%s8656_s0 + $0x1790] sm:$0xff]  ;;  %v3622_v8 = vld [vmem:[%s8656_s0 + $0x1600] sm:$0xff] }
 0x1ca   :  { %2169 = vmatpush.msrb.mxu0 %v3630_v58  ;;  %2197 = vmatpush.msrb.mxu1 %v3647_v40  ;;  %v1514_v56 = vpop.f32.mrf.mxu2  ;;  %v3654_v40 = vld [vmem:[%s8656_s0 + $0x1700] sm:$0xff]  ;;  %v3719_v11 = vld [vmem:[%s8656_s0 + $0x18e8] sm:$0xff]  ;;  %v3732_v37 = vld [vmem:[%s8656_s0 + $0x1950] sm:$0xff] }
 0x1cb   :  { %2068 = vmatmul.f32.gmra.mxu0 %v4058_v38  ;;  %2126 = vmatmul.f32.gmra.mxu2 %v4059_v18  ;;  %v1515_v15 = vadd.f32 %v1514_v56, %v1486_v14  ;;  %v3638_v18 = vld [vmem:[%s8656_s0 + $0x1680] sm:$0xff]  ;;  %v4067_v14 = vld [vmem:[%s8657_s1 + $0x70] sm:$0xff]  ;;  %v3721_v56 = vld [vmem:[%s8656_s0 + $0x18f8] sm:$0xff] }
 0x1cc   :  { %2228 = vmatpush.msrb.mxu2 %v3661_v6  ;;  %2256 = vmatpush.msrb.mxu3 %v3678_v50  ;;  %v1434_v50 = vadd.f32 %v7159_v32, %v1405_v44  ;;  %v3737_v32 = vld [vmem:[%s8656_s0 + $0x1978] sm:$0xff] }
 0x1cd   :  { %2170 = vmatpush.msrb.mxu0 %v3629_v35  ;;  %2198 = vmatpush.msrb.mxu1 %v3646_v36  ;;  %v1543_v54 = vpop.f32.mrf.mxu3  ;;  %v3639_v35 = vld [vmem:[%s8656_s0 + $0x1688] sm:$0xff]  ;;  %v4073_v44 = vld [vmem:[%s8657_s1 + $0xf8] sm:$0xff] }
 0x1ce   :  { %2097 = vmatmul.f32.gmra.mxu1 %v4060_v51  ;;  %2155 = vmatmul.f32.gmra.mxu3 %v4061_v28  ;;  %v1459_v53 = vpop.f32.mrf.mxu0  ;;  %v1544_v24 = vadd.f32 %v1543_v54, %v1515_v15  ;;  %v4068_v28 = vld [vmem:[%s8657_s1 + $0x68] sm:$0xff]  ;;  %v3752_v15 = vld [vmem:[%s8656_s0 + $0x19f0] sm:$0xff] }
 0x1cf   :  { %2229 = vmatpush.msrb.mxu2 %v3660_v55  ;;  %2257 = vmatpush.msrb.mxu3 %v3677_v27  ;;  %v1460_v13 = vadd.f32 %v1459_v53, %v1431_v39  ;;  %v3705_v55 = vld [vmem:[%s8656_s0 + $0x1878] sm:$0xff]  ;;  %v4066_v27 = vld [vmem:[%s8657_s1 + $0x60] sm:$0xff] }
 0x1d0   :  { %2171 = vmatpush.msrb.mxu0 %v3628_v63  ;;  %2199 = vmatpush.msrb.mxu1 %v3645_v0  ;;  %3427 = vst.msk [vmem:[%s8659_s3 + $0x28] sm:$0xff] %vm825_vm0, %v1544_v24  ;;  %v3753_v63 = vld [vmem:[%s8656_s0 + $0x19f8] sm:$0xff]  ;;  %v3704_v0 = vld [vmem:[%s8656_s0 + $0x1870] sm:$0xff]  ;;  %v3702_v24 = vld [vmem:[%s8656_s0 + $0x1860] sm:$0xff] }
 0x1d1   :  { %2230 = vmatpush.msrb.mxu2 %v3659_v57  ;;  %2258 = vmatpush.msrb.mxu3 %v3676_v30  ;;  %v1488_v23 = vpop.f32.mrf.mxu1  ;;  %v4069_v57 = vld [vmem:[%s8657_s1 + $0x78] sm:$0xff]  ;;  %v3735_v30 = vld [vmem:[%s8656_s0 + $0x1968] sm:$0xff] }
 0x1d2   :  { %2172 = vmatpush.msrb.mxu0 %v3627_v45  ;;  %2200 = vmatpush.msrb.mxu1 %v3644_v1  ;;  %v1489_v4 = vadd.f32 %v1488_v23, %v1460_v13  ;;  %v3703_v45 = vld [vmem:[%s8656_s0 + $0x1868] sm:$0xff]  ;;  %v3720_v1 = vld [vmem:[%s8656_s0 + $0x18f0] sm:$0xff]  ;;  %v3701_v13 = vld [vmem:[%s8656_s0 + $0x1858] sm:$0xff] }
 0x1d3   :  { %2231 = vmatpush.msrb.mxu2 %v3658_v12  ;;  %2259 = vmatpush.msrb.mxu3 %v3675_v21  ;;  %v3734_v12 = vld [vmem:[%s8656_s0 + $0x1960] sm:$0xff]  ;;  %v3751_v21 = vld [vmem:[%s8656_s0 + $0x19e8] sm:$0xff] }
 0x1d4   :  { %2173 = vmatpush.msrb.mxu0 %v3626_v26  ;;  %2201 = vmatpush.msrb.mxu1 %v3643_v3  ;;  %v1517_v5 = vpop.f32.mrf.mxu2  ;;  %v3733_v3 = vld [vmem:[%s8656_s0 + $0x1958] sm:$0xff]  ;;  %v3718_v23 = vld [vmem:[%s8656_s0 + $0x18e0] sm:$0xff] }
 0x1d5   :  { %2071 = vmatmul.f32.gmra.mxu0 %v4062_v46  ;;  %2129 = vmatmul.f32.gmra.mxu2 %v4063_v19  ;;  %v1518_v58 = vadd.f32 %v1517_v5, %v1489_v4  ;;  %v3749_v46 = vld [vmem:[%s8656_s0 + $0x19d8] sm:$0xff]  ;;  %v3700_v19 = vld [vmem:[%s8656_s0 + $0x1850] sm:$0xff]  ;;  %v3699_v4 = vld [vmem:[%s8656_s0 + $0x1848] sm:$0xff] }
 0x1d6   :  { %2232 = vmatpush.msrb.mxu2 %v3657_v20  ;;  %2260 = vmatpush.msrb.mxu3 %v3674_v43  ;;  %v3750_v20 = vld [vmem:[%s8656_s0 + $0x19e0] sm:$0xff] }
 0x1d7   :  { %2174 = vmatpush.msrb.mxu0 %v3625_v42  ;;  %2202 = vmatpush.msrb.mxu1 %v3642_v60  ;;  %v4070_v42 = vld [vmem:[%s8657_s1 + $0xe0] sm:$0xff]  ;;  %v4071_v60 = vld [vmem:[%s8657_s1 + $0xf0] sm:$0xff] }
 0x1d8   :  { %2100 = vmatmul.f32.gmra.mxu1 %v4064_v33  ;;  %2158 = vmatmul.f32.gmra.mxu3 %v4065_v52  ;;  %v1462_v17 = vpop.f32.mrf.mxu0  ;;  %v1546_v6 = vpop.f32.mrf.mxu3  ;;  %v3716_v33 = vld [vmem:[%s8656_s0 + $0x18d0] sm:$0xff]  ;;  %v3698_v5 = vld [vmem:[%s8656_s0 + $0x1840] sm:$0xff] }
 0x1d9   :  { %2233 = vmatpush.msrb.mxu2 %v3656_v61  ;;  %2261 = vmatpush.msrb.mxu3 %v3673_v31  ;;  %v1547_v36 = vadd.f32 %v1546_v6, %v1518_v58  ;;  %v1463_v10 = vadd.f32 %v1462_v17, %v1434_v50  ;;  %v3717_v61 = vld [vmem:[%s8656_s0 + $0x18d8] sm:$0xff]  ;;  %v4072_v31 = vld [vmem:[%s8657_s1 + $0xe8] sm:$0xff]  ;;  %v3746_v17 = vld [vmem:[%s8656_s0 + $0x19c0] sm:$0xff] }
 0x1da   :  { %2175 = vmatpush.msrb.mxu0 %v3624_v9  ;;  %2203 = vmatpush.msrb.mxu1 %v3641_v16  ;;  %v3731_v9 = vld [vmem:[%s8656_s0 + $0x1948] sm:$0xff]  ;;  %v3748_v16 = vld [vmem:[%s8656_s0 + $0x19d0] sm:$0xff]  ;;  %v3697_v50 = vld [vmem:[%s8656_s0 + $0x1838] sm:$0xff] }
 0x1db   :  { %2234 = vmatpush.msrb.mxu2 %v3655_v29  ;;  %2262 = vmatpush.msrb.mxu3 %v3672_v25  ;;  %3428 = vst.msk [vmem:[%s8659_s3 + $0x30] sm:$0xff] %vm825_vm0, %v1547_v36  ;;  %v3730_v29 = vld [vmem:[%s8656_s0 + $0x1940] sm:$0xff]  ;;  %v3747_v25 = vld [vmem:[%s8656_s0 + $0x19c8] sm:$0xff]  ;;  %v4075_v36 = vld [vmem:[%s8657_s1 + $0x170] sm:$0xff] }
 0x1dc   :  { %2176 = vmatpush.msrb.mxu0 %v3623_v2  ;;  %2204 = vmatpush.msrb.mxu1 %v3640_v41  ;;  %v1491_v38 = vpop.f32.mrf.mxu1  ;;  %v3715_v2 = vld [vmem:[%s8656_s0 + $0x18c8] sm:$0xff] }
 0x1dd   :  { %2235 = vmatpush.msrb.mxu2 %v3654_v40  ;;  %2263 = vmatpush.msrb.mxu3 %v3671_v62  ;;  %v1492_v51 = vadd.f32 %v1491_v38, %v1463_v10  ;;  %v3013_v40 = vld [vmem:[%s8659_s3 + $0x20] sm:$0xff]  ;;  %v3729_v62 = vld [vmem:[%s8656_s0 + $0x1938] sm:$0xff]  ;;  %v3696_v38 = vld [vmem:[%s8656_s0 + $0x1830] sm:$0xff] }
 0x1de   :  { %2177 = vmatpush.msrb.mxu0 %v3622_v8  ;;  %2205 = vmatpush.msrb.mxu1 %v3639_v35  ;;  %v3714_v8 = vld [vmem:[%s8656_s0 + $0x18c0] sm:$0xff]  ;;  %v3745_v10 = vld [vmem:[%s8656_s0 + $0x19b8] sm:$0xff] }
 0x1df   :  { %2178 = vmatmul.f32.vlgmr.msrb.gmra.mxu0 %v4066_v27  ;;  %2236 = vmatmul.f32.vlgmr.msrb.gmra.mxu2 %v4067_v14  ;;  %v1520_v22 = vpop.f32.mrf.mxu2  ;;  %v4074_v35 = vld [vmem:[%s8657_s1 + $0x160] sm:$0xff]  ;;  %v3727_v27 = vld [vmem:[%s8656_s0 + $0x1928] sm:$0xff]  ;;  %v4077_v14 = vld [vmem:[%s8657_s1 + $0x178] sm:$0xff] }
 0x1e0   :  { %2264 = vmatpush.msrb.mxu3 %v3670_v7  ;;  %2598 = vmatpush.msra.mxu2 %v3737_v32  ;;  %v1521_v54 = vadd.f32 %v1520_v22, %v1492_v51  ;;  %v3037_v7 = vsel %vm825_vm0, %v3013_v40, 0.0  ;;  %v3728_v32 = vld [vmem:[%s8656_s0 + $0x1930] sm:$0xff]  ;;  %v3726_v51 = vld [vmem:[%s8656_s0 + $0x1920] sm:$0xff]  ;;  %v3711_v22 = vld [vmem:[%s8656_s0 + $0x18a8] sm:$0xff] }
 0x1e1   :  { %2206 = vmatpush.msrb.mxu1 %v3638_v18  ;;  %2540 = vmatpush.msra.mxu0 %v3705_v55  ;;  %v4076_v18 = vld [vmem:[%s8657_s1 + $0x168] sm:$0xff]  ;;  %v3713_v55 = vld [vmem:[%s8656_s0 + $0x18b8] sm:$0xff] }
 0x1e2   :  { %2207 = vmatmul.f32.vlgmr.msrb.gmra.mxu1 %v4068_v28  ;;  %2265 = vmatmul.f32.vlgmr.msrb.gmra.mxu3 %v4069_v57  ;;  %v1549_v53 = vpop.f32.mrf.mxu3  ;;  %v3743_v28 = vld [vmem:[%s8656_s0 + $0x19a8] sm:$0xff]  ;;  %v3694_v57 = vld [vmem:[%s8656_s0 + $0x1820] sm:$0xff]  ;;  %v3801_v40 = vld [vmem:[%s8656_s0 + $0x1b78] sm:$0xff] }
 0x1e3   :  { %2599 = vmatpush.msra.mxu2 %v3736_v49  ;;  %2627 = vmatpush.msra.mxu3 %v3753_v63  ;;  %v1550_v39 = vadd.f32 %v1549_v53, %v1521_v54  ;;  %v7447_v26 = vpop.f32.mrf.mxu0  ;;  %v3744_v49 = vld [vmem:[%s8656_s0 + $0x19b0] sm:$0xff]  ;;  %v3695_v63 = vld [vmem:[%s8656_s0 + $0x1828] sm:$0xff]  ;;  %v4078_v53 = vld [vmem:[%s8657_s1 + $0x1e0] sm:$0x7f] }
 0x1e4   :  { %2541 = vmatpush.msra.mxu0 %v3704_v0  ;;  %2569 = vmatpush.msra.mxu1 %v3721_v56  ;;  %v3712_v56 = vld [vmem:[%s8656_s0 + $0x18b0] sm:$0xff] }
 0x1e5   :  { %2600 = vmatpush.msra.mxu2 %v3735_v30  ;;  %2628 = vmatpush.msra.mxu3 %v3752_v15  ;;  %3429 = vst.msk [vmem:[%s8659_s3 + $0x38] sm:$0x7f] %vm829_vm1, %v1550_v39  ;;  %v4079_v39 = vld [vmem:[%s8657_s1 + $0x1f0] sm:$0x7f] }
 0x1e6   :  { %2542 = vmatpush.msra.mxu0 %v3703_v45  ;;  %2570 = vmatpush.msra.mxu1 %v3720_v1  ;;  %v7459_v43 = vpop.f32.mrf.mxu1  ;;  %v3014_v45 = vld [vmem:[%s8659_s3 + $0x28] sm:$0xff]  ;;  %v3742_v1 = vld [vmem:[%s8656_s0 + $0x19a0] sm:$0xff] }
 0x1e7   :  { %2601 = vmatpush.msra.mxu2 %v3734_v12  ;;  %2629 = vmatpush.msra.mxu3 %v3751_v21  ;;  %v3725_v12 = vld [vmem:[%s8656_s0 + $0x1918] sm:$0xff] }
 0x1e8   :  { %2543 = vmatpush.msra.mxu0 %v3702_v24  ;;  %2571 = vmatpush.msra.mxu1 %v3719_v11  ;;  %v3693_v21 = vld [vmem:[%s8656_s0 + $0x1818] sm:$0xff]  ;;  %v3710_v24 = vld [vmem:[%s8656_s0 + $0x18a0] sm:$0xff]  ;;  %v3040_v11 = vsel %vm825_vm0, %v3014_v45, 0.0  ;;  %v3783_v45 = vld [vmem:[%s8656_s0 + $0x1ae8] sm:$0xff] }
 0x1e9   :  { %2181 = vmatmul.f32.gmra.mxu0 %v4070_v42  ;;  %2239 = vmatmul.f32.gmra.mxu2 %v4071_v60  ;;  %v7503_v52 = vpop.f32.mrf.mxu2  ;;  %v4080_v42 = vld [vmem:[%s8657_s1 + $0x1e8] sm:$0x7f]  ;;  %v4081_v60 = vld [vmem:[%s8657_s1 + $0x1f8] sm:$0x7f] }
 0x1ea   :  { %2602 = vmatpush.msra.mxu2 %v3733_v3  ;;  %2630 = vmatpush.msra.mxu3 %v3750_v20  ;;  %v3724_v3 = vld [vmem:[%s8656_s0 + $0x1910] sm:$0xff]  ;;  %v3741_v20 = vld [vmem:[%s8656_s0 + $0x1998] sm:$0xff] }
 0x1eb   :  { %2544 = vmatpush.msra.mxu0 %v3701_v13  ;;  %2572 = vmatpush.msra.mxu1 %v3718_v23  ;;  %v3692_v13 = vld [vmem:[%s8656_s0 + $0x1810] sm:$0xff]  ;;  %v3709_v23 = vld [vmem:[%s8656_s0 + $0x1898] sm:$0xff] }
 0x1ec   :  { %2210 = vmatmul.f32.gmra.mxu1 %v4072_v31  ;;  %2268 = vmatmul.f32.gmra.mxu3 %v4073_v44  ;;  %v3708_v31 = vld [vmem:[%s8656_s0 + $0x1890] sm:$0xff]  ;;  %v3722_v44 = vld [vmem:[%s8656_s0 + $0x1900] sm:$0xff] }
 0x1ed   :  { %2603 = vmatpush.msra.mxu2 %v3732_v37  ;;  %2631 = vmatpush.msra.mxu3 %v3749_v46  ;;  %v7517_v41 = vpop.f32.mrf.mxu0  ;;  %v7519_v58 = vpop.f32.mrf.mxu3  ;;  %v3723_v37 = vld [vmem:[%s8656_s0 + $0x1908] sm:$0xff]  ;;  %v3740_v46 = vld [vmem:[%s8656_s0 + $0x1990] sm:$0xff] }
 0x1ee   :  { %2545 = vmatpush.msra.mxu0 %v3700_v19  ;;  %2573 = vmatpush.msra.mxu1 %v3717_v61  ;;  %v3691_v61 = vld [vmem:[%s8656_s0 + $0x1808] sm:$0xff] }
 0x1ef   :  { %2604 = vmatpush.msra.mxu2 %v3731_v9  ;;  %2632 = vmatpush.msra.mxu3 %v3748_v16  ;;  %v3739_v9 = vld [vmem:[%s8656_s0 + $0x1988] sm:$0xff] }
 0x1f0   :  { %2546 = vmatpush.msra.mxu0 %v3699_v4  ;;  %2574 = vmatpush.msra.mxu1 %v3716_v33  ;;  %v3690_v33 = vld [vmem:[%s8656_s0 + $0x1800] sm:$0xff] }
 0x1f1   :  { %2605 = vmatpush.msra.mxu2 %v3730_v29  ;;  %2633 = vmatpush.msra.mxu3 %v3747_v25  ;;  %v7530_v6 = vpop.f32.mrf.mxu1  ;;  %v3707_v29 = vld [vmem:[%s8656_s0 + $0x1888] sm:$0xff]  ;;  %v3015_v25 = vld [vmem:[%s8659_s3 + $0x30] sm:$0xff] }
 0x1f2   :  { %2547 = vmatpush.msra.mxu0 %v3698_v5  ;;  %2575 = vmatpush.msra.mxu1 %v3715_v2  ;;  %v3738_v2 = vld [vmem:[%s8656_s0 + $0x1980] sm:$0xff] }
 0x1f3   :  { %2184 = vmatmul.f32.gmra.mxu0 %v4074_v35  ;;  %2242 = vmatmul.f32.gmra.mxu2 %v4075_v36  ;;  %v3043_v35 = vsel %vm825_vm0, %v3015_v25, 0.0  ;;  %v3800_v36 = vld [vmem:[%s8656_s0 + $0x1b70] sm:$0xff] }
 0x1f4   :  { %2606 = vmatpush.msra.mxu2 %v3729_v62  ;;  %2634 = vmatpush.msra.mxu3 %v3746_v17  ;;  %v7572_v0 = vpop.f32.mrf.mxu2  ;;  %v3706_v62 = vld [vmem:[%s8656_s0 + $0x1880] sm:$0xff]  ;;  %v3769_v17 = vld [vmem:[%s8656_s0 + $0x1a78] sm:$0xff] }
 0x1f5   :  { %2548 = vmatpush.msra.mxu0 %v3697_v50  ;;  %2576 = vmatpush.msra.mxu1 %v3714_v8  ;;  %v4082_v50 = vld [vmem:[%s8657_s1] sm:$0xff]  ;;  %v4083_v8 = vld [vmem:[%s8657_s1 + $0x10] sm:$0xff] }
 0x1f6   :  { %3038 = vadd.xlane.f32.xlu0 %v3037_v7  ;;  %2213 = vmatmul.f32.gmra.mxu1 %v4076_v18  ;;  %v3817_v7 = vld [vmem:[%s8656_s0 + $0x1bf8] sm:$0xff]  ;;  %v3799_v18 = vld [vmem:[%s8656_s0 + $0x1b68] sm:$0xff] }
 0x1f7   :  { %2271 = vmatmul.f32.gmra.mxu3 %v4077_v14  ;;  %2607 = vmatpush.msra.mxu2 %v3728_v32  ;;  %v7588_v15 = vpop.f32.mrf.mxu3  ;;  %v3768_v32 = vld [vmem:[%s8656_s0 + $0x1a70] sm:$0xff] }
 0x1f8   :  { %2635 = vmatpush.msra.mxu3 %v3745_v10  ;;  %2549 = vmatpush.msra.mxu0 %v3696_v38  ;;  %v7586_v30 = vpop.f32.mrf.mxu0  ;;  %v4084_v10 = vld [vmem:[%s8657_s1 + $0x8] sm:$0xff]  ;;  %v3785_v38 = vld [vmem:[%s8656_s0 + $0x1af8] sm:$0xff]  ;;  %v3816_v14 = vld [vmem:[%s8656_s0 + $0x1bf0] sm:$0xff] }
 0x1f9   :  { %2577 = vmatpush.msra.mxu1 %v3713_v55  ;;  %2608 = vmatpush.msra.mxu2 %v3727_v27  ;;  %v4085_v27 = vld [vmem:[%s8657_s1 + $0x18] sm:$0xff] }
 0x1fa   :  { %2636 = vmatpush.msra.mxu3 %v3744_v49  ;;  %2550 = vmatpush.msra.mxu0 %v3695_v63  ;;  %v3767_v49 = vld [vmem:[%s8656_s0 + $0x1a68] sm:$0xff]  ;;  %v3784_v63 = vld [vmem:[%s8656_s0 + $0x1af0] sm:$0xff] }
 0x1fb   :  { %2578 = vmatpush.msra.mxu1 %v3712_v56  ;;  %2609 = vmatpush.msra.mxu2 %v3726_v51  ;;  %v7599_v54 = vpop.f32.mrf.mxu1  ;;  %v3798_v56 = vld [vmem:[%s8656_s0 + $0x1b60] sm:$0xff] }
 0x1fc   :  { %2637 = vmatpush.msra.mxu3 %v3743_v28  ;;  %2551 = vmatpush.msra.mxu0 %v3694_v57  ;;  %v3815_v57 = vld [vmem:[%s8656_s0 + $0x1be8] sm:$0xff] }
 0x1fd   :  { %2579 = vmatpush.msra.mxu1 %v3711_v22  ;;  %2187 = vmatmul.f32.gmra.mxu0 %v4078_v53  ;;  %v3766_v22 = vld [vmem:[%s8656_s0 + $0x1a60] sm:$0xff]  ;;  %v3797_v53 = vld [vmem:[%s8656_s0 + $0x1b58] sm:$0xff] }
 0x1fe   :  { %2245 = vmatmul.f32.gmra.mxu2 %v4079_v39  ;;  %2638 = vmatpush.msra.mxu3 %v3742_v1  ;;  %v7641_v19 = vpop.f32.mrf.mxu2  ;;  %v3016_v1 = vld [vmem:[%s8659_s3 + $0x38] sm:$0x7f]  ;;  %v3782_v39 = vld [vmem:[%s8656_s0 + $0x1ae0] sm:$0xff] }
 0x1ff   :  { %2610 = vmatpush.msra.mxu2 %v3725_v12  ;;  %2552 = vmatpush.msra.mxu0 %v3693_v21  ;;  %v3814_v21 = vld [vmem:[%s8656_s0 + $0x1be0] sm:$0xff] }
 0x200   :  { %2580 = vmatpush.msra.mxu1 %v3710_v24  ;;  %3041 = vadd.xlane.f32.xlu1 %v3040_v11  ;;  %v3765_v24 = vld [vmem:[%s8656_s0 + $0x1a58] sm:$0xff]  ;;  %v4086_v11 = vld [vmem:[%s8657_s1 + $0x80] sm:$0xff] }
 0x201   :  { %2216 = vmatmul.f32.gmra.mxu1 %v4080_v42  ;;  %2274 = vmatmul.f32.gmra.mxu3 %v4081_v60  ;;  %v7657_v4 = vpop.f32.mrf.mxu3  ;;  %v3764_v42 = vld [vmem:[%s8656_s0 + $0x1a50] sm:$0xff]  ;;  %v3781_v60 = vld [vmem:[%s8656_s0 + $0x1ad8] sm:$0xff] }
 0x202   :  { %2611 = vmatpush.msra.mxu2 %v3724_v3  ;;  %2639 = vmatpush.msra.mxu3 %v3741_v20  ;;  %v7655_v16 = vpop.f32.mrf.mxu0  ;;  %v3046_v3 = vsel %vm829_vm1, %v3016_v1, 0.0  ;;  %v4087_v20 = vld [vmem:[%s8657_s1 + $0x90] sm:$0xff] }
 0x203   :  { %2553 = vmatpush.msra.mxu0 %v3692_v13  ;;  %2581 = vmatpush.msra.mxu1 %v3709_v23  ;;  %v3796_v13 = vld [vmem:[%s8656_s0 + $0x1b50] sm:$0xff]  ;;  %v3813_v23 = vld [vmem:[%s8656_s0 + $0x1bd8] sm:$0xff] }
 0x204   :  { %2612 = vmatpush.msra.mxu2 %v3723_v37  ;;  %2640 = vmatpush.msra.mxu3 %v3740_v46  ;;  %v4088_v46 = vld [vmem:[%s8657_s1 + $0x88] sm:$0xff]  ;;  %v3776_v1 = vld [vmem:[%s8656_s0 + $0x1ab0] sm:$0xff] }
 0x205   :  { %2554 = vmatpush.msra.mxu0 %v3691_v61  ;;  %2582 = vmatpush.msra.mxu1 %v3708_v31  ;;  %v7668_v5 = vpop.f32.mrf.mxu1  ;;  %v4089_v61 = vld [vmem:[%s8657_s1 + $0x98] sm:$0xff]  ;;  %v3795_v31 = vld [vmem:[%s8656_s0 + $0x1b48] sm:$0xff] }
 0x206   :  { %2613 = vmatpush.msra.mxu2 %v3722_v44  ;;  %2641 = vmatpush.msra.mxu3 %v3739_v9  ;;  %v3812_v44 = vld [vmem:[%s8656_s0 + $0x1bd0] sm:$0xff]  ;;  %v3763_v9 = vld [vmem:[%s8656_s0 + $0x1a48] sm:$0xff] }
 0x207   :  { %2555 = vmatpush.msra.mxu0 %v3690_v33  ;;  %2583 = vmatpush.msra.mxu1 %v3707_v29  ;;  %v3780_v33 = vld [vmem:[%s8656_s0 + $0x1ad0] sm:$0xff] }
 0x208   :  { %2556 = vmatmul.f32.vlgmr.msra.gmra.mxu0 %v4082_v50  ;;  %2614 = vmatmul.f32.vlgmr.msra.gmra.mxu2 %v4083_v8  ;;  %v7707_v55 = vpop.f32.mrf.mxu2  ;;  %v3793_v8 = vld [vmem:[%s8656_s0 + $0x1b38] sm:$0xff] }
 0x209   :  { %2642 = vmatpush.msra.mxu3 %v3738_v2  ;;  %2714 = vmatpush.msrb.mxu2 %v3801_v40  ;;  %v3794_v2 = vld [vmem:[%s8656_s0 + $0x1b40] sm:$0xff]  ;;  %v3811_v40 = vld [vmem:[%s8656_s0 + $0x1bc8] sm:$0xff] }
 0x20a   :  { %2584 = vmatpush.msra.mxu1 %v3706_v62  ;;  %2656 = vmatpush.msrb.mxu0 %v3769_v17  ;;  %v3762_v62 = vld [vmem:[%s8656_s0 + $0x1a40] sm:$0xff]  ;;  %v3779_v17 = vld [vmem:[%s8656_s0 + $0x1ac8] sm:$0xff] }
 0x20b   :  { %3044 = vadd.xlane.f32.xlu2 %v3043_v35  ;;  %2585 = vmatmul.f32.vlgmr.msra.gmra.mxu1 %v4084_v10  ;;  %v7724_v51 = vpop.f32.mrf.mxu3  ;;  %v3810_v35 = vld [vmem:[%s8656_s0 + $0x1bc0] sm:$0xff]  ;;  %v4091_v10 = vld [vmem:[%s8657_s1 + $0x110] sm:$0xff] }
 0x20c   :  { %2643 = vmatmul.f32.vlgmr.msra.gmra.mxu3 %v4085_v27  ;;  %2715 = vmatpush.msrb.mxu2 %v3800_v36  ;;  %v7726_v28 = vpop.f32.mrf.mxu0  ;;  %v3761_v36 = vld [vmem:[%s8656_s0 + $0x1a38] sm:$0xff]  ;;  %v3760_v27 = vld [vmem:[%s8656_s0 + $0x1a30] sm:$0xff] }
 0x20d   :  { %2743 = vmatpush.msrb.mxu3 %v3817_v7  ;;  %2657 = vmatpush.msrb.mxu0 %v3768_v32  ;;  %v3778_v7 = vld [vmem:[%s8656_s0 + $0x1ac0] sm:$0xff] }
 0x20e   :  { %2685 = vmatpush.msrb.mxu1 %v3785_v38  ;;  %2716 = vmatpush.msrb.mxu2 %v3799_v18  ;;  %v4090_v32 = vld [vmem:[%s8657_s1 + $0x100] sm:$0xff]  ;;  %v3792_v38 = vld [vmem:[%s8656_s0 + $0x1b30] sm:$0xff]  ;;  %v3809_v18 = vld [vmem:[%s8656_s0 + $0x1bb8] sm:$0xff] }
 0x20f   :  { %2744 = vmatpush.msrb.mxu3 %v3816_v14  ;;  %2658 = vmatpush.msrb.mxu0 %v3767_v49  ;;  %v7740_v12 = vpop.f32.mrf.mxu1  ;;  %v3777_v14 = vld [vmem:[%s8656_s0 + $0x1ab8] sm:$0xff] }
 0x210   :  { %2686 = vmatpush.msrb.mxu1 %v3784_v63  ;;  %2717 = vmatpush.msrb.mxu2 %v3798_v56  ;;  %v4092_v63 = vld [vmem:[%s8657_s1 + $0x108] sm:$0xff]  ;;  %v4093_v56 = vld [vmem:[%s8657_s1 + $0x118] sm:$0xff] }
 0x211   :  { %2745 = vmatpush.msrb.mxu3 %v3815_v57  ;;  %2659 = vmatpush.msrb.mxu0 %v3766_v22  ;;  %v3791_v57 = vld [vmem:[%s8656_s0 + $0x1b28] sm:$0xff]  ;;  %v3808_v22 = vld [vmem:[%s8656_s0 + $0x1bb0] sm:$0xff] }
 0x212   :  { %2687 = vmatpush.msrb.mxu1 %v3783_v45  ;;  %2559 = vmatmul.f32.gmra.mxu0 %v4086_v11  ;;  %v7773_v37 = vpop.f32.mrf.mxu2  ;;  %v3759_v45 = vld [vmem:[%s8656_s0 + $0x1a28] sm:$0xff] }
 0x213   :  { %2617 = vmatmul.f32.gmra.mxu2 %v4087_v20  ;;  %2746 = vmatpush.msrb.mxu3 %v3814_v21  ;;  %v3807_v11 = vld [vmem:[%s8656_s0 + $0x1ba8] sm:$0xff] }
 0x214   :  { %2718 = vmatpush.msrb.mxu2 %v3797_v53  ;;  %2660 = vmatpush.msrb.mxu0 %v3765_v24  ;;  %v3790_v24 = vld [vmem:[%s8656_s0 + $0x1b20] sm:$0xff] }
 0x215   :  { %2688 = vmatpush.msrb.mxu1 %v3782_v39  ;;  %3047 = vadd.xlane.f32.xlu2 %v3046_v3  ;;  %v7795_v25 = vpop.f32.mrf.mxu3  ;;  %v3758_v39 = vld [vmem:[%s8656_s0 + $0x1a20] sm:$0xff]  ;;  %v3775_v3 = vld [vmem:[%s8656_s0 + $0x1aa8] sm:$0xff] }
 0x216   :  { %2588 = vmatmul.f32.gmra.mxu1 %v4088_v46  ;;  %2646 = vmatmul.f32.gmra.mxu3 %v4089_v61  ;;  %v7793_v29 = vpop.f32.mrf.mxu0  ;;  %v4094_v46 = vld [vmem:[%s8657_s1 + $0x180] sm:$0x7f]  ;;  %v4095_v61 = vld [vmem:[%s8657_s1 + $0x190] sm:$0x7f] }
 0x217   :  { %2719 = vmatpush.msrb.mxu2 %v3796_v13  ;;  %2747 = vmatpush.msrb.mxu3 %v3813_v23  ;;  %v3789_v13 = vld [vmem:[%s8656_s0 + $0x1b18] sm:$0xff]  ;;  %v3806_v23 = vld [vmem:[%s8656_s0 + $0x1ba0] sm:$0xff] }
 0x218   :  { %2661 = vmatpush.msrb.mxu0 %v3764_v42  ;;  %2689 = vmatpush.msrb.mxu1 %v3781_v60  ;;  %v3757_v42 = vld [vmem:[%s8656_s0 + $0x1a18] sm:$0xff]  ;;  %v3774_v60 = vld [vmem:[%s8656_s0 + $0x1aa0] sm:$0xff] }
 0x219   :  { %2720 = vmatpush.msrb.mxu2 %v3795_v31  ;;  %2748 = vmatpush.msrb.mxu3 %v3812_v44  ;;  %v7809_v50 = vpop.f32.mrf.mxu1  ;;  %v3788_v31 = vld [vmem:[%s8656_s0 + $0x1b10] sm:$0xff]  ;;  %v3805_v44 = vld [vmem:[%s8656_s0 + $0x1b98] sm:$0xff] }
 0x21a   :  { %2662 = vmatpush.msrb.mxu0 %v3763_v9  ;;  %2690 = vmatpush.msrb.mxu1 %v3780_v33  ;;  %v3756_v9 = vld [vmem:[%s8656_s0 + $0x1a10] sm:$0xff]  ;;  %v3773_v33 = vld [vmem:[%s8656_s0 + $0x1a98] sm:$0xff] }
 0x21b   :  { %2721 = vmatpush.msrb.mxu2 %v3794_v2  ;;  %2749 = vmatpush.msrb.mxu3 %v3811_v40  ;;  %v4096_v40 = vld [vmem:[%s8657_s1 + $0x188] sm:$0x7f] }
 0x21c   :  { %2663 = vmatpush.msrb.mxu0 %v3762_v62  ;;  %2691 = vmatpush.msrb.mxu1 %v3779_v17  ;;  %v7841_v49 = vpop.f32.mrf.mxu2  ;;  %v4097_v62 = vld [vmem:[%s8657_s1 + $0x198] sm:$0x7f]  ;;  %v3787_v17 = vld [vmem:[%s8656_s0 + $0x1b08] sm:$0xff] }
 0x21d   :  { %2562 = vmatmul.f32.gmra.mxu0 %v4090_v32  ;;  %2620 = vmatmul.f32.gmra.mxu2 %v4091_v10  ;;  %v3786_v10 = vld [vmem:[%s8656_s0 + $0x1b00] sm:$0xff] }
 0x21e   :  { %2722 = vmatpush.msrb.mxu2 %v3793_v8  ;;  %2750 = vmatpush.msrb.mxu3 %v3810_v35  ;;  %v3804_v8 = vld [vmem:[%s8656_s0 + $0x1b90] sm:$0xff]  ;;  %v3755_v35 = vld [vmem:[%s8656_s0 + $0x1a08] sm:$0xff] }
 0x21f   :  { %2664 = vmatpush.msrb.mxu0 %v3761_v36  ;;  %2692 = vmatpush.msrb.mxu1 %v3778_v7  ;;  %v7863_v53 = vpop.f32.mrf.mxu3  ;;  %v3772_v36 = vld [vmem:[%s8656_s0 + $0x1a90] sm:$0xff] }
 0x220   :  { %2591 = vmatmul.f32.gmra.mxu1 %v4092_v63  ;;  %2649 = vmatmul.f32.gmra.mxu3 %v4093_v56  ;;  %v7861_v21 = vpop.f32.mrf.mxu0  ;;  %v3802_v63 = vld [vmem:[%s8656_s0 + $0x1b80] sm:$0xff]  ;;  %v3865_v56 = vld [vmem:[%s8656_s0 + $0x1d78] sm:$0xff] }
 0x221   :  { %2723 = vmatpush.msrb.mxu2 %v3792_v38  ;;  %2751 = vmatpush.msrb.mxu3 %v3809_v18  ;;  %v3803_v38 = vld [vmem:[%s8656_s0 + $0x1b88] sm:$0xff]  ;;  %v3754_v18 = vld [vmem:[%s8656_s0 + $0x1a00] sm:$0xff] }
 0x222   :  { %2665 = vmatpush.msrb.mxu0 %v3760_v27  ;;  %2693 = vmatpush.msrb.mxu1 %v3777_v14  ;;  %v3771_v27 = vld [vmem:[%s8656_s0 + $0x1a88] sm:$0xff] }
 0x223   :  { %2724 = vmatpush.msrb.mxu2 %v3791_v57  ;;  %2752 = vmatpush.msrb.mxu3 %v3808_v22  ;;  %v7877_v20 = vpop.f32.mrf.mxu1  ;;  %v3770_v57 = vld [vmem:[%s8656_s0 + $0x1a80] sm:$0xff]  ;;  %v3833_v22 = vld [vmem:[%s8656_s0 + $0x1c78] sm:$0xff] }
 0x224   :  { %2666 = vmatpush.msrb.mxu0 %v3759_v45  ;;  %2694 = vmatpush.msrb.mxu1 %v3776_v1  ;;  %v4098_v45 = vld [vmem:[%s8657_s1 + $0x20] sm:$0xff]  ;;  %v4099_v1 = vld [vmem:[%s8657_s1 + $0x30] sm:$0xff] }
 0x225   :  { %2725 = vmatpush.msrb.mxu2 %v3790_v24  ;;  %2753 = vmatpush.msrb.mxu3 %v3807_v11  ;;  %v3864_v24 = vld [vmem:[%s8656_s0 + $0x1d70] sm:$0xff]  ;;  %v3881_v11 = vld [vmem:[%s8656_s0 + $0x1df8] sm:$0xff] }
 0x226   :  { %2667 = vmatpush.msrb.mxu0 %v3758_v39  ;;  %2695 = vmatpush.msrb.mxu1 %v3775_v3  ;;  %v7909_v2 = vpop.f32.mrf.mxu2  ;;  %v3832_v39 = vld [vmem:[%s8656_s0 + $0x1c70] sm:$0xff]  ;;  %v3849_v3 = vld [vmem:[%s8656_s0 + $0x1cf8] sm:$0xff] }
 0x227   :  { %2565 = vmatmul.f32.gmra.mxu0 %v4094_v46  ;;  %2623 = vmatmul.f32.gmra.mxu2 %v4095_v61  ;;  %v3880_v46 = vld [vmem:[%s8656_s0 + $0x1df0] sm:$0xff]  ;;  %v3831_v61 = vld [vmem:[%s8656_s0 + $0x1c68] sm:$0xff] }
 0x228   :  { %2726 = vmatpush.msrb.mxu2 %v3789_v13  ;;  %2754 = vmatpush.msrb.mxu3 %v3806_v23  ;;  %v4100_v23 = vld [vmem:[%s8657_s1 + $0x28] sm:$0xff] }
 0x229   :  { %2668 = vmatpush.msrb.mxu0 %v3757_v42  ;;  %2696 = vmatpush.msrb.mxu1 %v3774_v60  ;;  %v7931_v32 = vpop.f32.mrf.mxu3  ;;  %v4101_v42 = vld [vmem:[%s8657_s1 + $0x38] sm:$0xff]  ;;  %v3863_v60 = vld [vmem:[%s8656_s0 + $0x1d68] sm:$0xff] }
 0x22a   :  { %2594 = vmatmul.f32.gmra.mxu1 %v4096_v40  ;;  %2652 = vmatmul.f32.gmra.mxu3 %v4097_v62  ;;  %v7929_v7 = vpop.f32.mrf.mxu0  ;;  %v3879_v40 = vld [vmem:[%s8656_s0 + $0x1de8] sm:$0xff]  ;;  %v3830_v62 = vld [vmem:[%s8656_s0 + $0x1c60] sm:$0xff] }
 0x22b   :  { %2727 = vmatpush.msrb.mxu2 %v3788_v31  ;;  %2755 = vmatpush.msrb.mxu3 %v3805_v44  ;;  %v3848_v31 = vld [vmem:[%s8656_s0 + $0x1cf0] sm:$0xff] }
 0x22c   :  { %2669 = vmatpush.msrb.mxu0 %v3756_v9  ;;  %2697 = vmatpush.msrb.mxu1 %v3773_v33  ;;  %v3862_v33 = vld [vmem:[%s8656_s0 + $0x1d60] sm:$0xff] }
 0x22d   :  { %2728 = vmatpush.msrb.mxu2 %v3787_v17  ;;  %2756 = vmatpush.msrb.mxu3 %v3804_v8  ;;  %v7945_v14 = vpop.f32.mrf.mxu1  ;;  %v3847_v17 = vld [vmem:[%s8656_s0 + $0x1ce8] sm:$0xff] }
 0x22e   :  { %2670 = vmatpush.msrb.mxu0 %v3755_v35  ;;  %2698 = vmatpush.msrb.mxu1 %v3772_v36  ;;  %v1832_v35 = vadd.f32 %v7447_v26, %v5719_v59  ;;  %v3861_v36 = vld [vmem:[%s8656_s0 + $0x1d58] sm:$0xff]  ;;  %v3846_v26 = vld [vmem:[%s8656_s0 + $0x1ce0] sm:$0xff] }
 0x22f   :  { %2729 = vmatpush.msrb.mxu2 %v3786_v10  ;;  %2757 = vmatpush.msrb.mxu3 %v3803_v38  ;;  %v3878_v10 = vld [vmem:[%s8656_s0 + $0x1de0] sm:$0xff]  ;;  %v3829_v38 = vld [vmem:[%s8656_s0 + $0x1c58] sm:$0xff] }
 0x230   :  { %2671 = vmatpush.msrb.mxu0 %v3754_v18  ;;  %2699 = vmatpush.msrb.mxu1 %v3771_v27  ;;  %v7977_v13 = vpop.f32.mrf.mxu2  ;;  %v4102_v18 = vld [vmem:[%s8657_s1 + $0xa0] sm:$0xff]  ;;  %v4103_v27 = vld [vmem:[%s8657_s1 + $0xb0] sm:$0xff] }
 0x231   :  { %2672 = vmatmul.f32.vlgmr.msrb.gmra.mxu0 %v4098_v45  ;;  %2730 = vmatmul.f32.vlgmr.msrb.gmra.mxu2 %v4099_v1  ;;  %v4104_v1 = vld [vmem:[%s8657_s1 + $0xa8] sm:$0xff] }
 0x232   :  { %2758 = vmatpush.msrb.mxu3 %v3802_v63  ;;  %2830 = vmatpush.msra.mxu2 %v3865_v56  ;;  %v1861_v63 = vadd.f32 %v7459_v43, %v1832_v35  ;;  %v3860_v56 = vld [vmem:[%s8656_s0 + $0x1d50] sm:$0xff]  ;;  %v3845_v43 = vld [vmem:[%s8656_s0 + $0x1cd8] sm:$0xff] }
 0x233   :  { %2700 = vmatpush.msrb.mxu1 %v3770_v57  ;;  %2772 = vmatpush.msra.mxu0 %v3833_v22  ;;  %v7997_v44 = vpop.f32.mrf.mxu3  ;;  %v3877_v57 = vld [vmem:[%s8656_s0 + $0x1dd8] sm:$0xff]  ;;  %v3828_v22 = vld [vmem:[%s8656_s0 + $0x1c50] sm:$0xff] }
 0x234   :  { %2701 = vmatmul.f32.vlgmr.msrb.gmra.mxu1 %v4100_v23  ;;  %2759 = vmatmul.f32.vlgmr.msrb.gmra.mxu3 %v4101_v42  ;;  %v7999_v9 = vpop.f32.mrf.mxu0  ;;  %v3844_v23 = vld [vmem:[%s8656_s0 + $0x1cd0] sm:$0xff] }
 0x235   :  { %2831 = vmatpush.msra.mxu2 %v3864_v24  ;;  %2859 = vmatpush.msra.mxu3 %v3881_v11  ;;  %v4105_v24 = vld [vmem:[%s8657_s1 + $0xb8] sm:$0xff]  ;;  %v3859_v11 = vld [vmem:[%s8656_s0 + $0x1d48] sm:$0xff] }
 0x236   :  { %2773 = vmatpush.msra.mxu0 %v3832_v39  ;;  %2801 = vmatpush.msra.mxu1 %v3849_v3  ;;  %v3876_v39 = vld [vmem:[%s8656_s0 + $0x1dd0] sm:$0xff]  ;;  %v3827_v3 = vld [vmem:[%s8656_s0 + $0x1c48] sm:$0xff] }
 0x237   :  { %2832 = vmatpush.msra.mxu2 %v3863_v60  ;;  %2860 = vmatpush.msra.mxu3 %v3880_v46  ;;  %v8013_v8 = vpop.f32.mrf.mxu1  ;;  %v1890_v46 = vadd.f32 %v7503_v52, %v1861_v63  ;;  %v3843_v52 = vld [vmem:[%s8656_s0 + $0x1cc8] sm:$0xff]  ;;  %v3824_v63 = vld [vmem:[%s8656_s0 + $0x1c30] sm:$0xff] }
 0x238   :  { %2774 = vmatpush.msra.mxu0 %v3831_v61  ;;  %2802 = vmatpush.msra.mxu1 %v3848_v31  ;;  %v3858_v61 = vld [vmem:[%s8656_s0 + $0x1d40] sm:$0xff]  ;;  %v3875_v31 = vld [vmem:[%s8656_s0 + $0x1dc8] sm:$0xff] }
 0x239   :  { %2833 = vmatpush.msra.mxu2 %v3862_v33  ;;  %2861 = vmatpush.msra.mxu3 %v3879_v40  ;;  %v1835_v33 = vadd.f32 %v7517_v41, %v5792_v47  ;;  %v3826_v40 = vld [vmem:[%s8656_s0 + $0x1c40] sm:$0xff]  ;;  %v3857_v41 = vld [vmem:[%s8656_s0 + $0x1d38] sm:$0xff]  ;;  %v1919_v35 = vadd.f32 %v7519_v58, %v1890_v46  ;;  %v4107_v58 = vld [vmem:[%s8657_s1 + $0x130] sm:$0xff] }
 0x23a   :  { %2775 = vmatpush.msra.mxu0 %v3830_v62  ;;  %2803 = vmatpush.msra.mxu1 %v3847_v17  ;;  %v8048_v45 = vpop.f32.mrf.mxu2  ;;  %v3874_v17 = vld [vmem:[%s8656_s0 + $0x1dc0] sm:$0xff] }
 0x23b   :  { %2675 = vmatmul.f32.gmra.mxu0 %v4102_v18  ;;  %2733 = vmatmul.f32.gmra.mxu2 %v4103_v27  ;;  %v1948_v18 = vadd.f32 %v7726_v28, %v1919_v35  ;;  %v3856_v27 = vld [vmem:[%s8656_s0 + $0x1d30] sm:$0xff]  ;;  %v3841_v28 = vld [vmem:[%s8656_s0 + $0x1cb8] sm:$0xff] }
 0x23c   :  { %2834 = vmatpush.msra.mxu2 %v3861_v36  ;;  %2862 = vmatpush.msra.mxu3 %v3878_v10  ;;  %v3825_v36 = vld [vmem:[%s8656_s0 + $0x1c38] sm:$0xff]  ;;  %v3842_v10 = vld [vmem:[%s8656_s0 + $0x1cc0] sm:$0xff] }
 0x23d   :  { %2776 = vmatpush.msra.mxu0 %v3829_v38  ;;  %2804 = vmatpush.msra.mxu1 %v3846_v26  ;;  %v8070_v60 = vpop.f32.mrf.mxu3  ;;  %v1864_v38 = vadd.f32 %v7530_v6, %v1835_v33  ;;  %v4106_v26 = vld [vmem:[%s8657_s1 + $0x120] sm:$0xff]  ;;  %v3873_v6 = vld [vmem:[%s8656_s0 + $0x1db8] sm:$0xff]  ;;  %v1977_v46 = vadd.f32 %v7740_v12, %v1948_v18  ;;  %v3839_v12 = vld [vmem:[%s8656_s0 + $0x1ca8] sm:$0xff] }
 0x23e   :  { %2704 = vmatmul.f32.gmra.mxu1 %v4104_v1  ;;  %2762 = vmatmul.f32.gmra.mxu3 %v4105_v24  ;;  %v8068_v42 = vpop.f32.mrf.mxu0  ;;  %v3872_v1 = vld [vmem:[%s8656_s0 + $0x1db0] sm:$0xff]  ;;  %v3822_v33 = vld [vmem:[%s8656_s0 + $0x1c20] sm:$0xff] }
 0x23f   :  { %2835 = vmatpush.msra.mxu2 %v3860_v56  ;;  %2863 = vmatpush.msra.mxu3 %v3877_v57  ;;  %v4108_v57 = vld [vmem:[%s8657_s1 + $0x128] sm:$0xff]  ;;  %v1893_v24 = vadd.f32 %v7572_v0, %v1864_v38  ;;  %v3854_v0 = vld [vmem:[%s8656_s0 + $0x1d20] sm:$0xff]  ;;  %v4111_v38 = vld [vmem:[%s8657_s1 + $0x1b0] sm:$0x7f] }
 0x240   :  { %2777 = vmatpush.msra.mxu0 %v3828_v22  ;;  %2805 = vmatpush.msra.mxu1 %v3845_v43  ;;  %v4109_v22 = vld [vmem:[%s8657_s1 + $0x138] sm:$0xff]  ;;  %v3855_v43 = vld [vmem:[%s8656_s0 + $0x1d28] sm:$0xff] }
 0x241   :  { %2836 = vmatpush.msra.mxu2 %v3859_v11  ;;  %2864 = vmatpush.msra.mxu3 %v3876_v39  ;;  %v8087_v62 = vpop.f32.mrf.mxu1  ;;  %v3823_v11 = vld [vmem:[%s8656_s0 + $0x1c28] sm:$0xff]  ;;  %v3840_v39 = vld [vmem:[%s8656_s0 + $0x1cb0] sm:$0xff] }
 0x242   :  { %2778 = vmatpush.msra.mxu0 %v3827_v3  ;;  %2806 = vmatpush.msra.mxu1 %v3844_v23 }
 0x243   :  { %2837 = vmatpush.msra.mxu2 %v3858_v61  ;;  %2865 = vmatpush.msra.mxu3 %v3875_v31  ;;  %v3871_v61 = vld [vmem:[%s8656_s0 + $0x1da8] sm:$0xff]  ;;  %v1838_v31 = vadd.f32 %v7586_v30, %v5875_v48  ;;  %v3853_v30 = vld [vmem:[%s8656_s0 + $0x1d18] sm:$0xff] }
 0x244   :  { %2779 = vmatpush.msra.mxu0 %v3826_v40  ;;  %2807 = vmatpush.msra.mxu1 %v3843_v52  ;;  %v8122_v56 = vpop.f32.mrf.mxu2  ;;  %v2006_v52 = vadd.f32 %v7773_v37, %v1977_v46  ;;  %v3821_v37 = vld [vmem:[%s8656_s0 + $0x1c18] sm:$0xff]  ;;  %v3818_v46 = vld [vmem:[%s8656_s0 + $0x1c00] sm:$0xff] }
 0x245   :  { %2678 = vmatmul.f32.gmra.mxu0 %v4106_v26  ;;  %2736 = vmatmul.f32.gmra.mxu2 %v4107_v58  ;;  %v1867_v35 = vadd.f32 %v7599_v54, %v1838_v31  ;;  %v3852_v54 = vld [vmem:[%s8656_s0 + $0x1d10] sm:$0xff]  ;;  %v1841_v31 = vadd.f32 %v7655_v16, %v5954_v34  ;;  %v3834_v16 = vld [vmem:[%s8656_s0 + $0x1c80] sm:$0xff] }
 0x246   :  { %2838 = vmatpush.msra.mxu2 %v3857_v41  ;;  %2866 = vmatpush.msra.mxu3 %v3874_v17  ;;  %v1922_v41 = vadd.f32 %v7588_v15, %v1893_v24  ;;  %v3870_v17 = vld [vmem:[%s8656_s0 + $0x1da0] sm:$0xff]  ;;  %v2035_v26 = vadd.f32 %v7795_v25, %v2006_v52  ;;  %v3820_v58 = vld [vmem:[%s8656_s0 + $0x1c10] sm:$0xff]  ;;  %v3837_v25 = vld [vmem:[%s8656_s0 + $0x1c98] sm:$0xff] }
 0x247   :  { %2780 = vmatpush.msra.mxu0 %v3825_v36  ;;  %2808 = vmatpush.msra.mxu1 %v3842_v10  ;;  %v8145_v23 = vpop.f32.mrf.mxu3  ;;  %v3838_v15 = vld [vmem:[%s8656_s0 + $0x1ca0] sm:$0xff]  ;;  %v3836_v24 = vld [vmem:[%s8656_s0 + $0x1c90] sm:$0xff]  ;;  %v3929_v52 = vld [vmem:[%s8656_s0 + $0x1f78] sm:$0xff] }
 0x248   :  { %2707 = vmatmul.f32.gmra.mxu1 %v4108_v57  ;;  %2765 = vmatmul.f32.gmra.mxu3 %v4109_v22  ;;  %v8143_v3 = vpop.f32.mrf.mxu0  ;;  %v1951_v36 = vadd.f32 %v7793_v29, %v1922_v41  ;;  %v4110_v10 = vld [vmem:[%s8657_s1 + $0x1a0] sm:$0x7f]  ;;  %v3869_v29 = vld [vmem:[%s8656_s0 + $0x1d98] sm:$0xff]  ;;  %v2064_v57 = vadd.f32 %v7999_v9, %v2035_v26  ;;  %v1896_v22 = vadd.f32 %v7641_v19, %v1867_v35  ;;  %v3927_v26 = vld [vmem:[%s8656_s0 + $0x1f68] sm:$0xff] }
 0x249   :  { %2839 = vmatpush.msra.mxu2 %v3856_v27  ;;  %2867 = vmatpush.msra.mxu3 %v3873_v6  ;;  %v4112_v27 = vld [vmem:[%s8657_s1 + $0x1a8] sm:$0x7f]  ;;  %v4113_v6 = vld [vmem:[%s8657_s1 + $0x1b8] sm:$0x7f]  ;;  %v3850_v19 = vld [vmem:[%s8656_s0 + $0x1d00] sm:$0xff] }
 0x24a   :  { %2781 = vmatpush.msra.mxu0 %v3824_v63  ;;  %2809 = vmatpush.msra.mxu1 %v3841_v28  ;;  %v3851_v63 = vld [vmem:[%s8656_s0 + $0x1d08] sm:$0xff]  ;;  %v3868_v28 = vld [vmem:[%s8656_s0 + $0x1d90] sm:$0xff] }
 0x24b   :  { %2840 = vmatpush.msra.mxu2 %v3855_v43  ;;  %2868 = vmatpush.msra.mxu3 %v3872_v1  ;;  %v8162_v40 = vpop.f32.mrf.mxu1  ;;  %v1980_v43 = vadd.f32 %v7809_v50, %v1951_v36  ;;  %v3819_v1 = vld [vmem:[%s8656_s0 + $0x1c08] sm:$0xff] }
 0x24c   :  { %2782 = vmatpush.msra.mxu0 %v3823_v11  ;;  %2810 = vmatpush.msra.mxu1 %v3840_v39  ;;  %v3867_v50 = vld [vmem:[%s8656_s0 + $0x1d88] sm:$0xff] }
 0x24d   :  { %2841 = vmatpush.msra.mxu2 %v3854_v0  ;;  %2869 = vmatpush.msra.mxu3 %v3871_v61  ;;  %v2009_v9 = vadd.f32 %v7841_v49, %v1980_v43  ;;  %v3835_v0 = vld [vmem:[%s8656_s0 + $0x1c88] sm:$0xff]  ;;  %v1925_v49 = vadd.f32 %v7657_v4, %v1896_v22  ;;  %v3897_v4 = vld [vmem:[%s8656_s0 + $0x1e78] sm:$0xff] }
 0x24e   :  { %2783 = vmatpush.msra.mxu0 %v3822_v33  ;;  %2811 = vmatpush.msra.mxu1 %v3839_v12  ;;  %v8199_v18 = vpop.f32.mrf.mxu2  ;;  %v2093_v33 = vadd.f32 %v8013_v8, %v2064_v57  ;;  %v3866_v12 = vld [vmem:[%s8656_s0 + $0x1d80] sm:$0xff]  ;;  %v3911_v43 = vld [vmem:[%s8656_s0 + $0x1ee8] sm:$0xff] }
 0x24f   :  { %2681 = vmatmul.f32.gmra.mxu0 %v4110_v10  ;;  %2739 = vmatmul.f32.gmra.mxu2 %v4111_v38  ;;  %v1954_v41 = vadd.f32 %v7861_v21, %v1925_v49  ;;  %v3928_v21 = vld [vmem:[%s8656_s0 + $0x1f70] sm:$0xff]  ;;  %v4116_v10 = vld [vmem:[%s8657_s1 + $0x48] sm:$0xff]  ;;  %v4117_v38 = vld [vmem:[%s8657_s1 + $0x58] sm:$0xff] }
 0x250   :  { %2842 = vmatpush.msra.mxu2 %v3853_v30  ;;  %2870 = vmatpush.msra.mxu3 %v3870_v17  ;;  %v2122_v8 = vadd.f32 %v8048_v45, %v2093_v33  ;;  %v2038_v30 = vadd.f32 %v7863_v53, %v2009_v9  ;;  %v4114_v17 = vld [vmem:[%s8657_s1 + $0x40] sm:$0xff]  ;;  %v3945_v53 = vld [vmem:[%s8656_s0 + $0x1ff8] sm:$0xff]  ;;  %v3896_v45 = vld [vmem:[%s8656_s0 + $0x1e70] sm:$0xff] }
 0x251   :  { %2784 = vmatpush.msra.mxu0 %v3821_v37  ;;  %2812 = vmatpush.msra.mxu1 %v3838_v15  ;;  %v8224_v39 = vpop.f32.mrf.mxu3  ;;  %v4115_v37 = vld [vmem:[%s8657_s1 + $0x50] sm:$0xff]  ;;  %v1870_v15 = vadd.f32 %v7668_v5, %v1841_v31  ;;  %v3913_v5 = vld [vmem:[%s8656_s0 + $0x1ef8] sm:$0xff]  ;;  %v3910_v9 = vld [vmem:[%s8656_s0 + $0x1ee0] sm:$0xff] }
 0x252   :  { %2710 = vmatmul.f32.gmra.mxu1 %v4112_v27  ;;  %2768 = vmatmul.f32.gmra.mxu3 %v4113_v6  ;;  %v8222_v11 = vpop.f32.mrf.mxu0  ;;  %v2067_v35 = vadd.f32 %v8068_v42, %v2038_v30  ;;  %v3944_v42 = vld [vmem:[%s8656_s0 + $0x1ff0] sm:$0xff]  ;;  %v4118_v31 = vld [vmem:[%s8657_s1 + $0xc0] sm:$0xff]  ;;  %v4121_v30 = vld [vmem:[%s8657_s1 + $0xd8] sm:$0xff] }
 0x253   :  { %2843 = vmatpush.msra.mxu2 %v3852_v54  ;;  %2871 = vmatpush.msra.mxu3 %v3869_v29  ;;  %v2151_v54 = vadd.f32 %v8070_v60, %v2122_v8  ;;  %v1983_v29 = vadd.f32 %v7877_v20, %v1954_v41  ;;  %v3926_v20 = vld [vmem:[%s8656_s0 + $0x1f60] sm:$0xff]  ;;  %v3943_v60 = vld [vmem:[%s8656_s0 + $0x1fe8] sm:$0xff]  ;;  %v3924_v49 = vld [vmem:[%s8656_s0 + $0x1f50] sm:$0xff] }
 0x254   :  { %2785 = vmatpush.msra.mxu0 %v3820_v58  ;;  %2813 = vmatpush.msra.mxu1 %v3837_v25  ;;  %v3895_v58 = vld [vmem:[%s8656_s0 + $0x1e68] sm:$0xff]  ;;  %v3912_v25 = vld [vmem:[%s8656_s0 + $0x1ef0] sm:$0xff]  ;;  %v2096_v22 = vadd.f32 %v8087_v62, %v2067_v35  ;;  %v3942_v62 = vld [vmem:[%s8656_s0 + $0x1fe0] sm:$0xff] }
 0x255   :  { %2844 = vmatpush.msra.mxu2 %v3851_v63  ;;  %2872 = vmatpush.msra.mxu3 %v3868_v28  ;;  %v8239_v61 = vpop.f32.mrf.mxu1  ;;  %v1899_v63 = vadd.f32 %v7707_v55, %v1870_v15  ;;  %v2012_v57 = vadd.f32 %v7909_v2, %v1983_v29  ;;  %v3894_v55 = vld [vmem:[%s8656_s0 + $0x1e60] sm:$0xff]  ;;  %v3925_v2 = vld [vmem:[%s8656_s0 + $0x1f58] sm:$0xff]  ;;  %v4120_v41 = vld [vmem:[%s8657_s1 + $0xc8] sm:$0xff] }
 0x256   :  { %2786 = vmatpush.msra.mxu0 %v3819_v1  ;;  %2814 = vmatpush.msra.mxu1 %v3836_v24  ;;  %v2125_v24 = vadd.f32 %v8122_v56, %v2096_v22  ;;  %v3891_v15 = vld [vmem:[%s8656_s0 + $0x1e48] sm:$0xff]  ;;  %v3888_v22 = vld [vmem:[%s8656_s0 + $0x1e30] sm:$0xff] }
 0x257   :  { %2845 = vmatpush.msra.mxu2 %v3850_v19  ;;  %2873 = vmatpush.msra.mxu3 %v3867_v50  ;;  %v1928_v19 = vadd.f32 %v7724_v51, %v1899_v63  ;;  %v3893_v50 = vld [vmem:[%s8656_s0 + $0x1e58] sm:$0xff]  ;;  %v4119_v51 = vld [vmem:[%s8657_s1 + $0xd0] sm:$0xff]  ;;  %v3939_v35 = vld [vmem:[%s8656_s0 + $0x1fc8] sm:$0xff] }
 0x258   :  { %2787 = vmatpush.msra.mxu0 %v3818_v46  ;;  %2815 = vmatpush.msra.mxu1 %v3835_v0  ;;  %v8280_v36 = vpop.f32.mrf.mxu2  ;;  %v2041_v0 = vadd.f32 %v7931_v32, %v2012_v57  ;;  %v3941_v32 = vld [vmem:[%s8656_s0 + $0x1fd8] sm:$0xff]  ;;  %v4122_v63 = vld [vmem:[%s8657_s1 + $0x140] sm:$0xff] }
 0x259   :  { %2788 = vmatmul.f32.vlgmr.msra.gmra.mxu0 %v4114_v17  ;;  %2846 = vmatmul.f32.vlgmr.msra.gmra.mxu2 %v4115_v37  ;;  %v1957_v33 = vadd.f32 %v7929_v7, %v1928_v19  ;;  %v3909_v7 = vld [vmem:[%s8656_s0 + $0x1ed8] sm:$0xff]  ;;  %v3923_v17 = vld [vmem:[%s8656_s0 + $0x1f48] sm:$0xff] }
 0x25a   :  { %2874 = vmatpush.msra.mxu3 %v3866_v12  ;;  %2946 = vmatpush.msrb.mxu2 %v3929_v52  ;;  %v3892_v52 = vld [vmem:[%s8656_s0 + $0x1e50] sm:$0xff]  ;;  %v3937_v57 = vld [vmem:[%s8656_s0 + $0x1fb8] sm:$0xff] }
 0x25b   :  { %2816 = vmatpush.msra.mxu1 %v3834_v16  ;;  %2888 = vmatpush.msrb.mxu0 %v3897_v4  ;;  %v8302_v27 = vpop.f32.mrf.mxu3  ;;  %v2070_v16 = vadd.f32 %v8143_v3, %v2041_v0  ;;  %v2154_v4 = vadd.f32 %v8145_v23, %v2125_v24  ;;  %v3940_v3 = vld [vmem:[%s8656_s0 + $0x1fd0] sm:$0xff] }
 0x25c   :  { %2817 = vmatmul.f32.vlgmr.msra.gmra.mxu1 %v4116_v10  ;;  %2875 = vmatmul.f32.vlgmr.msra.gmra.mxu3 %v4117_v38  ;;  %v2179_v6 = vpop.f32.mrf.mxu0  ;;  %v3907_v38 = vld [vmem:[%s8656_s0 + $0x1ec8] sm:$0xff]  ;;  %v3936_v24 = vld [vmem:[%s8656_s0 + $0x1fb0] sm:$0xff] }
 0x25d   :  { %2947 = vmatpush.msrb.mxu2 %v3928_v21  ;;  %2975 = vmatpush.msrb.mxu3 %v3945_v53  ;;  %v2180_v28 = vadd.f32 %v2179_v6, %v2151_v54  ;;  %v3908_v21 = vld [vmem:[%s8656_s0 + $0x1ed0] sm:$0xff]  ;;  %v2099_v10 = vadd.f32 %v8162_v40, %v2070_v16  ;;  %v3921_v54 = vld [vmem:[%s8656_s0 + $0x1f38] sm:$0xff]  ;;  %v3938_v40 = vld [vmem:[%s8656_s0 + $0x1fc0] sm:$0xff] }
 0x25e   :  { %2889 = vmatpush.msrb.mxu0 %v3896_v45  ;;  %2917 = vmatpush.msrb.mxu1 %v3913_v5  ;;  %v1986_v45 = vadd.f32 %v7945_v14, %v1957_v33  ;;  %v3922_v5 = vld [vmem:[%s8656_s0 + $0x1f40] sm:$0xff] }
 0x25f   :  { %2948 = vmatpush.msrb.mxu2 %v3927_v26  ;;  %2976 = vmatpush.msrb.mxu3 %v3944_v42  ;;  %v2208_v1 = vpop.f32.mrf.mxu1  ;;  %v3890_v14 = vld [vmem:[%s8656_s0 + $0x1e40] sm:$0xff]  ;;  %v2128_v29 = vadd.f32 %v8199_v18, %v2099_v10  ;;  %v4123_v18 = vld [vmem:[%s8657_s1 + $0x150] sm:$0xff]  ;;  %v3883_v10 = vld [vmem:[%s8656_s0 + $0x1e08] sm:$0xff] }
 0x260   :  { %2890 = vmatpush.msrb.mxu0 %v3895_v58  ;;  %2918 = vmatpush.msrb.mxu1 %v3912_v25  ;;  %v2209_v46 = vadd.f32 %v2208_v1, %v2180_v28  ;;  %v2015_v42 = vadd.f32 %v7977_v13, %v1986_v45  ;;  %v3889_v13 = vld [vmem:[%s8656_s0 + $0x1e38] sm:$0xff]  ;;  %v3906_v25 = vld [vmem:[%s8656_s0 + $0x1ec0] sm:$0xff]  ;;  %v3920_v28 = vld [vmem:[%s8656_s0 + $0x1f30] sm:$0xff] }
 0x261   :  { %2949 = vmatpush.msrb.mxu2 %v3926_v20  ;;  %2977 = vmatpush.msrb.mxu3 %v3943_v60  ;;  %v4124_v1 = vld [vmem:[%s8657_s1 + $0x148] sm:$0xff] }
 0x262   :  { %2891 = vmatpush.msrb.mxu0 %v3894_v55  ;;  %2919 = vmatpush.msrb.mxu1 %v3911_v43  ;;  %v2237_v56 = vpop.f32.mrf.mxu2  ;;  %v2044_v60 = vadd.f32 %v7997_v44, %v2015_v42  ;;  %v3905_v44 = vld [vmem:[%s8656_s0 + $0x1eb8] sm:$0xff]  ;;  %v2157_v55 = vadd.f32 %v8224_v39, %v2128_v29 }
 0x263   :  { %2791 = vmatmul.f32.gmra.mxu0 %v4118_v31  ;;  %2849 = vmatmul.f32.gmra.mxu2 %v4119_v51  ;;  %v2238_v12 = vadd.f32 %v2237_v56, %v2209_v46  ;;  %v3904_v46 = vld [vmem:[%s8656_s0 + $0x1eb0] sm:$0xff]  ;;  %v3918_v31 = vld [vmem:[%s8656_s0 + $0x1f20] sm:$0xff]  ;;  %v3903_v56 = vld [vmem:[%s8656_s0 + $0x1ea8] sm:$0xff] }
 0x264   :  { %2950 = vmatpush.msrb.mxu2 %v3925_v2  ;;  %2978 = vmatpush.msrb.mxu3 %v3942_v62  ;;  %v4125_v2 = vld [vmem:[%s8657_s1 + $0x158] sm:$0xff]  ;;  %v3919_v62 = vld [vmem:[%s8656_s0 + $0x1f28] sm:$0xff]  ;;  %v2073_v39 = vadd.f32 %v8222_v11, %v2044_v60  ;;  %v3886_v51 = vld [vmem:[%s8656_s0 + $0x1e20] sm:$0xff] }
 0x265   :  { %2892 = vmatpush.msrb.mxu0 %v3893_v50  ;;  %2920 = vmatpush.msrb.mxu1 %v3910_v9  ;;  %v2266_v8 = vpop.f32.mrf.mxu3  ;;  %v3887_v9 = vld [vmem:[%s8656_s0 + $0x1e28] sm:$0xff] }
 0x266   :  { %2820 = vmatmul.f32.gmra.mxu1 %v4120_v41  ;;  %2878 = vmatmul.f32.gmra.mxu3 %v4121_v30  ;;  %v2182_v23 = vpop.f32.mrf.mxu0  ;;  %v2267_v37 = vadd.f32 %v2266_v8, %v2238_v12  ;;  %v3935_v11 = vld [vmem:[%s8656_s0 + $0x1fa8] sm:$0xff]  ;;  %v3934_v12 = vld [vmem:[%s8656_s0 + $0x1fa0] sm:$0xff]  ;;  %v4127_v41 = vld [vmem:[%s8657_s1 + $0x1d0] sm:$0x7f] }
 0x267   :  { %2951 = vmatpush.msrb.mxu2 %v3924_v49  ;;  %2979 = vmatpush.msrb.mxu3 %v3941_v32  ;;  %v2183_v53 = vadd.f32 %v2182_v23, %v2154_v4  ;;  %v2102_v49 = vadd.f32 %v8239_v61, %v2073_v39  ;;  %v3917_v32 = vld [vmem:[%s8656_s0 + $0x1f18] sm:$0xff]  ;;  %v3902_v61 = vld [vmem:[%s8656_s0 + $0x1ea0] sm:$0xff] }
 0x268   :  { %2893 = vmatpush.msrb.mxu0 %v3892_v52  ;;  %2921 = vmatpush.msrb.mxu1 %v3909_v7  ;;  %3686 = vst.msk [vmem:[%s8659_s3 + $0x40] sm:$0xff] %vm825_vm0, %v2267_v37  ;;  %v3885_v7 = vld [vmem:[%s8656_s0 + $0x1e18] sm:$0xff]  ;;  %v4126_v8 = vld [vmem:[%s8657_s1 + $0x1c0] sm:$0x7f]  ;;  %v4128_v37 = vld [vmem:[%s8657_s1 + $0x1c8] sm:$0x7f] }
 0x269   :  { %2952 = vmatpush.msrb.mxu2 %v3923_v17  ;;  %2980 = vmatpush.msrb.mxu3 %v3940_v3  ;;  %v2211_v26 = vpop.f32.mrf.mxu1  ;;  %v2131_v16 = vadd.f32 %v8280_v36, %v2102_v49  ;;  %v3916_v17 = vld [vmem:[%s8656_s0 + $0x1f10] sm:$0xff]  ;;  %v3933_v36 = vld [vmem:[%s8656_s0 + $0x1f98] sm:$0xff] }
 0x26a   :  { %2894 = vmatpush.msrb.mxu0 %v3891_v15  ;;  %2922 = vmatpush.msrb.mxu1 %v3908_v21  ;;  %v2212_v58 = vadd.f32 %v2211_v26, %v2183_v53  ;;  %v3884_v3 = vld [vmem:[%s8656_s0 + $0x1e10] sm:$0xff]  ;;  %v3901_v23 = vld [vmem:[%s8656_s0 + $0x1e98] sm:$0xff]  ;;  %v3915_v21 = vld [vmem:[%s8656_s0 + $0x1f08] sm:$0xff] }
 0x26b   :  { %2953 = vmatpush.msrb.mxu2 %v3922_v5  ;;  %2981 = vmatpush.msrb.mxu3 %v3939_v35  ;;  %v4129_v15 = vld [vmem:[%s8657_s1 + $0x1d8] sm:$0x7f]  ;;  %v3932_v53 = vld [vmem:[%s8656_s0 + $0x1f90] sm:$0xff]  ;;  %v2160_v45 = vadd.f32 %v8302_v27, %v2131_v16  ;;  %v3914_v26 = vld [vmem:[%s8656_s0 + $0x1f00] sm:$0xff] }
 0x26c   :  { %2895 = vmatpush.msrb.mxu0 %v3890_v14  ;;  %2923 = vmatpush.msrb.mxu1 %v3907_v38  ;;  %v2240_v6 = vpop.f32.mrf.mxu2  ;;  %v3900_v14 = vld [vmem:[%s8656_s0 + $0x1e90] sm:$0xff]  ;;  %v3931_v27 = vld [vmem:[%s8656_s0 + $0x1f88] sm:$0xff] }
 0x26d   :  { %2794 = vmatmul.f32.gmra.mxu0 %v4122_v63  ;;  %2852 = vmatmul.f32.gmra.mxu2 %v4123_v18  ;;  %v2241_v20 = vadd.f32 %v2240_v6, %v2212_v58  ;;  %v4130_v63 = vld [vmem:[%s8657_s1 + $0x60] sm:$0xff]  ;;  %v4131_v18 = vld [vmem:[%s8657_s1 + $0x70] sm:$0xff] }
 0x26e   :  { %2954 = vmatpush.msrb.mxu2 %v3921_v54  ;;  %2982 = vmatpush.msrb.mxu3 %v3938_v40  ;;  %v3882_v54 = vld [vmem:[%s8656_s0 + $0x1e00] sm:$0xff]  ;;  %v3899_v40 = vld [vmem:[%s8656_s0 + $0x1e88] sm:$0xff] }
 0x26f   :  { %2896 = vmatpush.msrb.mxu0 %v3889_v13  ;;  %2924 = vmatpush.msrb.mxu1 %v3906_v25  ;;  %v2269_v43 = vpop.f32.mrf.mxu3  ;;  %v3017_v29 = vld [vmem:[%s8659_s3 + $0x40] sm:$0xff] }
 0x270   :  { %2823 = vmatmul.f32.gmra.mxu1 %v4124_v1  ;;  %2881 = vmatmul.f32.gmra.mxu3 %v4125_v2  ;;  %v2185_v19 = vpop.f32.mrf.mxu0  ;;  %v2270_v50 = vadd.f32 %v2269_v43, %v2241_v20  ;;  %v3930_v13 = vld [vmem:[%s8656_s0 + $0x1f80] sm:$0xff]  ;;  %v3049_v20 = vsel %vm825_vm0, %v3017_v29, 0.0 }
 0x271   :  { %2955 = vmatpush.msrb.mxu2 %v3920_v28  ;;  %2983 = vmatpush.msrb.mxu3 %v3937_v57  ;;  %v2186_v0 = vadd.f32 %v2185_v19, %v2157_v55  ;;  %v3898_v25 = vld [vmem:[%s8656_s0 + $0x1e80] sm:$0xff]  ;;  %v4132_v57 = vld [vmem:[%s8657_s1 + $0x68] sm:$0xff] }
 0x272   :  { %2897 = vmatpush.msrb.mxu0 %v3888_v22  ;;  %2925 = vmatpush.msrb.mxu1 %v3905_v44  ;;  %3687 = vst.msk [vmem:[%s8659_s3 + $0x48] sm:$0xff] %vm825_vm0, %v2270_v50  ;;  %v4133_v22 = vld [vmem:[%s8657_s1 + $0x78] sm:$0xff]  ;;  %v4134_v19 = vld [vmem:[%s8657_s1 + $0xe0] sm:$0xff]  ;;  %v4135_v50 = vld [vmem:[%s8657_s1 + $0xf0] sm:$0xff] }
 0x273   :  { %2956 = vmatpush.msrb.mxu2 %v3919_v62  ;;  %2984 = vmatpush.msrb.mxu3 %v3936_v24  ;;  %v2214_v33 = vpop.f32.mrf.mxu1 }
 0x274   :  { %2898 = vmatpush.msrb.mxu0 %v3887_v9  ;;  %2926 = vmatpush.msrb.mxu1 %v3904_v46  ;;  %v2215_v52 = vadd.f32 %v2214_v33, %v2186_v0  ;;  %v4136_v46 = vld [vmem:[%s8657_s1 + $0xe8] sm:$0xff]  ;;  %v4137_v0 = vld [vmem:[%s8657_s1 + $0xf8] sm:$0xff] }
 0x275   :  { %2957 = vmatpush.msrb.mxu2 %v3918_v31  ;;  %2985 = vmatpush.msrb.mxu3 %v3935_v11 }
 0x276   :  { %2899 = vmatpush.msrb.mxu0 %v3886_v51  ;;  %2927 = vmatpush.msrb.mxu1 %v3903_v56  ;;  %v2243_v4 = vpop.f32.mrf.mxu2 }
 0x277   :  { %2797 = vmatmul.f32.gmra.mxu0 %v4126_v8  ;;  %2855 = vmatmul.f32.gmra.mxu2 %v4127_v41  ;;  %v2244_v30 = vadd.f32 %v2243_v4, %v2215_v52  ;;  %v4138_v52 = vld [vmem:[%s8657_s1 + $0x160] sm:$0xff] }
 0x278   :  { %2958 = vmatpush.msrb.mxu2 %v3917_v32  ;;  %2986 = vmatpush.msrb.mxu3 %v3934_v12 }
 0x279   :  { %2900 = vmatpush.msrb.mxu0 %v3885_v7  ;;  %2928 = vmatpush.msrb.mxu1 %v3902_v61  ;;  %v3018_v62 = vld [vmem:[%s8659_s3 + $0x48] sm:$0xff]  ;;  %v4139_v7 = vld [vmem:[%s8657_s1 + $0x170] sm:$0xff] }
 0x27a   :  { %2826 = vmatmul.f32.gmra.mxu1 %v4128_v37  ;;  %2884 = vmatmul.f32.gmra.mxu3 %v4129_v15  ;;  %v2188_v5 = vpop.f32.mrf.mxu0  ;;  %v2272_v35 = vpop.f32.mrf.mxu3  ;;  %v3052_v9 = vsel %vm825_vm0, %v3018_v62, 0.0  ;;  %v4140_v61 = vld [vmem:[%s8657_s1 + $0x168] sm:$0xff]  ;;  %v4145_v15 = vld [vmem:[%s8657_s1 + $0x1f8] sm:$0x7f] }
 0x27b   :  { %2959 = vmatpush.msrb.mxu2 %v3916_v17  ;;  %2987 = vmatpush.msrb.mxu3 %v3933_v36  ;;  %v2273_v38 = vadd.f32 %v2272_v35, %v2244_v30  ;;  %v2189_v42 = vadd.f32 %v2188_v5, %v2160_v45  ;;  %v4142_v30 = vld [vmem:[%s8657_s1 + $0x1e0] sm:$0x7f]  ;;  %v4143_v17 = vld [vmem:[%s8657_s1 + $0x1f0] sm:$0x7f]  ;;  %v4144_v37 = vld [vmem:[%s8657_s1 + $0x1e8] sm:$0x7f] }
 0x27c   :  { %2901 = vmatpush.msrb.mxu0 %v3884_v3  ;;  %2929 = vmatpush.msrb.mxu1 %v3901_v23 }
 0x27d   :  { %2960 = vmatpush.msrb.mxu2 %v3915_v21  ;;  %2988 = vmatpush.msrb.mxu3 %v3932_v53  ;;  %3688 = vst.msk [vmem:[%s8659_s3 + $0x50] sm:$0xff] %vm825_vm0, %v2273_v38 }
 0x27e   :  { %2902 = vmatpush.msrb.mxu0 %v3883_v10  ;;  %2930 = vmatpush.msrb.mxu1 %v3900_v14  ;;  %v2217_v58 = vpop.f32.mrf.mxu1 }
 0x27f   :  { %2961 = vmatpush.msrb.mxu2 %v3914_v26  ;;  %2989 = vmatpush.msrb.mxu3 %v3931_v27  ;;  %v2218_v6 = vadd.f32 %v2217_v58, %v2189_v42 }
 0x280   :  { %2903 = vmatpush.msrb.mxu0 %v3882_v54  ;;  %2931 = vmatpush.msrb.mxu1 %v3899_v40 }
 0x281   :  { %2904 = vmatmul.f32.vlgmr.msrb.gmra.mxu0 %v4130_v63  ;;  %2962 = vmatmul.f32.vlgmr.msrb.gmra.mxu2 %v4131_v18  ;;  %v2246_v60 = vpop.f32.mrf.mxu2 }
 0x282   :  { %2990 = vmatpush.msrb.mxu3 %v3930_v13  ;;  %2932 = vmatpush.msrb.mxu1 %v3898_v25  ;;  %v2247_v28 = vadd.f32 %v2246_v60, %v2218_v6 }
 0x283   :  { %2933 = vmatmul.f32.vlgmr.msrb.gmra.mxu1 %v4132_v57  ;;  %2991 = vmatmul.f32.vlgmr.msrb.gmra.mxu3 %v4133_v22 }
 0x284   :  { %3050 = vadd.xlane.f32.xlu2 %v3049_v20  ;;  %v2275_v44 = vpop.f32.mrf.mxu3  ;;  %v3019_v55 = vld [vmem:[%s8659_s3 + $0x50] sm:$0xff] }
 0x285   :  { %v2276_v43 = vadd.f32 %v2275_v44, %v2247_v28  ;;  %v2557_v1 = vpop.f32.mrf.mxu0  ;;  %v3055_v2 = vsel %vm825_vm0, %v3019_v55, 0.0 }
 0x286   :  { %v2558_v24 = vadd.f32 %v2557_v1, %v5719_v59  ;;  %3056 = vadd.xlane.f32.xlu0 %v3055_v2 }
 0x287   :  { %3689 = vst.msk [vmem:[%s8659_s3 + $0x58] sm:$0x7f] %vm829_vm1, %v2276_v43 }
 0x288   :  { %v2586_v39 = vpop.f32.mrf.mxu1 }
 0x289   :  { %2907 = vmatmul.f32.gmra.mxu0 %v4134_v19  ;;  %2965 = vmatmul.f32.gmra.mxu2 %v4135_v50  ;;  %v2587_v59 = vadd.f32 %v2586_v39, %v2558_v24 }
 0x28b   :  { %2936 = vmatmul.f32.gmra.mxu1 %v4136_v46  ;;  %2994 = vmatmul.f32.gmra.mxu3 %v4137_v0  ;;  %v2615_v31 = vpop.f32.mrf.mxu2 }
 0x28c   :  { %3053 = vadd.xlane.f32.xlu2 %v3052_v9  ;;  %v2616_v11 = vadd.f32 %v2615_v31, %v2587_v59 }
 0x28e   :  { %v3020_v51 = vld [vmem:[%s8659_s3 + $0x58] sm:$0x7f] }
 0x28f   :  { %v2560_v56 = vpop.f32.mrf.mxu0  ;;  %v2644_v33 = vpop.f32.mrf.mxu3  ;;  %v3058_v49 = vsel %vm829_vm1, %v3020_v51, 0.0 }
 0x290   :  { %v2561_v32 = vadd.f32 %v2560_v56, %v5792_v47  ;;  %v8579_v12 = vadd.f32 %v2644_v33, %v2616_v11  ;;  %3059 = vadd.xlane.f32.xlu0 %v3058_v49  ;;  %v4141_v47 = vld [vmem:[%s8657_s1 + $0x178] sm:$0xff] }
 0x291   :  { %2910 = vmatmul.f32.gmra.mxu0 %v4138_v52  ;;  %2968 = vmatmul.f32.gmra.mxu2 %v4139_v7 }
 0x293   :  { %2939 = vmatmul.f32.gmra.mxu1 %v4140_v61  ;;  %2997 = vmatmul.f32.gmra.mxu3 %v4141_v47  ;;  %v2589_v16 = vpop.f32.mrf.mxu1 }
 0x294   :  { %v2590_v4 = vadd.f32 %v2589_v16, %v2561_v32 }
 0x296   :  { %v2618_v8 = vpop.f32.mrf.mxu2 }
 0x297   :  { %v2619_v41 = vadd.f32 %v2618_v8, %v2590_v4 }
 0x299   :  { %2913 = vmatmul.f32.gmra.mxu0 %v4142_v30  ;;  %2971 = vmatmul.f32.gmra.mxu2 %v4143_v17  ;;  %v2647_v36 = vpop.f32.mrf.mxu3 }
 0x29a   :  { %v2563_v3 = vpop.f32.mrf.mxu0  ;;  %v2648_v23 = vadd.f32 %v2647_v36, %v2619_v41 }
 0x29b   :  { %2942 = vmatmul.f32.gmra.mxu1 %v4144_v37  ;;  %3000 = vmatmul.f32.gmra.mxu3 %v4145_v15  ;;  %v2564_v21 = vadd.f32 %v2563_v3, %v5875_v48 }
 0x29d   :  { %v2592_v53 = vpop.f32.mrf.mxu1 }
 0x29e   :  { %v2593_v45 = vadd.f32 %v2592_v53, %v2564_v21 }
 0x2a0   :  { %v2621_v5 = vpop.f32.mrf.mxu2 }
 0x2a1   :  { %v2622_v35 = vadd.f32 %v2621_v5, %v2593_v45 }
 0x2a3   :  { %v2650_v10 = vpop.f32.mrf.mxu3 }
 0x2a4   :  { %v2566_v14 = vpop.f32.mrf.mxu0  ;;  %v2651_v38 = vadd.f32 %v2650_v10, %v2622_v35 }
 0x2a5   :  { %v2567_v26 = vadd.f32 %v2566_v14, %v5954_v34 }
 0x2a7   :  { %v2595_v27 = vpop.f32.mrf.mxu1 }
 0x2a8   :  { %v2596_v42 = vadd.f32 %v2595_v27, %v2567_v26 }
 0x2aa   :  { %v2624_v54 = vpop.f32.mrf.mxu2 }
 0x2ab   :  { %v2625_v40 = vadd.f32 %v2624_v54, %v2596_v42 }
 0x2ad   :  { %v2653_v29 = vpop.f32.mrf.mxu3 }
 0x2ae   :  { %v2654_v58 = vadd.f32 %v2653_v29, %v2625_v40  ;;  %v2673_v13 = vpop.f32.mrf.mxu0 }
 0x2af   :  { %v2674_v59 = vadd.f32 %v2673_v13, %v8579_v12 }
 0x2b1   :  { %v2702_v25 = vpop.f32.mrf.mxu1 }
 0x2b2   :  { %v2703_v31 = vadd.f32 %v2702_v25, %v2674_v59 }
 0x2b4   :  { %v2731_v6 = vpop.f32.mrf.mxu2 }
 0x2b5   :  { %v2732_v11 = vadd.f32 %v2731_v6, %v2703_v31 }
 0x2b7   :  { %v2760_v63 = vpop.f32.mrf.mxu3 }
 0x2b8   :  { %v2676_v48 = vpop.f32.mrf.mxu0  ;;  %v2761_v49 = vadd.f32 %v2760_v63, %v2732_v11 }
 0x2b9   :  { %v2677_v56 = vadd.f32 %v2676_v48, %v2648_v23 }
 0x2bb   :  { %v2705_v18 = vpop.f32.mrf.mxu1 }
 0x2bc   :  { %v2706_v32 = vadd.f32 %v2705_v18, %v2677_v56 }
 0x2be   :  { %v2734_v20 = vpop.f32.mrf.mxu2 }
 0x2bf   :  { %v2735_v47 = vadd.f32 %v2734_v20, %v2706_v32 }
 0x2c1   :  { %v2763_v60 = vpop.f32.mrf.mxu3 }
 0x2c2   :  { %v2679_v28 = vpop.f32.mrf.mxu0  ;;  %v2764_v41 = vadd.f32 %v2763_v60, %v2735_v47 }
 0x2c3   :  { %v2680_v16 = vadd.f32 %v2679_v28, %v2651_v38 }
 0x2c5   :  { %v2708_v57 = vpop.f32.mrf.mxu1 }
 0x2c6   :  { %v2709_v12 = vadd.f32 %v2708_v57, %v2680_v16 }
 0x2c8   :  { %v2737_v22 = vpop.f32.mrf.mxu2 }
 0x2c9   :  { %v2738_v3 = vadd.f32 %v2737_v22, %v2709_v12 }
 0x2cb   :  { %v2766_v44 = vpop.f32.mrf.mxu3 }
 0x2cc   :  { %v2682_v55 = vpop.f32.mrf.mxu0  ;;  %v2767_v35 = vadd.f32 %v2766_v44, %v2738_v3 }
 0x2cd   :  { %v2683_v23 = vadd.f32 %v2682_v55, %v2654_v58 }
 0x2cf   :  { %v2711_v34 = vpop.f32.mrf.mxu1 }
 0x2d0   :  { %v2712_v14 = vadd.f32 %v2711_v34, %v2683_v23 }
 0x2d2   :  { %v2740_v43 = vpop.f32.mrf.mxu2 }
 0x2d3   :  { %v2741_v42 = vadd.f32 %v2740_v43, %v2712_v14 }
 0x2d5   :  { %v2769_v1 = vpop.f32.mrf.mxu3 }
 0x2d6   :  { %v2789_v2 = vpop.f32.mrf.mxu0  ;;  %v2770_v18 = vadd.f32 %v2769_v1, %v2741_v42 }
 0x2d7   :  { %v2790_v52 = vadd.f32 %v2789_v2, %v2761_v49 }
 0x2d9   :  { %v2818_v62 = vpop.f32.mrf.mxu1 }
 0x2da   :  { %v2819_v4 = vadd.f32 %v2818_v62, %v2790_v52 }
 0x2dc   :  { %v2847_v24 = vpop.f32.mrf.mxu2 }
 0x2dd   :  { %v2848_v30 = vadd.f32 %v2847_v24, %v2819_v4 }
 0x2df   :  { %v2876_v39 = vpop.f32.mrf.mxu3 }
 0x2e0   :  { %v2792_v19 = vpop.f32.mrf.mxu0  ;;  %v2877_v37 = vadd.f32 %v2876_v39, %v2848_v30 }
 0x2e1   :  { %v2793_v36 = vadd.f32 %v2792_v19, %v2764_v41  ;;  %v3027_v41 = vpop.xlane.xlu2 %3026 }
 0x2e3   :  { %v2821_v50 = vpop.f32.mrf.mxu1 }
 0x2e4   :  { %v2822_v53 = vadd.f32 %v2821_v50, %v2793_v36 }
 0x2e6   :  { %v2850_v9 = vpop.f32.mrf.mxu2 }
 0x2e7   :  { %v2851_v10 = vadd.f32 %v2850_v9, %v2822_v53  ;;  %v3105_v53 = vlaneseq }
 0x2e9   :  { %v2879_v46 = vpop.f32.mrf.mxu3  ;;  %v3030_v30 = vpop.xlane.xlu2 %3029 }
 0x2ea   :  { %v2795_v0 = vpop.f32.mrf.mxu0  ;;  %v2880_v54 = vadd.f32 %v2879_v46, %v2851_v10  ;;  %v3074_v14 = vmul.f32 0.020408163, %v3030_v30 }
 0x2eb   :  { %v2796_v26 = vadd.f32 %v2795_v0, %v2767_v35  ;;  %v3106_v35 = vand.u32 127, %v3105_v53 }
 0x2ed   :  { %v2824_v51 = vpop.f32.mrf.mxu1  ;;  %v3108_v10 = vadd.s32 4294967288, %v3106_v35 }
 0x2ee   :  { %v2825_v25 = vadd.f32 %v2824_v51, %v2796_v26  ;;  %v3073_v26 = vmul.f32 0.020408163, %v3027_v41 }
 0x2ef   :  { %v3109_v42 = vperm.slane %v3074_v14, %v3108_v10 }
 0x2f0   :  { %v2853_v33 = vpop.f32.mrf.mxu2 }
 0x2f1   :  { %v2854_v58 = vadd.f32 %v2853_v33, %v2825_v25 }
 0x2f3   :  { %v2882_v7 = vpop.f32.mrf.mxu3 }
 0x2f4   :  { %v2798_v61 = vpop.f32.mrf.mxu0  ;;  %v2883_v57 = vadd.f32 %v2882_v7, %v2854_v58 }
 0x2f5   :  { %v2799_v20 = vadd.f32 %v2798_v61, %v2770_v18  ;;  %v3107_v18 = vperm.slane %v3073_v26, %v3106_v35 }
 0x2f7   :  { %v2827_v8 = vpop.f32.mrf.mxu1 }
 0x2f8   :  { %v2828_v34 = vadd.f32 %v2827_v8, %v2799_v20 }
 0x2fa   :  { %v2856_v17 = vpop.f32.mrf.mxu2 }
 0x2fb   :  { %v2857_v24 = vadd.f32 %v2856_v17, %v2828_v34  ;;  %v3033_v17 = vpop.xlane.xlu2 %3032 }
 0x2fc   :  { %v3075_v58 = vmul.f32 0.020408163, %v3033_v17 }
 0x2fd   :  { %v2885_v15 = vpop.f32.mrf.mxu3 }
 0x2fe   :  { %v2905_v21 = vpop.f32.mrf.mxu0  ;;  %v2886_v9 = vadd.f32 %v2885_v15, %v2857_v24 }
 0x2ff   :  { %v2906_v45 = vadd.f32 %v2905_v21, %v2877_v37  ;;  %v3039_v37 = vpop.xlane.xlu0 %3038  ;;  %v3042_v21 = vpop.xlane.xlu1 %3041 }
 0x300   :  { %v2934_v5 = vpop.f32.mrf.mxu1  ;;  %v3077_v25 = vmul.f32 0.020408163, %v3039_v37 }
 0x301   :  { %v2935_v38 = vadd.f32 %v2934_v5, %v2906_v45 }
 0x303   :  { %v3036_v12 = vpop.xlane.xlu2 %3035 }
 0x304   :  { %v2963_v27 = vpop.f32.mrf.mxu2 }
 0x305   :  { %v2964_v40 = vadd.f32 %v2963_v27, %v2935_v38  ;;  %v3078_v38 = vmul.f32 0.020408163, %v3042_v21 }
 0x306   :  { %v2908_v29 = vpop.f32.mrf.mxu0  ;;  %v2992_v13 = vpop.f32.mrf.mxu3 }
 0x307   :  { %v2909_v6 = vadd.f32 %v2908_v29, %v2880_v54  ;;  %v2993_v63 = vadd.f32 %v2992_v13, %v2964_v40  ;;  %v3057_v23 = vpop.xlane.xlu0 %3056  ;;  %v3112_v54 = vadd.s32 4294967280, %v3106_v35 }
 0x308   :  { %v2937_v48 = vpop.f32.mrf.mxu1 }
 0x309   :  { %3946 = vst.msk [vmem:[%s8659_s3 + $0x60] sm:$0xff] %vm825_vm0, %v2993_v63  ;;  %v2938_v60 = vadd.f32 %v2937_v48, %v2909_v6  ;;  %v3083_v63 = vmul.f32 0.020408163, %v3057_v23 }
 0x30b   :  { %v3045_v36 = vpop.xlane.xlu2 %3044  ;;  %v3130_v24 = vperm.slane %v3083_v63, %v3112_v54 }
 0x30c   :  { %v2966_v28 = vpop.f32.mrf.mxu2  ;;  %v3079_v40 = vmul.f32 0.020408163, %v3045_v36 }
 0x30d   :  { %v2967_v22 = vadd.f32 %v2966_v28, %v2938_v60  ;;  %v3116_v28 = vadd.s32 4294967272, %v3106_v35 }
 0x30e   :  { %v2911_v44 = vpop.f32.mrf.mxu0  ;;  %v2995_v55 = vpop.f32.mrf.mxu3  ;;  %v3123_v34 = vperm.slane %v3079_v40, %v3112_v54 }
 0x30f   :  { %v2912_v43 = vadd.f32 %v2911_v44, %v2883_v57  ;;  %v2996_v2 = vadd.f32 %v2995_v55, %v2967_v22  ;;  %v3060_v27 = vpop.xlane.xlu0 %3059  ;;  %v3076_v57 = vmul.f32 0.020408163, %v3036_v12  ;;  %v3121_v22 = vperm.slane %v3078_v38, %v3108_v10 }
 0x310   :  { %v2940_v62 = vpop.f32.mrf.mxu1  ;;  %v3021_v1 = vld [vmem:[%s8659_s3 + $0x60] sm:$0xff]  ;;  %v3084_v60 = vmul.f32 0.020408163, %v3060_v27  ;;  %v3111_v55 = vsel %vm3110_vm2, %v3109_v42, %v3107_v18 }
 0x311   :  { %3947 = vst.msk [vmem:[%s8659_s3 + $0x68] sm:$0xff] %vm825_vm0, %v2996_v2  ;;  %v3061_v39 = vsel %vm825_vm0, %v3021_v1, 0.0  ;;  %v2941_v19 = vadd.f32 %v2940_v62, %v2912_v43  ;;  %v3120_v62 = vperm.slane %v3077_v25, %v3106_v35 }
 0x312   :  { %3062 = vadd.xlane.f32.xlu1 %v3061_v39 }
 0x313   :  { %v3048_v3 = vpop.xlane.xlu2 %3047 }
 0x314   :  { %v2969_v50 = vpop.f32.mrf.mxu2  ;;  %v3080_v6 = vmul.f32 0.020408163, %v3048_v3 }
 0x315   :  { %v2970_v59 = vadd.f32 %v2969_v50, %v2941_v19  ;;  %v3113_v19 = vperm.slane %v3075_v58, %v3112_v54 }
 0x316   :  { %v2914_v46 = vpop.f32.mrf.mxu0  ;;  %v2998_v0 = vpop.f32.mrf.mxu3  ;;  %v3125_v1 = vperm.slane %v3080_v6, %v3116_v28 }
 0x317   :  { %v2915_v31 = vadd.f32 %v2914_v46, %v2886_v9  ;;  %v2999_v11 = vadd.f32 %v2998_v0, %v2970_v59  ;;  %v3132_v9 = vperm.slane %v3084_v60, %v3116_v28  ;;  %v3117_v59 = vperm.slane %v3076_v57, %v3116_v28 }
 0x318   :  { %v2943_v51 = vpop.f32.mrf.mxu1  ;;  %v3022_v56 = vld [vmem:[%s8659_s3 + $0x68] sm:$0xff]  ;;  %v3122_v46 = vsel %vm3110_vm2, %v3121_v22, %v3120_v62 }
 0x319   :  { %3948 = vst.msk [vmem:[%s8659_s3 + $0x70] sm:$0xff] %vm825_vm0, %v2999_v11  ;;  %v3064_v33 = vsel %vm825_vm0, %v3022_v56, 0.0  ;;  %v2944_v49 = vadd.f32 %v2943_v51, %v2915_v31  ;;  %v3124_v31 = vsel %vm3114_vm3, %v3123_v34, %v3122_v46 }
 0x31a   :  { %3065 = vadd.xlane.f32.xlu2 %v3064_v33  ;;  %v3126_v33 = vsel %vm3118_vm4, %v3125_v1, %v3124_v31 }
 0x31b   :  { %v3051_v15 = vpop.xlane.xlu2 %3050 }
 0x31c   :  { %v2972_v32 = vpop.f32.mrf.mxu2  ;;  %v3081_v20 = vmul.f32 0.020408163, %v3051_v15 }
 0x31d   :  { %v2973_v52 = vadd.f32 %v2972_v32, %v2944_v49 }
 0x31e   :  { %v3001_v7 = vpop.f32.mrf.mxu3  ;;  %v3127_v50 = vperm.slane %v3081_v20, %v3106_v35 }
 0x31f   :  { %v3002_v61 = vadd.f32 %v3001_v7, %v2973_v52  ;;  %v3115_v7 = vsel %vm3114_vm3, %v3113_v19, %v3111_v55 }
 0x320   :  { %v3023_v47 = vld [vmem:[%s8659_s3 + $0x70] sm:$0xff] }
 0x321   :  { %3949 = vst.msk [vmem:[%s8659_s3 + $0x78] sm:$0x7f] %vm829_vm1, %v3002_v61  ;;  %v3067_v16 = vsel %vm825_vm0, %v3023_v47, 0.0  ;;  %v3119_v47 = vsel %vm3118_vm4, %v3117_v59, %v3115_v7 }
 0x322   :  { %3068 = vadd.xlane.f32.xlu1 %v3067_v16  ;;  %v3142_v41 = vsel %vm3141_vm5, %v3126_v33, %v3119_v47 }
 0x323   :  { %v3054_v45 = vpop.xlane.xlu2 %3053 }
 0x324   :  { %v3082_v29 = vmul.f32 0.020408163, %v3054_v45 }
 0x326   :  { %v3128_v43 = vperm.slane %v3082_v29, %v3108_v10 }
 0x328   :  { %v3024_v4 = vld [vmem:[%s8659_s3 + $0x78] sm:$0x7f]  ;;  %v3129_v11 = vsel %vm3110_vm2, %v3128_v43, %v3127_v50  ;;  %s4173_s3 = smov [#allocation2]  }
 0x329   :  { %v3070_v8 = vsel %vm829_vm1, %v3024_v4, 0.0  ;;  %v3131_v49 = vsel %vm3114_vm3, %v3130_v24, %v3129_v11  ;;  %s3157_s10 = sshll.u32 %s4173_s3, 4  ;;  %s3158_s10 = int_to_ptr.vmem [resolvable:$true] %s3157_s10 }
 0x32a   :  { %3071 = vadd.xlane.f32.xlu2 %v3070_v8  ;;  %v3133_v61 = vsel %vm3118_vm4, %v3132_v9, %v3131_v49 }
 0x32b   :  { %v3144_v17 = vsel %vm3143_vm6, %v3133_v61, %v3142_v41 }
 0x385   :  { %v3063_v5 = vpop.xlane.xlu1 %3062 }
 0x386   :  { %v3085_v39 = vmul.f32 0.020408163, %v3063_v5 }
 0x388   :  { %v3134_v32 = vperm.slane %v3085_v39, %v3106_v35 }
 0x38d   :  { %v3066_v13 = vpop.xlane.xlu2 %3065 }
 0x38e   :  { %v3086_v44 = vmul.f32 0.020408163, %v3066_v13 }
 0x390   :  { %v3135_v0 = vperm.slane %v3086_v44, %v3108_v10 }
 0x392   :  { %v3136_v16 = vsel %vm3110_vm2, %v3135_v0, %v3134_v32 }
 0x395   :  { %v3069_v48 = vpop.xlane.xlu1 %3068 }
 0x396   :  { %v3087_v2 = vmul.f32 0.020408163, %v3069_v48 }
 0x398   :  { %v3137_v51 = vperm.slane %v3087_v2, %v3112_v54 }
 0x39a   :  { %v3138_v8 = vsel %vm3114_vm3, %v3137_v51, %v3136_v16 }
 0x39d   :  { %v3072_v56 = vpop.xlane.xlu2 %3071 }
 0x39e   :  { %v3088_v52 = vmul.f32 0.020408163, %v3072_v56 }
 0x3a0   :  { %v3139_v4 = vperm.slane %v3088_v52, %v3116_v28 }
 0x3a2   :  { %v3140_v30 = vsel %vm3118_vm4, %v3139_v4, %v3138_v8 }
 0x3a3   :  { %v3146_v12 = vsel %vm3145_vm7, %v3140_v30, %v3144_v17 }
 0x3a4   :  { %3149 = vst.msk [vmem:[#allocation2] sm:$0xf] %vm3148_vm8, %v3146_v12 }
 0x3a5   :  { %3162 = dma.vmem_to_hbm [thread:$0]  %s3158_s10, 64, %s3160_s13, [#allocation3]  }
 0x3a6   :  { %4170 = dma.done.wait [#allocation3], 64  }
 0x3a7   :  { %4171 = vsyncadd [#allocation3], 4294967232 }
 0x3a8   :  { %3169 = vsyncpa [#allocation3], 1 }

</bundles_post_ra>
